<compile_context>
chip_gen: v5e
topology: v5e:2x2
jax: 0.10.0
libtpu: 0.0.40
codegen_flags: <defaults>
</compile_context>

<pallas_src>
import functools

import numpy as np
import jax
import jax.numpy as jnp
from jax import lax
from jax.experimental import pallas as pl
from jax.experimental.pallas import tpu as pltpu


# ---------------------------------------------------------------------------
# Parameter init (replicates MixConv2dv1.__init__, 'equal_params' split)
# ---------------------------------------------------------------------------
def _equal_params_channel_split(out_ch, k):
    groups = len(k)
    b = [out_ch] + [0] * groups
    a = np.eye(groups + 1, groups, k=-1)
    a -= np.roll(a, 1, axis=1)
    a *= np.array(k) ** 2
    a[0] = 1
    ch = np.linalg.lstsq(a, b, rcond=None)[0].round().astype(int)
    # Guard against negative counts from lstsq rounding on odd out_ch/k combos.
    return [max(int(c), 0) for c in ch]


def init_mixconv_params(key, in_ch, out_ch, k=(3, 5, 7)):
    """Weights HWIO, one (w, b) pair per branch (nn.Conv2d-style uniform init)."""
    ch = _equal_params_channel_split(out_ch, k)
    params = []
    for g, kg in enumerate(k):
        co = ch[g]
        key, kw, kb = jax.random.split(key, 3)
        fan_in = in_ch * kg * kg
        bound = 1.0 / np.sqrt(fan_in)
        w = jax.random.uniform(kw, (kg, kg, in_ch, co), jnp.float32, -bound, bound)
        b = jax.random.uniform(kb, (co,), jnp.float32, -bound, bound)
        params.append((w, b))
    return params, ch


# ---------------------------------------------------------------------------
# Wrapper-side weight fusion (centered zero-pad to kmax, concat on Cout)
# ---------------------------------------------------------------------------
def _round_up(x, m):
    return (x + m - 1) // m * m


def _fuse_params(params, k, cpad):
    """Returns Wf (Cout, kmax^2*cpad) bf16, bias (Cout,1) f32, kmax.

    K-axis ordering is (ky, kx, cin) with cin fastest — must match the patch
    slab built inside the kernel.  Centered zero-padding of each branch kernel
    to kmax x kmax preserves 'same'-conv semantics exactly; the extra zero
    taps / zero channels are free on the MXU.
    """
    live = [(w, b, kg) for (w, b), kg in zip(params, k) if w.shape[-1] > 0]
    kmax = max(kg for _, _, kg in live)
    ws, bs = [], []
    for w, b, kg in live:
        p = (kmax - kg) // 2          # kmax, kg both odd -> exact centering
        ws.append(jnp.pad(w, ((p, p), (p, p), (0, 0), (0, 0))))
        bs.append(b)
    W = jnp.concatenate(ws, axis=-1)                    # (kmax, kmax, Cin, Cout)
    bias = jnp.concatenate(bs, axis=0)                  # (Cout,)
    cin, cout = W.shape[2], W.shape[3]
    W = jnp.pad(W, ((0, 0), (0, 0), (0, cpad - cin), (0, 0)))
    Wf = jnp.transpose(W, (3, 0, 1, 2)).reshape(cout, kmax * kmax * cpad)
    return Wf.astype(jnp.bfloat16), bias.reshape(cout, 1).astype(jnp.float32), kmax


# ---------------------------------------------------------------------------
# Fused Pallas kernel: in-VMEM im2col of a halo'd row tile + one MXU matmul
# ---------------------------------------------------------------------------
def _mixconv_kernel(w_ref, b_ref, x0_ref, x1_ref, o_ref, patch_ref,
                    *, kmax, wp, cpad, tr):
    # Halo window for this row tile: flat columns [i*TR, (i+2)*TR).
    # tr is a multiple of 128 so the lane-dim concat is tile-aligned.
    win = jnp.concatenate([x0_ref[...], x1_ref[...]], axis=1)     # (cpad, 2*TR) f32

    # In-VMEM im2col: one statically shifted view per tap, stacked on sublanes
    # at 8-aligned offsets (cpad == 8 for f32) -> plain aligned stores.
    for t in range(kmax * kmax):
        dy, dx = divmod(t, kmax)
        off = dy * wp + dx                                        # static shift
        patch_ref[t * cpad:(t + 1) * cpad, :] = win[:, off:off + tr]

    # Single big contraction on the MXU: bf16 operands, f32 accumulation.
    acc = jnp.dot(w_ref[...], patch_ref[...].astype(jnp.bfloat16),
                  preferred_element_type=jnp.float32)             # (Cout, TR)
    o_ref[...] = acc + b_ref[...]                                 # f32 bias/output


def mixconv2d_v1(x_nchw, params, k=(3, 5, 7), tile_rows=2048):
    """Forward pass of MixConv2dv1 (stride=1, dilation=1, bias=True)."""
    N, cin, H, W = x_nchw.shape
    cpad = _round_up(cin, 8)                    # sublane-align channel axis (f32)
    Wf, bias, kmax = _fuse_params(params, k, cpad)
    cout, Kp = Wf.shape
    p = kmax // 2
    Hp, Wp = H + 2 * p, W + 2 * p

    # ---- layout prep: all ~1x-input sized (no HBM-amplified patch matrix) ----
    x = jnp.transpose(x_nchw, (0, 2, 3, 1))                        # NCHW -> NHWC
    x = jnp.pad(x, ((0, 0), (p, p), (p, p), (0, cpad - cin)))      # halo + chan pad
    xflat = jnp.transpose(x, (3, 0, 1, 2)).reshape(cpad, N * Hp * Wp)

    rows_total = N * Hp * Wp                    # flat output rows (padded width)
    max_off = 2 * p * Wp + 2 * p                # largest tap shift
    tr = min(_round_up(tile_rows, 128), _round_up(rows_total, 128))
    tr = max(tr, _round_up(max_off, 128), 128)  # halo must fit in the next tile
    assert tr % 128 == 0 and max_off <= tr
    n_tiles = pl.cdiv(rows_total, tr)
    rows_pad = n_tiles * tr
    lpad = (n_tiles + 1) * tr                   # +1 tile so the halo block exists
    xflat = jnp.pad(xflat, ((0, 0), (0, lpad - rows_total)))       # pad 1x input

    kernel = functools.partial(_mixconv_kernel, kmax=kmax, wp=Wp, cpad=cpad, tr=tr)

    cost = pl.CostEstimate(
        flops=2 * cout * Kp * rows_pad,
        transcendentals=0,
        bytes_accessed=(2 * 4 * cpad * lpad        # input row tiles (streamed 2x)
                        + 2 * cout * Kp            # bf16 weights (read once)
                        + 4 * cout                 # bias
                        + 4 * cout * rows_pad),    # f32 output
    )

    out = pl.pallas_call(
        kernel,
        out_shape=jax.ShapeDtypeStruct((cout, rows_pad), jnp.float32),
        grid_spec=pltpu.PrefetchScalarGridSpec(
            num_scalar_prefetch=0,
            grid=(n_tiles,),
            in_specs=[
                pl.BlockSpec((cout, Kp), lambda i: (0, 0)),      # weights (resident)
                pl.BlockSpec((cout, 1), lambda i: (0, 0)),       # bias    (resident)
                pl.BlockSpec((cpad, tr), lambda i: (0, i)),      # row tile
                pl.BlockSpec((cpad, tr), lambda i: (0, i + 1)),  # halo = next tile
            ],
            out_specs=pl.BlockSpec((cout, tr), lambda i: (0, i)),
            scratch_shapes=[pltpu.VMEM((Kp, tr), jnp.float32)],  # patch slab
        ),
        compiler_params=pltpu.CompilerParams(
            dimension_semantics=("parallel",),      # megacore-shard row tiles (v7x)
            vmem_limit_bytes=48 * 1024 * 1024,      # safe on v5e/v6e (128M) & v7x (64M)
        ),
        cost_estimate=cost,
    )(Wf, bias, xflat, xflat)

    # Cheap 1x-output-sized layout plumbing: drop padded rows/columns, go NCHW.
    y = out[:, :rows_total].reshape(cout, N, Hp, Wp)[:, :, :H, :W]
    return jnp.transpose(y, (1, 0, 2, 3))           # matches torch.cat(dim=1)


# ---------------------------------------------------------------------------
# Pure-JAX reference
# ---------------------------------------------------------------------------
def _reference_mixconv(x_nchw, params, k=(3, 5, 7)):
    x = jnp.transpose(x_nchw, (0, 2, 3, 1))
    outs = []
    for (w, b), kg in zip(params, k):
        if w.shape[-1] == 0:
            continue
        p = kg // 2
        y = lax.conv_general_dilated(
            x, w, window_strides=(1, 1), padding=[(p, p), (p, p)],
            dimension_numbers=("NHWC", "HWIO", "NHWC"))
        outs.append(y + b)
    y = jnp.concatenate(outs, axis=-1)
    return jnp.transpose(y, (0, 3, 1, 2))


if __name__ == "__main__":
    key = jax.random.PRNGKey(0)
    in_ch, out_ch = 4, 16
    k = (3, 5, 7)

    kx, kp = jax.random.split(key)
    x = jax.random.normal(kx, (2, in_ch, 16, 16), jnp.float32)   # NCHW input

    params, ch = init_mixconv_params(kp, in_ch, out_ch, k)

    y = jax.block_until_ready(mixconv2d_v1(x, params, k))

    y_ref = _reference_mixconv(x, params, k)
    total_co = sum(w.shape[-1] for (w, _) in params if w.shape[-1] > 0)
    assert y.shape == (2, total_co, 16, 16), y.shape
    # bf16 MXU operands with f32 accumulation -> ~1e-2 accuracy budget.
    np.testing.assert_allclose(np.asarray(y), np.asarray(y_ref), rtol=1e-2, atol=1e-2)

    print("KERNEL_OK")
</pallas_src>

<mosaic_0001>
module attributes {stable_mosaic.version = 11 : i64} {
  func.func @_mixconv_kernel(%arg0: i32, %arg1: memref<16x392xbf16, #tpu.memory_space<vmem>>, %arg2: memref<16x1xf32, #tpu.memory_space<vmem>>, %arg3: memref<8x1024xf32, #tpu.memory_space<vmem>>, %arg4: memref<8x1024xf32, #tpu.memory_space<vmem>>, %arg5: memref<16x1024xf32, #tpu.memory_space<vmem>>, %arg6: memref<392x1024xf32, #tpu.memory_space<vmem>>) attributes {dimension_semantics = [#tpu.dimension_semantics<parallel>], iteration_bounds = array<i64: 1>, scalar_prefetch = 0 : i64, scratch_operands = 1 : i64, tpu.core_type = #tpu.core_type<tc>, window_params = [{pipeline_mode = #tpu.pipeline_mode<synchronous>, transform_indices = @transform_0, window_bounds = array<i64: 16, 392>}, {pipeline_mode = #tpu.pipeline_mode<synchronous>, transform_indices = @transform_1, window_bounds = array<i64: 16, 1>}, {transform_indices = @transform_2, window_bounds = array<i64: 8, 1024>}, {transform_indices = @transform_3, window_bounds = array<i64: 8, 1024>}, {transform_indices = @transform_4, window_bounds = array<i64: 16, 1024>}]} {
    %c0 = arith.constant 0 : index
    %c0_0 = arith.constant 0 : index
    %0 = vector.load %arg3[%c0, %c0_0] : memref<8x1024xf32, #tpu.memory_space<vmem>>, vector<8x1024xf32>
    %c0_1 = arith.constant 0 : index
    %c0_2 = arith.constant 0 : index
    %1 = vector.load %arg4[%c0_1, %c0_2] : memref<8x1024xf32, #tpu.memory_space<vmem>>, vector<8x1024xf32>
    %2 = tpu.concatenate %0, %1 in 1 : vector<8x1024xf32>, vector<8x1024xf32> -> vector<8x2048xf32>
    %3 = vector.extract_strided_slice %2 {offsets = [0, 0], sizes = [8, 1024], strides = [1, 1]} : vector<8x2048xf32> to vector<8x1024xf32>
    %c0_3 = arith.constant 0 : index
    %c0_4 = arith.constant 0 : index
    %4 = vector.load %arg6[%c0_3, %c0_4] : memref<392x1024xf32, #tpu.memory_space<vmem>>, vector<8x1024xf32>
    tpu.vector_store %arg6[%c0_3, %c0_4], %3 {strides = array<i32>} : memref<392x1024xf32, #tpu.memory_space<vmem>>, vector<8x1024xf32>,
    %5 = vector.extract_strided_slice %2 {offsets = [0, 1], sizes = [8, 1024], strides = [1, 1]} : vector<8x2048xf32> to vector<8x1024xf32>
    %c8 = arith.constant 8 : index
    %c0_5 = arith.constant 0 : index
    %6 = vector.load %arg6[%c8, %c0_5] : memref<392x1024xf32, #tpu.memory_space<vmem>>, vector<8x1024xf32>
    tpu.vector_store %arg6[%c8, %c0_5], %5 {strides = array<i32>} : memref<392x1024xf32, #tpu.memory_space<vmem>>, vector<8x1024xf32>,
    %7 = vector.extract_strided_slice %2 {offsets = [0, 2], sizes = [8, 1024], strides = [1, 1]} : vector<8x2048xf32> to vector<8x1024xf32>
    %c16 = arith.constant 16 : index
    %c0_6 = arith.constant 0 : index
    %8 = vector.load %arg6[%c16, %c0_6] : memref<392x1024xf32, #tpu.memory_space<vmem>>, vector<8x1024xf32>
    tpu.vector_store %arg6[%c16, %c0_6], %7 {strides = array<i32>} : memref<392x1024xf32, #tpu.memory_space<vmem>>, vector<8x1024xf32>,
    %9 = vector.extract_strided_slice %2 {offsets = [0, 3], sizes = [8, 1024], strides = [1, 1]} : vector<8x2048xf32> to vector<8x1024xf32>
    %c24 = arith.constant 24 : index
    %c0_7 = arith.constant 0 : index
    %10 = vector.load %arg6[%c24, %c0_7] : memref<392x1024xf32, #tpu.memory_space<vmem>>, vector<8x1024xf32>
    tpu.vector_store %arg6[%c24, %c0_7], %9 {strides = array<i32>} : memref<392x1024xf32, #tpu.memory_space<vmem>>, vector<8x1024xf32>,
    %11 = vector.extract_strided_slice %2 {offsets = [0, 4], sizes = [8, 1024], strides = [1, 1]} : vector<8x2048xf32> to vector<8x1024xf32>
    %c32 = arith.constant 32 : index
    %c0_8 = arith.constant 0 : index
    %12 = vector.load %arg6[%c32, %c0_8] : memref<392x1024xf32, #tpu.memory_space<vmem>>, vector<8x1024xf32>
    tpu.vector_store %arg6[%c32, %c0_8], %11 {strides = array<i32>} : memref<392x1024xf32, #tpu.memory_space<vmem>>, vector<8x1024xf32>,
    %13 = vector.extract_strided_slice %2 {offsets = [0, 5], sizes = [8, 1024], strides = [1, 1]} : vector<8x2048xf32> to vector<8x1024xf32>
    %c40 = arith.constant 40 : index
    %c0_9 = arith.constant 0 : index
    %14 = vector.load %arg6[%c40, %c0_9] : memref<392x1024xf32, #tpu.memory_space<vmem>>, vector<8x1024xf32>
    tpu.vector_store %arg6[%c40, %c0_9], %13 {strides = array<i32>} : memref<392x1024xf32, #tpu.memory_space<vmem>>, vector<8x1024xf32>,
    %15 = vector.extract_strided_slice %2 {offsets = [0, 6], sizes = [8, 1024], strides = [1, 1]} : vector<8x2048xf32> to vector<8x1024xf32>
    %c48 = arith.constant 48 : index
    %c0_10 = arith.constant 0 : index
    %16 = vector.load %arg6[%c48, %c0_10] : memref<392x1024xf32, #tpu.memory_space<vmem>>, vector<8x1024xf32>
    tpu.vector_store %arg6[%c48, %c0_10], %15 {strides = array<i32>} : memref<392x1024xf32, #tpu.memory_space<vmem>>, vector<8x1024xf32>,
    %17 = vector.extract_strided_slice %2 {offsets = [0, 22], sizes = [8, 1024], strides = [1, 1]} : vector<8x2048xf32> to vector<8x1024xf32>
    %c56 = arith.constant 56 : index
    %c0_11 = arith.constant 0 : index
    %18 = vector.load %arg6[%c56, %c0_11] : memref<392x1024xf32, #tpu.memory_space<vmem>>, vector<8x1024xf32>
    tpu.vector_store %arg6[%c56, %c0_11], %17 {strides = array<i32>} : memref<392x1024xf32, #tpu.memory_space<vmem>>, vector<8x1024xf32>,
    %19 = vector.extract_strided_slice %2 {offsets = [0, 23], sizes = [8, 1024], strides = [1, 1]} : vector<8x2048xf32> to vector<8x1024xf32>
    %c64 = arith.constant 64 : index
    %c0_12 = arith.constant 0 : index
    %20 = vector.load %arg6[%c64, %c0_12] : memref<392x1024xf32, #tpu.memory_space<vmem>>, vector<8x1024xf32>
    tpu.vector_store %arg6[%c64, %c0_12], %19 {strides = array<i32>} : memref<392x1024xf32, #tpu.memory_space<vmem>>, vector<8x1024xf32>,
    %21 = vector.extract_strided_slice %2 {offsets = [0, 24], sizes = [8, 1024], strides = [1, 1]} : vector<8x2048xf32> to vector<8x1024xf32>
    %c72 = arith.constant 72 : index
    %c0_13 = arith.constant 0 : index
    %22 = vector.load %arg6[%c72, %c0_13] : memref<392x1024xf32, #tpu.memory_space<vmem>>, vector<8x1024xf32>
    tpu.vector_store %arg6[%c72, %c0_13], %21 {strides = array<i32>} : memref<392x1024xf32, #tpu.memory_space<vmem>>, vector<8x1024xf32>,
    %23 = vector.extract_strided_slice %2 {offsets = [0, 25], sizes = [8, 1024], strides = [1, 1]} : vector<8x2048xf32> to vector<8x1024xf32>
    %c80 = arith.constant 80 : index
    %c0_14 = arith.constant 0 : index
    %24 = vector.load %arg6[%c80, %c0_14] : memref<392x1024xf32, #tpu.memory_space<vmem>>, vector<8x1024xf32>
    tpu.vector_store %arg6[%c80, %c0_14], %23 {strides = array<i32>} : memref<392x1024xf32, #tpu.memory_space<vmem>>, vector<8x1024xf32>,
    %25 = vector.extract_strided_slice %2 {offsets = [0, 26], sizes = [8, 1024], strides = [1, 1]} : vector<8x2048xf32> to vector<8x1024xf32>
    %c88 = arith.constant 88 : index
    %c0_15 = arith.constant 0 : index
    %26 = vector.load %arg6[%c88, %c0_15] : memref<392x1024xf32, #tpu.memory_space<vmem>>, vector<8x1024xf32>
    tpu.vector_store %arg6[%c88, %c0_15], %25 {strides = array<i32>} : memref<392x1024xf32, #tpu.memory_space<vmem>>, vector<8x1024xf32>,
    %27 = vector.extract_strided_slice %2 {offsets = [0, 27], sizes = [8, 1024], strides = [1, 1]} : vector<8x2048xf32> to vector<8x1024xf32>
    %c96 = arith.constant 96 : index
    %c0_16 = arith.constant 0 : index
    %28 = vector.load %arg6[%c96, %c0_16] : memref<392x1024xf32, #tpu.memory_space<vmem>>, vector<8x1024xf32>
    tpu.vector_store %arg6[%c96, %c0_16], %27 {strides = array<i32>} : memref<392x1024xf32, #tpu.memory_space<vmem>>, vector<8x1024xf32>,
    %29 = vector.extract_strided_slice %2 {offsets = [0, 28], sizes = [8, 1024], strides = [1, 1]} : vector<8x2048xf32> to vector<8x1024xf32>
    %c104 = arith.constant 104 : index
    %c0_17 = arith.constant 0 : index
    %30 = vector.load %arg6[%c104, %c0_17] : memref<392x1024xf32, #tpu.memory_space<vmem>>, vector<8x1024xf32>
    tpu.vector_store %arg6[%c104, %c0_17], %29 {strides = array<i32>} : memref<392x1024xf32, #tpu.memory_space<vmem>>, vector<8x1024xf32>,
    %31 = vector.extract_strided_slice %2 {offsets = [0, 44], sizes = [8, 1024], strides = [1, 1]} : vector<8x2048xf32> to vector<8x1024xf32>
    %c112 = arith.constant 112 : index
    %c0_18 = arith.constant 0 : index
    %32 = vector.load %arg6[%c112, %c0_18] : memref<392x1024xf32, #tpu.memory_space<vmem>>, vector<8x1024xf32>
    tpu.vector_store %arg6[%c112, %c0_18], %31 {strides = array<i32>} : memref<392x1024xf32, #tpu.memory_space<vmem>>, vector<8x1024xf32>,
    %33 = vector.extract_strided_slice %2 {offsets = [0, 45], sizes = [8, 1024], strides = [1, 1]} : vector<8x2048xf32> to vector<8x1024xf32>
    %c120 = arith.constant 120 : index
    %c0_19 = arith.constant 0 : index
    %34 = vector.load %arg6[%c120, %c0_19] : memref<392x1024xf32, #tpu.memory_space<vmem>>, vector<8x1024xf32>
    tpu.vector_store %arg6[%c120, %c0_19], %33 {strides = array<i32>} : memref<392x1024xf32, #tpu.memory_space<vmem>>, vector<8x1024xf32>,
    %35 = vector.extract_strided_slice %2 {offsets = [0, 46], sizes = [8, 1024], strides = [1, 1]} : vector<8x2048xf32> to vector<8x1024xf32>
    %c128 = arith.constant 128 : index
    %c0_20 = arith.constant 0 : index
    %36 = vector.load %arg6[%c128, %c0_20] : memref<392x1024xf32, #tpu.memory_space<vmem>>, vector<8x1024xf32>
    tpu.vector_store %arg6[%c128, %c0_20], %35 {strides = array<i32>} : memref<392x1024xf32, #tpu.memory_space<vmem>>, vector<8x1024xf32>,
    %37 = vector.extract_strided_slice %2 {offsets = [0, 47], sizes = [8, 1024], strides = [1, 1]} : vector<8x2048xf32> to vector<8x1024xf32>
    %c136 = arith.constant 136 : index
    %c0_21 = arith.constant 0 : index
    %38 = vector.load %arg6[%c136, %c0_21] : memref<392x1024xf32, #tpu.memory_space<vmem>>, vector<8x1024xf32>
    tpu.vector_store %arg6[%c136, %c0_21], %37 {strides = array<i32>} : memref<392x1024xf32, #tpu.memory_space<vmem>>, vector<8x1024xf32>,
    %39 = vector.extract_strided_slice %2 {offsets = [0, 48], sizes = [8, 1024], strides = [1, 1]} : vector<8x2048xf32> to vector<8x1024xf32>
    %c144 = arith.constant 144 : index
    %c0_22 = arith.constant 0 : index
    %40 = vector.load %arg6[%c144, %c0_22] : memref<392x1024xf32, #tpu.memory_space<vmem>>, vector<8x1024xf32>
    tpu.vector_store %arg6[%c144, %c0_22], %39 {strides = array<i32>} : memref<392x1024xf32, #tpu.memory_space<vmem>>, vector<8x1024xf32>,
    %41 = vector.extract_strided_slice %2 {offsets = [0, 49], sizes = [8, 1024], strides = [1, 1]} : vector<8x2048xf32> to vector<8x1024xf32>
    %c152 = arith.constant 152 : index
    %c0_23 = arith.constant 0 : index
    %42 = vector.load %arg6[%c152, %c0_23] : memref<392x1024xf32, #tpu.memory_space<vmem>>, vector<8x1024xf32>
    tpu.vector_store %arg6[%c152, %c0_23], %41 {strides = array<i32>} : memref<392x1024xf32, #tpu.memory_space<vmem>>, vector<8x1024xf32>,
    %43 = vector.extract_strided_slice %2 {offsets = [0, 50], sizes = [8, 1024], strides = [1, 1]} : vector<8x2048xf32> to vector<8x1024xf32>
    %c160 = arith.constant 160 : index
    %c0_24 = arith.constant 0 : index
    %44 = vector.load %arg6[%c160, %c0_24] : memref<392x1024xf32, #tpu.memory_space<vmem>>, vector<8x1024xf32>
    tpu.vector_store %arg6[%c160, %c0_24], %43 {strides = array<i32>} : memref<392x1024xf32, #tpu.memory_space<vmem>>, vector<8x1024xf32>,
    %45 = vector.extract_strided_slice %2 {offsets = [0, 66], sizes = [8, 1024], strides = [1, 1]} : vector<8x2048xf32> to vector<8x1024xf32>
    %c168 = arith.constant 168 : index
    %c0_25 = arith.constant 0 : index
    %46 = vector.load %arg6[%c168, %c0_25] : memref<392x1024xf32, #tpu.memory_space<vmem>>, vector<8x1024xf32>
    tpu.vector_store %arg6[%c168, %c0_25], %45 {strides = array<i32>} : memref<392x1024xf32, #tpu.memory_space<vmem>>, vector<8x1024xf32>,
    %47 = vector.extract_strided_slice %2 {offsets = [0, 67], sizes = [8, 1024], strides = [1, 1]} : vector<8x2048xf32> to vector<8x1024xf32>
    %c176 = arith.constant 176 : index
    %c0_26 = arith.constant 0 : index
    %48 = vector.load %arg6[%c176, %c0_26] : memref<392x1024xf32, #tpu.memory_space<vmem>>, vector<8x1024xf32>
    tpu.vector_store %arg6[%c176, %c0_26], %47 {strides = array<i32>} : memref<392x1024xf32, #tpu.memory_space<vmem>>, vector<8x1024xf32>,
    %49 = vector.extract_strided_slice %2 {offsets = [0, 68], sizes = [8, 1024], strides = [1, 1]} : vector<8x2048xf32> to vector<8x1024xf32>
    %c184 = arith.constant 184 : index
    %c0_27 = arith.constant 0 : index
    %50 = vector.load %arg6[%c184, %c0_27] : memref<392x1024xf32, #tpu.memory_space<vmem>>, vector<8x1024xf32>
    tpu.vector_store %arg6[%c184, %c0_27], %49 {strides = array<i32>} : memref<392x1024xf32, #tpu.memory_space<vmem>>, vector<8x1024xf32>,
    %51 = vector.extract_strided_slice %2 {offsets = [0, 69], sizes = [8, 1024], strides = [1, 1]} : vector<8x2048xf32> to vector<8x1024xf32>
    %c192 = arith.constant 192 : index
    %c0_28 = arith.constant 0 : index
    %52 = vector.load %arg6[%c192, %c0_28] : memref<392x1024xf32, #tpu.memory_space<vmem>>, vector<8x1024xf32>
    tpu.vector_store %arg6[%c192, %c0_28], %51 {strides = array<i32>} : memref<392x1024xf32, #tpu.memory_space<vmem>>, vector<8x1024xf32>,
    %53 = vector.extract_strided_slice %2 {offsets = [0, 70], sizes = [8, 1024], strides = [1, 1]} : vector<8x2048xf32> to vector<8x1024xf32>
    %c200 = arith.constant 200 : index
    %c0_29 = arith.constant 0 : index
    %54 = vector.load %arg6[%c200, %c0_29] : memref<392x1024xf32, #tpu.memory_space<vmem>>, vector<8x1024xf32>
    tpu.vector_store %arg6[%c200, %c0_29], %53 {strides = array<i32>} : memref<392x1024xf32, #tpu.memory_space<vmem>>, vector<8x1024xf32>,
    %55 = vector.extract_strided_slice %2 {offsets = [0, 71], sizes = [8, 1024], strides = [1, 1]} : vector<8x2048xf32> to vector<8x1024xf32>
    %c208 = arith.constant 208 : index
    %c0_30 = arith.constant 0 : index
    %56 = vector.load %arg6[%c208, %c0_30] : memref<392x1024xf32, #tpu.memory_space<vmem>>, vector<8x1024xf32>
    tpu.vector_store %arg6[%c208, %c0_30], %55 {strides = array<i32>} : memref<392x1024xf32, #tpu.memory_space<vmem>>, vector<8x1024xf32>,
    %57 = vector.extract_strided_slice %2 {offsets = [0, 72], sizes = [8, 1024], strides = [1, 1]} : vector<8x2048xf32> to vector<8x1024xf32>
    %c216 = arith.constant 216 : index
    %c0_31 = arith.constant 0 : index
    %58 = vector.load %arg6[%c216, %c0_31] : memref<392x1024xf32, #tpu.memory_space<vmem>>, vector<8x1024xf32>
    tpu.vector_store %arg6[%c216, %c0_31], %57 {strides = array<i32>} : memref<392x1024xf32, #tpu.memory_space<vmem>>, vector<8x1024xf32>,
    %59 = vector.extract_strided_slice %2 {offsets = [0, 88], sizes = [8, 1024], strides = [1, 1]} : vector<8x2048xf32> to vector<8x1024xf32>
    %c224 = arith.constant 224 : index
    %c0_32 = arith.constant 0 : index
    %60 = vector.load %arg6[%c224, %c0_32] : memref<392x1024xf32, #tpu.memory_space<vmem>>, vector<8x1024xf32>
    tpu.vector_store %arg6[%c224, %c0_32], %59 {strides = array<i32>} : memref<392x1024xf32, #tpu.memory_space<vmem>>, vector<8x1024xf32>,
    %61 = vector.extract_strided_slice %2 {offsets = [0, 89], sizes = [8, 1024], strides = [1, 1]} : vector<8x2048xf32> to vector<8x1024xf32>
    %c232 = arith.constant 232 : index
    %c0_33 = arith.constant 0 : index
    %62 = vector.load %arg6[%c232, %c0_33] : memref<392x1024xf32, #tpu.memory_space<vmem>>, vector<8x1024xf32>
    tpu.vector_store %arg6[%c232, %c0_33], %61 {strides = array<i32>} : memref<392x1024xf32, #tpu.memory_space<vmem>>, vector<8x1024xf32>,
    %63 = vector.extract_strided_slice %2 {offsets = [0, 90], sizes = [8, 1024], strides = [1, 1]} : vector<8x2048xf32> to vector<8x1024xf32>
    %c240 = arith.constant 240 : index
    %c0_34 = arith.constant 0 : index
    %64 = vector.load %arg6[%c240, %c0_34] : memref<392x1024xf32, #tpu.memory_space<vmem>>, vector<8x1024xf32>
    tpu.vector_store %arg6[%c240, %c0_34], %63 {strides = array<i32>} : memref<392x1024xf32, #tpu.memory_space<vmem>>, vector<8x1024xf32>,
    %65 = vector.extract_strided_slice %2 {offsets = [0, 91], sizes = [8, 1024], strides = [1, 1]} : vector<8x2048xf32> to vector<8x1024xf32>
    %c248 = arith.constant 248 : index
    %c0_35 = arith.constant 0 : index
    %66 = vector.load %arg6[%c248, %c0_35] : memref<392x1024xf32, #tpu.memory_space<vmem>>, vector<8x1024xf32>
    tpu.vector_store %arg6[%c248, %c0_35], %65 {strides = array<i32>} : memref<392x1024xf32, #tpu.memory_space<vmem>>, vector<8x1024xf32>,
    %67 = vector.extract_strided_slice %2 {offsets = [0, 92], sizes = [8, 1024], strides = [1, 1]} : vector<8x2048xf32> to vector<8x1024xf32>
    %c256 = arith.constant 256 : index
    %c0_36 = arith.constant 0 : index
    %68 = vector.load %arg6[%c256, %c0_36] : memref<392x1024xf32, #tpu.memory_space<vmem>>, vector<8x1024xf32>
    tpu.vector_store %arg6[%c256, %c0_36], %67 {strides = array<i32>} : memref<392x1024xf32, #tpu.memory_space<vmem>>, vector<8x1024xf32>,
    %69 = vector.extract_strided_slice %2 {offsets = [0, 93], sizes = [8, 1024], strides = [1, 1]} : vector<8x2048xf32> to vector<8x1024xf32>
    %c264 = arith.constant 264 : index
    %c0_37 = arith.constant 0 : index
    %70 = vector.load %arg6[%c264, %c0_37] : memref<392x1024xf32, #tpu.memory_space<vmem>>, vector<8x1024xf32>
    tpu.vector_store %arg6[%c264, %c0_37], %69 {strides = array<i32>} : memref<392x1024xf32, #tpu.memory_space<vmem>>, vector<8x1024xf32>,
    %71 = vector.extract_strided_slice %2 {offsets = [0, 94], sizes = [8, 1024], strides = [1, 1]} : vector<8x2048xf32> to vector<8x1024xf32>
    %c272 = arith.constant 272 : index
    %c0_38 = arith.constant 0 : index
    %72 = vector.load %arg6[%c272, %c0_38] : memref<392x1024xf32, #tpu.memory_space<vmem>>, vector<8x1024xf32>
    tpu.vector_store %arg6[%c272, %c0_38], %71 {strides = array<i32>} : memref<392x1024xf32, #tpu.memory_space<vmem>>, vector<8x1024xf32>,
    %73 = vector.extract_strided_slice %2 {offsets = [0, 110], sizes = [8, 1024], strides = [1, 1]} : vector<8x2048xf32> to vector<8x1024xf32>
    %c280 = arith.constant 280 : index
    %c0_39 = arith.constant 0 : index
    %74 = vector.load %arg6[%c280, %c0_39] : memref<392x1024xf32, #tpu.memory_space<vmem>>, vector<8x1024xf32>
    tpu.vector_store %arg6[%c280, %c0_39], %73 {strides = array<i32>} : memref<392x1024xf32, #tpu.memory_space<vmem>>, vector<8x1024xf32>,
    %75 = vector.extract_strided_slice %2 {offsets = [0, 111], sizes = [8, 1024], strides = [1, 1]} : vector<8x2048xf32> to vector<8x1024xf32>
    %c288 = arith.constant 288 : index
    %c0_40 = arith.constant 0 : index
    %76 = vector.load %arg6[%c288, %c0_40] : memref<392x1024xf32, #tpu.memory_space<vmem>>, vector<8x1024xf32>
    tpu.vector_store %arg6[%c288, %c0_40], %75 {strides = array<i32>} : memref<392x1024xf32, #tpu.memory_space<vmem>>, vector<8x1024xf32>,
    %77 = vector.extract_strided_slice %2 {offsets = [0, 112], sizes = [8, 1024], strides = [1, 1]} : vector<8x2048xf32> to vector<8x1024xf32>
    %c296 = arith.constant 296 : index
    %c0_41 = arith.constant 0 : index
    %78 = vector.load %arg6[%c296, %c0_41] : memref<392x1024xf32, #tpu.memory_space<vmem>>, vector<8x1024xf32>
    tpu.vector_store %arg6[%c296, %c0_41], %77 {strides = array<i32>} : memref<392x1024xf32, #tpu.memory_space<vmem>>, vector<8x1024xf32>,
    %79 = vector.extract_strided_slice %2 {offsets = [0, 113], sizes = [8, 1024], strides = [1, 1]} : vector<8x2048xf32> to vector<8x1024xf32>
    %c304 = arith.constant 304 : index
    %c0_42 = arith.constant 0 : index
    %80 = vector.load %arg6[%c304, %c0_42] : memref<392x1024xf32, #tpu.memory_space<vmem>>, vector<8x1024xf32>
    tpu.vector_store %arg6[%c304, %c0_42], %79 {strides = array<i32>} : memref<392x1024xf32, #tpu.memory_space<vmem>>, vector<8x1024xf32>,
    %81 = vector.extract_strided_slice %2 {offsets = [0, 114], sizes = [8, 1024], strides = [1, 1]} : vector<8x2048xf32> to vector<8x1024xf32>
    %c312 = arith.constant 312 : index
    %c0_43 = arith.constant 0 : index
    %82 = vector.load %arg6[%c312, %c0_43] : memref<392x1024xf32, #tpu.memory_space<vmem>>, vector<8x1024xf32>
    tpu.vector_store %arg6[%c312, %c0_43], %81 {strides = array<i32>} : memref<392x1024xf32, #tpu.memory_space<vmem>>, vector<8x1024xf32>,
    %83 = vector.extract_strided_slice %2 {offsets = [0, 115], sizes = [8, 1024], strides = [1, 1]} : vector<8x2048xf32> to vector<8x1024xf32>
    %c320 = arith.constant 320 : index
    %c0_44 = arith.constant 0 : index
    %84 = vector.load %arg6[%c320, %c0_44] : memref<392x1024xf32, #tpu.memory_space<vmem>>, vector<8x1024xf32>
    tpu.vector_store %arg6[%c320, %c0_44], %83 {strides = array<i32>} : memref<392x1024xf32, #tpu.memory_space<vmem>>, vector<8x1024xf32>,
    %85 = vector.extract_strided_slice %2 {offsets = [0, 116], sizes = [8, 1024], strides = [1, 1]} : vector<8x2048xf32> to vector<8x1024xf32>
    %c328 = arith.constant 328 : index
    %c0_45 = arith.constant 0 : index
    %86 = vector.load %arg6[%c328, %c0_45] : memref<392x1024xf32, #tpu.memory_space<vmem>>, vector<8x1024xf32>
    tpu.vector_store %arg6[%c328, %c0_45], %85 {strides = array<i32>} : memref<392x1024xf32, #tpu.memory_space<vmem>>, vector<8x1024xf32>,
    %87 = vector.extract_strided_slice %2 {offsets = [0, 132], sizes = [8, 1024], strides = [1, 1]} : vector<8x2048xf32> to vector<8x1024xf32>
    %c336 = arith.constant 336 : index
    %c0_46 = arith.constant 0 : index
    %88 = vector.load %arg6[%c336, %c0_46] : memref<392x1024xf32, #tpu.memory_space<vmem>>, vector<8x1024xf32>
    tpu.vector_store %arg6[%c336, %c0_46], %87 {strides = array<i32>} : memref<392x1024xf32, #tpu.memory_space<vmem>>, vector<8x1024xf32>,
    %89 = vector.extract_strided_slice %2 {offsets = [0, 133], sizes = [8, 1024], strides = [1, 1]} : vector<8x2048xf32> to vector<8x1024xf32>
    %c344 = arith.constant 344 : index
    %c0_47 = arith.constant 0 : index
    %90 = vector.load %arg6[%c344, %c0_47] : memref<392x1024xf32, #tpu.memory_space<vmem>>, vector<8x1024xf32>
    tpu.vector_store %arg6[%c344, %c0_47], %89 {strides = array<i32>} : memref<392x1024xf32, #tpu.memory_space<vmem>>, vector<8x1024xf32>,
    %91 = vector.extract_strided_slice %2 {offsets = [0, 134], sizes = [8, 1024], strides = [1, 1]} : vector<8x2048xf32> to vector<8x1024xf32>
    %c352 = arith.constant 352 : index
    %c0_48 = arith.constant 0 : index
    %92 = vector.load %arg6[%c352, %c0_48] : memref<392x1024xf32, #tpu.memory_space<vmem>>, vector<8x1024xf32>
    tpu.vector_store %arg6[%c352, %c0_48], %91 {strides = array<i32>} : memref<392x1024xf32, #tpu.memory_space<vmem>>, vector<8x1024xf32>,
    %93 = vector.extract_strided_slice %2 {offsets = [0, 135], sizes = [8, 1024], strides = [1, 1]} : vector<8x2048xf32> to vector<8x1024xf32>
    %c360 = arith.constant 360 : index
    %c0_49 = arith.constant 0 : index
    %94 = vector.load %arg6[%c360, %c0_49] : memref<392x1024xf32, #tpu.memory_space<vmem>>, vector<8x1024xf32>
    tpu.vector_store %arg6[%c360, %c0_49], %93 {strides = array<i32>} : memref<392x1024xf32, #tpu.memory_space<vmem>>, vector<8x1024xf32>,
    %95 = vector.extract_strided_slice %2 {offsets = [0, 136], sizes = [8, 1024], strides = [1, 1]} : vector<8x2048xf32> to vector<8x1024xf32>
    %c368 = arith.constant 368 : index
    %c0_50 = arith.constant 0 : index
    %96 = vector.load %arg6[%c368, %c0_50] : memref<392x1024xf32, #tpu.memory_space<vmem>>, vector<8x1024xf32>
    tpu.vector_store %arg6[%c368, %c0_50], %95 {strides = array<i32>} : memref<392x1024xf32, #tpu.memory_space<vmem>>, vector<8x1024xf32>,
    %97 = vector.extract_strided_slice %2 {offsets = [0, 137], sizes = [8, 1024], strides = [1, 1]} : vector<8x2048xf32> to vector<8x1024xf32>
    %c376 = arith.constant 376 : index
    %c0_51 = arith.constant 0 : index
    %98 = vector.load %arg6[%c376, %c0_51] : memref<392x1024xf32, #tpu.memory_space<vmem>>, vector<8x1024xf32>
    tpu.vector_store %arg6[%c376, %c0_51], %97 {strides = array<i32>} : memref<392x1024xf32, #tpu.memory_space<vmem>>, vector<8x1024xf32>,
    %99 = vector.extract_strided_slice %2 {offsets = [0, 138], sizes = [8, 1024], strides = [1, 1]} : vector<8x2048xf32> to vector<8x1024xf32>
    %c384 = arith.constant 384 : index
    %c0_52 = arith.constant 0 : index
    %100 = vector.load %arg6[%c384, %c0_52] : memref<392x1024xf32, #tpu.memory_space<vmem>>, vector<8x1024xf32>
    tpu.vector_store %arg6[%c384, %c0_52], %99 {strides = array<i32>} : memref<392x1024xf32, #tpu.memory_space<vmem>>, vector<8x1024xf32>,
    %c0_53 = arith.constant 0 : index
    %c0_54 = arith.constant 0 : index
    %101 = vector.load %arg1[%c0_53, %c0_54] : memref<16x392xbf16, #tpu.memory_space<vmem>>, vector<16x392xbf16>
    %c0_55 = arith.constant 0 : index
    %c0_56 = arith.constant 0 : index
    %102 = vector.load %arg6[%c0_55, %c0_56] : memref<392x1024xf32, #tpu.memory_space<vmem>>, vector<392x1024xf32>
    %103 = arith.truncf %102 : vector<392x1024xf32> to vector<392x1024xbf16>
    %cst = arith.constant dense<0.000000e+00> : vector<16x1024xf32>
    %104 = tpu.matmul %101, %103, %cst {dimension_numbers = #tpu.dot_dimension_numbers<[1], [0], [0], [1], [0, 0, 1, 1], [], []>} : vector<16x392xbf16>, vector<392x1024xbf16>, vector<16x1024xf32> -> vector<16x1024xf32>
    %c0_57 = arith.constant 0 : index
    %c0_58 = arith.constant 0 : index
    %105 = vector.load %arg2[%c0_57, %c0_58] : memref<16x1xf32, #tpu.memory_space<vmem>>, vector<16x1xf32>
    %106 = vector.broadcast %105 : vector<16x1xf32> to vector<16x1024xf32>
    %107 = arith.addf %104, %106 : vector<16x1024xf32>
    %c0_59 = arith.constant 0 : index
    %c0_60 = arith.constant 0 : index
    %108 = vector.load %arg5[%c0_59, %c0_60] : memref<16x1024xf32, #tpu.memory_space<vmem>>, vector<16x1024xf32>
    tpu.vector_store %arg5[%c0_59, %c0_60], %107 {strides = array<i32>} : memref<16x1024xf32, #tpu.memory_space<vmem>>, vector<16x1024xf32>,
    return
  }
  func.func @transform_0(%arg0: i32) -> (i32, i32) {
    %c0_i32 = arith.constant 0 : i32
    %c0_i32_0 = arith.constant 0 : i32
    %c0_i32_1 = arith.constant 0 : i32
    return %c0_i32, %c0_i32_0 : i32, i32
  }
  func.func @transform_1(%arg0: i32) -> (i32, i32) {
    %c0_i32 = arith.constant 0 : i32
    %c0_i32_0 = arith.constant 0 : i32
    %c0_i32_1 = arith.constant 0 : i32
    return %c0_i32, %c0_i32_0 : i32, i32
  }
  func.func @transform_2(%arg0: i32) -> (i32, i32) {
    %c0_i32 = arith.constant 0 : i32
    %c0_i32_0 = arith.constant 0 : i32
    return %c0_i32, %arg0 : i32, i32
  }
  func.func @transform_3(%arg0: i32) -> (i32, i32) {
    %c1_i32 = arith.constant 1 : i32
    %0 = arith.addi %arg0, %c1_i32 : i32
    %c0_i32 = arith.constant 0 : i32
    %c0_i32_0 = arith.constant 0 : i32
    return %c0_i32, %0 : i32, i32
  }
  func.func @transform_4(%arg0: i32) -> (i32, i32) {
    %c0_i32 = arith.constant 0 : i32
    %c0_i32_0 = arith.constant 0 : i32
    return %c0_i32, %arg0 : i32, i32
  }
}

</mosaic_0001>

<bundles_post_ra>
// kernel: tpu_custom_call.1
= control target key start
LH: loop header
LB: loop body
LE: loop exit
PB: predicated region body
PF: predicated region fallthrough
CT: control target
= control target key end

     0   :  { %9 = vsyncpa [#allocation4], 0  ;;  %s7193_s0 = inlined_call_operand.hbm [shape: bf16[16,392], index: 0, kind: input, shape index: {}]   ;;  %s7194_s1 = inlined_call_operand.vmem [shape: f32[16,1], index: 1, kind: input, shape index: {}]   ;;  %s7195_s2 = inlined_call_operand.hbm [shape: f32[8,2048], index: 2, kind: input, shape index: {}]   ;;  %s7196_s3 = inlined_call_operand.hbm [shape: f32[8,2048], index: 3, kind: input, shape index: {}]   ;;  %s7197_s4 = inlined_call_operand.hbm [shape: f32[16,1024], index: 4, kind: output, shape index: {}]  }
   0x1   :  { %10 = vsyncpa [#allocation7], 0  ;;  %s32_s17 = sshll.u32 %s7195_s2, 4  ;;  %s33_s17 = int_to_ptr.hbm [resolvable:$true] %s32_s17 }
   0x2   :  { %11 = vsyncpa [#allocation5], 0  ;;  %s4322_s18 = smov [#allocation6]   ;;  %s16_s22 = sshll.u32 %s7193_s0, 4  ;;  %s17_s22 = int_to_ptr.hbm [resolvable:$true] %s16_s22 }
   0x3   :  { %s34_s19 = sshll.u32 %s4322_s18, 4  ;;  %s4323_s23 = smov [#allocation3]   ;;  %s35_s19 = int_to_ptr.vmem [resolvable:$true] %s34_s19 }
   0x4   :  { %37 = dma.hbm_to_vmem [thread:$0]  %s33_s17, 1024, %s35_s19, [#allocation7]  }
   0x5   :  { %s18_s24 = sshll.u32 %s4323_s23, 4  ;;  %s4324_s25 = smov 256   ;;  %s19_s24 = int_to_ptr.vmem [resolvable:$true] %s18_s24 }
   0x6   :  { %s4325_s26 = smov 16   ;;  %s3207_s28 = scalar_lea.hbm %s7196_s3, 64 }
   0x7   :  { %24 = dma.hbm_to_vmem [thread:$0]  %s17_s22, 512, %s19_s24, [#allocation4], %s4324_s25, %s4324_s25, %s4325_s26  }
   0x8   :  { %s47_s29 = sshll.u32 %s3207_s28, 4  ;;  %s4326_s30 = smov [#allocation8]   ;;  %s48_s29 = int_to_ptr.hbm [resolvable:$true] %s47_s29 }
   0x9   :  { %s49_s5 = sshll.u32 %s4326_s30, 4  ;;  %s50_s5 = int_to_ptr.vmem [resolvable:$true] %s49_s5 }
   0xa   :  { %52 = dma.hbm_to_vmem [thread:$0]  %s48_s29, 1024, %s50_s5, [#allocation7]  }
   0xb   :  { %4316 = dma.done.wait [#allocation4], 512  }
   0xc   :  { %4317 = vsyncadd [#allocation4], 4294966784 }
   0xd   :  { %4318 = dma.done.wait [#allocation7], 2048  }
   0xe   :  { %4319 = vsyncadd [#allocation7], 4294965248  ;;  %v4410_v0 = vld [vmem:[#allocation8] sm:$0xff]  ;;  %v73_v2 = vld [vmem:[#allocation6 + $0x28] sm:$0xff]  ;;  %s4327_s0 = smov 127   ;;  %s4328_s3 = smov 126  }
   0xf   :  { %v72_v1 = vld [vmem:[#allocation6 + $0x20] sm:$0xff]  ;;  %111 = vrot.lane.b32.xlu2 %v4410_v0, %s4327_s0  ;;  %v69_v5 = vld [vmem:[#allocation6 + $0x8] sm:$0xff]  ;;  %v74_v7 = vld [vmem:[#allocation6 + $0x30] sm:$0xff]  ;;  %s4329_s6 = smov 125   ;;  %s4330_s7 = smov 124   ;;  %vm113_vm0 = vcmask 1039360  }
  0x10   :  { %v4413_v3 = vpack.i.bf16 %v73_v2, %v72_v1  ;;  %v68_v4 = vld [vmem:[#allocation6] sm:$0xff]  ;;  %v75_v8 = vld [vmem:[#allocation6 + $0x38] sm:$0xff]  ;;  %v70_v9 = vld [vmem:[#allocation6 + $0x10] sm:$0xff]  ;;  %s4331_s8 = smov 123   ;;  %s4332_s9 = smov 122   ;;  %vm156_vm1 = vcmask 1031168  }
  0x11   :  { %v4415_v6 = vpack.i.bf16 %v69_v5, %v68_v4  ;;  %v71_v10 = vld [vmem:[#allocation6 + $0x18] sm:$0xff]  ;;  %v4419_v11 = vpack.i.bf16 %v75_v8, %v74_v7  ;;  %v77_v13 = vld [vmem:[#allocation8 + $0x8] sm:$0xff]  ;;  %s4333_s10 = smov 106   ;;  %s4334_s11 = smov 105   ;;  %vm199_vm2 = vcmask 1022976   ;;  %vm242_vm3 = vcmask 1014784  }
  0x12   :  { %3300 = vrot.lane.b32.xlu1 %v4413_v3, %s4327_s0  ;;  %v4421_v12 = vpack.i.bf16 %v71_v10, %v70_v9  ;;  %v3369_v14 = vpack.i.bf16 %v77_v13, %v4410_v0  ;;  %s4335_s12 = smov 104   ;;  %s4336_s13 = smov 103   ;;  %vm285_vm4 = vcmask 1006592   ;;  %vm7459_vm5 = vcmask 998400  }
  0x13   :  { %3290 = vrot.lane.b32.xlu0 %v4415_v6, %s4327_s0  ;;  %s4337_s14 = smov 102   ;;  %s4338_s15 = smov 101   ;;  %vm7440_vm6 = vcmask 867328   ;;  %vm414_vm7 = vcmask 859136   ;;  %vm457_vm8 = vcmask 850944   ;;  %vm500_vm9 = vcmask 842752  }
  0x14   :  { %s4339_s16 = smov 100   ;;  %s4340_s17 = smov 84   ;;  %vm543_vm10 = vcmask 834560   ;;  %vm586_vm11 = vcmask 826368   ;;  %vm629_vm12 = vcmask 818176   ;;  %vm715_vm13 = vcmask 678912  }
  0x15   :  { %s4341_s18 = smov 83   ;;  %s4342_s19 = smov 82   ;;  %vm672_vm14 = vcmask 687104   ;;  %vm758_vm15 = vcmask 670720  }
  0x16   :  { %s4343_s20 = smov 81   ;;  %s4344_s21 = smov 80  }
  0x17   :  { %3310 = vrot.lane.b32.xlu2 %v4415_v6, %s4328_s3  ;;  %s4345_s22 = smov 79   ;;  %s4346_s23 = smov 78  }
  0x18   :  { %s4347_s24 = smov 62   ;;  %s4348_s25 = smov 61  }
  0x19   :  { %s4349_s27 = smov 60   ;;  %s4350_s2 = smov 59  }
  0x1a   :  { %3305 = vrot.lane.b32.xlu1 %v4419_v11, %s4327_s0  ;;  %s4351_s28 = smov 58   ;;  %s4352_s29 = smov 57  }
  0x1b   :  { %3295 = vrot.lane.b32.xlu0 %v4421_v12, %s4327_s0  ;;  %s4353_s30 = smov 56   ;;  %s4354_s5 = smov 40  }
  0x1c   :  { %s4355_s0 = smov 39  }
  0x1f   :  { %3325 = vrot.lane.b32.xlu2 %v4419_v11, %s4328_s3 }
  0x22   :  { %3320 = vrot.lane.b32.xlu1 %v4413_v3, %s4328_s3 }
  0x23   :  { %3315 = vrot.lane.b32.xlu0 %v4421_v12, %s4328_s3 }
  0x27   :  { %3335 = vrot.lane.b32.xlu2 %v4421_v12, %s4329_s6 }
  0x2a   :  { %3330 = vrot.lane.b32.xlu1 %v4415_v6, %s4329_s6 }
  0x2b   :  { %154 = vrot.lane.b32.xlu0 %v4410_v0, %s4328_s3  ;;  %s4356_s3 = smov 38  }
  0x2f   :  { %197 = vrot.lane.b32.xlu2 %v4410_v0, %s4329_s6 }
  0x32   :  { %3345 = vrot.lane.b32.xlu1 %v4419_v11, %s4329_s6 }
  0x33   :  { %3340 = vrot.lane.b32.xlu0 %v4413_v3, %s4329_s6  ;;  %s4357_s6 = smov 37  }
  0x37   :  { %3360 = vrot.lane.b32.xlu2 %v4413_v3, %s4330_s7 }
  0x3a   :  { %3355 = vrot.lane.b32.xlu1 %v4421_v12, %s4330_s7 }
  0x3b   :  { %3350 = vrot.lane.b32.xlu0 %v4415_v6, %s4330_s7 }
  0x3f   :  { %3375 = vrot.lane.b32.xlu2 %v4415_v6, %s4331_s8 }
  0x42   :  { %3370 = vrot.lane.b32.xlu1 %v3369_v14, %s4330_s7 }
  0x43   :  { %3365 = vrot.lane.b32.xlu0 %v4419_v11, %s4330_s7  ;;  %s4358_s7 = smov 36  }
  0x47   :  { %3390 = vrot.lane.b32.xlu2 %v4419_v11, %s4331_s8 }
  0x4a   :  { %3385 = vrot.lane.b32.xlu1 %v4413_v3, %s4331_s8 }
  0x4b   :  { %3380 = vrot.lane.b32.xlu0 %v4421_v12, %s4331_s8 }
  0x4f   :  { %3405 = vrot.lane.b32.xlu2 %v4421_v12, %s4332_s9 }
  0x52   :  { %3400 = vrot.lane.b32.xlu1 %v4415_v6, %s4332_s9 }
  0x53   :  { %3395 = vrot.lane.b32.xlu0 %v3369_v14, %s4331_s8  ;;  %s4359_s8 = smov 35  }
  0x57   :  { %3420 = vrot.lane.b32.xlu2 %v3369_v14, %s4332_s9 }
  0x5a   :  { %3415 = vrot.lane.b32.xlu1 %v4419_v11, %s4332_s9 }
  0x5b   :  { %3410 = vrot.lane.b32.xlu0 %v4413_v3, %s4332_s9  ;;  %s4360_s9 = smov 34  }
  0x5f   :  { %3435 = vrot.lane.b32.xlu2 %v4413_v3, %s4333_s10 }
  0x62   :  { %3430 = vrot.lane.b32.xlu1 %v4421_v12, %s4333_s10 }
  0x63   :  { %3425 = vrot.lane.b32.xlu0 %v4415_v6, %s4333_s10 }
  0x67   :  { %3445 = vrot.lane.b32.xlu2 %v4415_v6, %s4334_s11 }
  0x69   :  { %v4452_v15 = vpop.permute.xlu2 %111 }
  0x6a   :  { %7464 = vst [vmem:[#allocation13_spill] sm:$0xff] %v4452_v15  ;;  %369 = vrot.lane.b32.xlu1 %v4410_v0, %s4333_s10 }
  0x6b   :  { %3440 = vrot.lane.b32.xlu0 %v4419_v11, %s4333_s10  ;;  %s4361_s10 = smov 121  }
  0x6f   :  { %3460 = vrot.lane.b32.xlu2 %v4419_v11, %s4334_s11 }
  0x71   :  { %v4458_v16 = vpop.permute.xlu2 %3310 }
  0x72   :  { %3455 = vrot.lane.b32.xlu1 %v4413_v3, %s4334_s11  ;;  %v7203_v28 = vunpack.i.h.bf16 %v4458_v16 }
  0x73   :  { %3450 = vrot.lane.b32.xlu0 %v4421_v12, %s4334_s11 }
  0x77   :  { %3470 = vrot.lane.b32.xlu2 %v4421_v12, %s4335_s12 }
  0x79   :  { %v4463_v17 = vpop.permute.xlu2 %3325 }
  0x7a   :  { %3465 = vrot.lane.b32.xlu1 %v4415_v6, %s4335_s12  ;;  %v3328_v45 = vunpack.i.h.bf16 %v4463_v17  ;;  %v3327_v46 = vunpack.i.l.bf16 %v4463_v17 }
  0x7b   :  { %412 = vrot.lane.b32.xlu0 %v4410_v0, %s4334_s11  ;;  %s4362_s11 = smov 119  }
  0x7c   :  { %v4545_v57 = vsel %vm156_vm1, %v3327_v46, %v3328_v45 }
  0x7d   :  { %7474 = vst [vmem:[#allocation23_spill] sm:$0xff] %v4545_v57 }
  0x7f   :  { %455 = vrot.lane.b32.xlu2 %v4410_v0, %s4335_s12 }
  0x81   :  { %v4468_v18 = vpop.permute.xlu2 %3335 }
  0x82   :  { %3480 = vrot.lane.b32.xlu1 %v4419_v11, %s4335_s12  ;;  %v3338_v32 = vunpack.i.h.bf16 %v4468_v18  ;;  %v3337_v33 = vunpack.i.l.bf16 %v4468_v18 }
  0x83   :  { %3475 = vrot.lane.b32.xlu0 %v4413_v3, %s4335_s12  ;;  %s4363_s12 = smov 120  }
  0x84   :  { %v4471_v19 = vpop.permute.xlu1 %3300  ;;  %v4511_v37 = vsel %vm199_vm2, %v3337_v33, %v3338_v32 }
  0x85   :  { %7465 = vst [vmem:[#allocation14_spill] sm:$0xff] %v4471_v19  ;;  %v4473_v20 = vpop.permute.xlu0 %3290 }
  0x86   :  { %v7199_v24 = vunpack.i.h.bf16 %v4473_v20  ;;  %7471 = vst [vmem:[#allocation20_spill] sm:$0xff] %v4511_v37 }
  0x87   :  { %3495 = vrot.lane.b32.xlu2 %v4413_v3, %s4336_s13 }
  0x89   :  { %v198_v21 = vpop.permute.xlu2 %197 }
  0x8a   :  { %3490 = vrot.lane.b32.xlu1 %v4421_v12, %s4336_s13 }
  0x8b   :  { %3485 = vrot.lane.b32.xlu0 %v4415_v6, %s4336_s13 }
  0x8c   :  { %v4478_v22 = vpop.permute.xlu1 %3305 }
  0x8d   :  { %7466 = vst [vmem:[#allocation15_spill] sm:$0xff] %v4478_v22  ;;  %v4480_v23 = vpop.permute.xlu0 %3295 }
  0x8e   :  { %7467 = vst [vmem:[#allocation16_spill] sm:$0xff] %v4480_v23  ;;  %v7198_v25 = vunpack.i.l.bf16 %v4480_v23 }
  0x8f   :  { %3505 = vrot.lane.b32.xlu2 %v4415_v6, %s4337_s14 }
  0x90   :  { %v4495_v27 = vsel %vm113_vm0, %v7199_v24, %v7198_v25 }
  0x91   :  { %v4487_v26 = vpop.permute.xlu2 %3360  ;;  %7468 = vst [vmem:[#allocation17_spill] sm:$0xff] %v4495_v27 }
  0x92   :  { %498 = vrot.lane.b32.xlu1 %v4410_v0, %s4336_s13 }
  0x93   :  { %3500 = vrot.lane.b32.xlu0 %v4419_v11, %s4336_s13  ;;  %s4364_s13 = smov 15  }
  0x94   :  { %v3321_v29 = vpop.permute.xlu1 %3320 }
  0x95   :  { %v3316_v30 = vpop.permute.xlu0 %3315  ;;  %v3323_v47 = vunpack.i.h.bf16 %v3321_v29  ;;  %v3322_v49 = vunpack.i.l.bf16 %v3321_v29 }
  0x96   :  { %v3317_v31 = vunpack.i.l.bf16 %v3316_v30  ;;  %v3318_v34 = vunpack.i.h.bf16 %v3316_v30 }
  0x97   :  { %3520 = vrot.lane.b32.xlu2 %v4419_v11, %s4337_s14  ;;  %v4542_v56 = vsel %vm156_vm1, %v3323_v47, %v3327_v46  ;;  %v4551_v59 = vsel %vm156_vm1, %v3322_v49, %v3323_v47 }
  0x98   :  { %v4505_v35 = vsel %vm156_vm1, %v7203_v28, %v3317_v31  ;;  %v4508_v36 = vsel %vm156_vm1, %v3317_v31, %v3318_v34  ;;  %7473 = vst [vmem:[#allocation22_spill] sm:$0xff] %v4542_v56  ;;  %v4562_v62 = vsel %vm156_vm1, %v3318_v34, %v3322_v49 }
  0x99   :  { %7469 = vst [vmem:[#allocation18_spill] sm:$0xff] %v4505_v35  ;;  %v4515_v38 = vpop.permute.xlu2 %3375 }
  0x9a   :  { %7470 = vst [vmem:[#allocation19_spill] sm:$0xff] %v4508_v36  ;;  %3515 = vrot.lane.b32.xlu1 %v4413_v3, %s4337_s14 }
  0x9b   :  { %3510 = vrot.lane.b32.xlu0 %v4421_v12, %s4337_s14  ;;  %7476 = vst [vmem:[#allocation25_spill] sm:$0xff] %v4551_v59 }
  0x9c   :  { %v4521_v40 = vpop.permute.xlu1 %3330  ;;  %7479 = vst [vmem:[#allocation28_spill] sm:$0xff] %v4562_v62 }
  0x9d   :  { %v7202_v41 = vunpack.i.h.bf16 %v4521_v40  ;;  %v155_v42 = vpop.permute.xlu0 %154 }
  0x9e   :  { %v4548_v58 = vsel %vm156_vm1, %v3328_v45, %v155_v42  ;;  %v3363_v45 = vunpack.i.h.bf16 %v4487_v26 }
  0x9f   :  { %v4527_v43 = vsel %vm199_vm2, %v7202_v41, %v3337_v33  ;;  %3530 = vrot.lane.b32.xlu2 %v4421_v12, %s4338_s15  ;;  %7475 = vst [vmem:[#allocation24_spill] sm:$0xff] %v4548_v58 }
  0xa0   :  { %7472 = vst [vmem:[#allocation21_spill] sm:$0xff] %v4527_v43 }
  0xa1   :  { %v4537_v48 = vpop.permute.xlu2 %3390 }
  0xa2   :  { %3525 = vrot.lane.b32.xlu1 %v4415_v6, %s4338_s15  ;;  %v3392_v33 = vunpack.i.l.bf16 %v4537_v48 }
  0xa3   :  { %541 = vrot.lane.b32.xlu0 %v4410_v0, %s4337_s14  ;;  %s4365_s14 = smov 12  }
  0xa4   :  { %v3346_v50 = vpop.permute.xlu1 %3345 }
  0xa5   :  { %v3348_v51 = vunpack.i.h.bf16 %v3346_v50  ;;  %v3347_v52 = vunpack.i.l.bf16 %v3346_v50  ;;  %v3341_v53 = vpop.permute.xlu0 %3340 }
  0xa6   :  { %v3343_v54 = vunpack.i.h.bf16 %v3341_v53  ;;  %v3342_v55 = vunpack.i.l.bf16 %v3341_v53 }
  0xa7   :  { %v4554_v60 = vsel %vm199_vm2, %v3347_v52, %v3348_v51  ;;  %v4557_v61 = vsel %vm199_vm2, %v3348_v51, %v198_v21  ;;  %584 = vrot.lane.b32.xlu2 %v4410_v0, %s4338_s15 }
  0xa8   :  { %7477 = vst [vmem:[#allocation26_spill] sm:$0xff] %v4554_v60  ;;  %v4565_v63 = vsel %vm199_vm2, %v3338_v32, %v3342_v55  ;;  %v4568_v1 = vsel %vm199_vm2, %v3343_v54, %v3347_v52  ;;  %v4571_v2 = vsel %vm199_vm2, %v3342_v55, %v3343_v54  ;;  %v3393_v32 = vunpack.i.h.bf16 %v4537_v48 }
  0xa9   :  { %7478 = vst [vmem:[#allocation27_spill] sm:$0xff] %v4557_v61  ;;  %v4583_v9 = vpop.permute.xlu2 %3405  ;;  %v3362_v48 = vunpack.i.l.bf16 %v4487_v26  ;;  %v7204_v52 = vunpack.i.h.bf16 %v4515_v38 }
  0xaa   :  { %7480 = vst [vmem:[#allocation29_spill] sm:$0xff] %v4565_v63  ;;  %3540 = vrot.lane.b32.xlu1 %v4419_v11, %s4338_s15  ;;  %v292_v47 = vsel %vm285_vm4, %v3392_v33, %v3393_v32 }
  0xab   :  { %7481 = vst [vmem:[#allocation30_spill] sm:$0xff] %v4568_v1  ;;  %3535 = vrot.lane.b32.xlu0 %v4413_v3, %s4338_s15  ;;  %v247_v10 = vsel %vm242_vm3, %v3362_v48, %v3363_v45  ;;  %s4366_s15 = smov 13  }
  0xac   :  { %7482 = vst [vmem:[#allocation31_spill] sm:$0xff] %v4571_v2  ;;  %v3356_v13 = vpop.permute.xlu1 %3355 }
  0xad   :  { %v3357_v14 = vunpack.i.l.bf16 %v3356_v13  ;;  %v4589_v17 = vpop.permute.xlu0 %3350  ;;  %v3358_v49 = vunpack.i.h.bf16 %v3356_v13 }
  0xae   :  { %v7205_v18 = vunpack.i.h.bf16 %v4589_v17 }
  0xaf   :  { %3555 = vrot.lane.b32.xlu2 %v4413_v3, %s4339_s16  ;;  %v245_v7 = vsel %vm242_vm3, %v3357_v14, %v3358_v49  ;;  %v246_v5 = vsel %vm242_vm3, %v3358_v49, %v3362_v48 }
  0xb0   :  { %v244_v21 = vsel %vm242_vm3, %v7205_v18, %v3357_v14 }
  0xb1   :  { %v4597_v29 = vpop.permute.xlu2 %3420 }
  0xb2   :  { %3550 = vrot.lane.b32.xlu1 %v4421_v12, %s4339_s16  ;;  %7483 = vst [vmem:[#allocation32_spill] sm:$0xff] %v4597_v29 }
  0xb3   :  { %3545 = vrot.lane.b32.xlu0 %v4415_v6, %s4339_s16 }
  0xb4   :  { %v3371_v30 = vpop.permute.xlu1 %3370 }
  0xb5   :  { %v3366_v31 = vpop.permute.xlu0 %3365 }
  0xb6   :  { %v3368_v34 = vunpack.i.h.bf16 %v3366_v31  ;;  %v3367_v42 = vunpack.i.l.bf16 %v3366_v31 }
  0xb7   :  { %3565 = vrot.lane.b32.xlu2 %v4415_v6, %s4340_s17 }
  0xb8   :  { %v249_v46 = vsel %vm242_vm3, %v3367_v42, %v3368_v34  ;;  %v248_v26 = vsel %vm242_vm3, %v3363_v45, %v3367_v42 }
  0xb9   :  { %v4608_v50 = vpop.permute.xlu2 %3435  ;;  %v4610_v51 = vpack.c.bf16 %v292_v47, %v249_v46 }
  0xba   :  { %627 = vrot.lane.b32.xlu1 %v4410_v0, %s4339_s16  ;;  %7484 = vst [vmem:[#allocation33_spill] sm:$0xff] %v4608_v50  ;;  %v7213_v44 = vunpack.i.h.bf16 %v4608_v50 }
  0xbb   :  { %7485 = vst [vmem:[#allocation34_spill] sm:$0xff] %v4610_v51  ;;  %3560 = vrot.lane.b32.xlu0 %v4419_v11, %s4339_s16  ;;  %s4367_s16 = smov 17  }
  0xbc   :  { %v3386_v53 = vpop.permute.xlu1 %3385 }
  0xbd   :  { %v3388_v54 = vunpack.i.h.bf16 %v3386_v53  ;;  %v3387_v55 = vunpack.i.l.bf16 %v3386_v53  ;;  %v3381_v31 = vpop.permute.xlu0 %3380 }
  0xbe   :  { %v3383_v8 = vunpack.i.h.bf16 %v3381_v31  ;;  %v3382_v13 = vunpack.i.l.bf16 %v3381_v31 }
  0xbf   :  { %v290_v46 = vsel %vm285_vm4, %v3387_v55, %v3388_v54  ;;  %v291_v47 = vsel %vm285_vm4, %v3388_v54, %v3392_v33  ;;  %3580 = vrot.lane.b32.xlu2 %v4419_v11, %s4340_s17  ;;  %v3407_v54 = vunpack.i.l.bf16 %v4583_v9 }
  0xc0   :  { %v287_v53 = vsel %vm285_vm4, %v7204_v52, %v3382_v13  ;;  %v288_v4 = vsel %vm285_vm4, %v3382_v13, %v3383_v8  ;;  %v289_v31 = vsel %vm285_vm4, %v3383_v8, %v3387_v55  ;;  %v4628_v14 = vpack.c.bf16 %v290_v46, %v247_v10 }
  0xc1   :  { %v4630_v49 = vpack.c.bf16 %v287_v53, %v244_v21  ;;  %v4632_v48 = vpack.c.bf16 %v288_v4, %v245_v7  ;;  %v4634_v42 = vpack.c.bf16 %v289_v31, %v246_v5  ;;  %v4638_v33 = vpop.permute.xlu2 %3445  ;;  %v4640_v45 = vpack.c.bf16 %v291_v47, %v248_v26 }
  0xc2   :  { %7486 = vst [vmem:[#allocation35_spill] sm:$0xff] %v4628_v14  ;;  %3575 = vrot.lane.b32.xlu1 %v4413_v3, %s4340_s17  ;;  %v3373_v8 = vunpack.i.h.bf16 %v3371_v30  ;;  %v3372_v10 = vunpack.i.l.bf16 %v3371_v30  ;;  %v5072_v14 = vld [vmem:[#allocation6 + $0x8] sm:$0xff] }
  0xc3   :  { %7487 = vst [vmem:[#allocation36_spill] sm:$0xff] %v4632_v48  ;;  %3570 = vrot.lane.b32.xlu0 %v4421_v12, %s4340_s17 }
  0xc4   :  { %7488 = vst [vmem:[#allocation37_spill] sm:$0xff] %v4634_v42  ;;  %v4645_v21 = vpop.permute.xlu1 %3400  ;;  %v250_v46 = vsel %vm242_vm3, %v3368_v34, %v3372_v10  ;;  %v4657_v26 = vsel %vm242_vm3, %v3372_v10, %v3373_v8  ;;  %v7200_v8 = vunpack.i.h.bf16 %v4583_v9 }
  0xc5   :  { %7489 = vst [vmem:[#allocation38_spill] sm:$0xff] %v4640_v45  ;;  %v7206_v4 = vunpack.i.h.bf16 %v4645_v21  ;;  %v3396_v5 = vpop.permute.xlu0 %3395 }
  0xc6   :  { %v3398_v7 = vunpack.i.h.bf16 %v3396_v5  ;;  %v3397_v55 = vunpack.i.l.bf16 %v3396_v5  ;;  %7490 = vst [vmem:[#allocation39_spill] sm:$0xff] %v4657_v26  ;;  %v4688_v31 = vsel %vm7459_vm5, %v3407_v54, %v7200_v8 }
  0xc7   :  { %v4651_v13 = vsel %vm7459_vm5, %v7206_v4, %v3407_v54  ;;  %3590 = vrot.lane.b32.xlu2 %v4421_v12, %s4341_s18  ;;  %7494 = vst [vmem:[#allocation43_spill] sm:$0xff] %v4688_v31 }
  0xc8   :  { %v293_v30 = vsel %vm285_vm4, %v3393_v32, %v3397_v55  ;;  %v4660_v47 = vsel %vm285_vm4, %v3397_v55, %v3398_v7 }
  0xc9   :  { %7491 = vst [vmem:[#allocation40_spill] sm:$0xff] %v4660_v47  ;;  %v4662_v53 = vpack.c.bf16 %v293_v30, %v250_v46  ;;  %v4667_v5 = vpop.permute.xlu2 %3460 }
  0xca   :  { %3585 = vrot.lane.b32.xlu1 %v4415_v6, %s4341_s18  ;;  %v3463_v60 = vunpack.i.h.bf16 %v4667_v5 }
  0xcb   :  { %7492 = vst [vmem:[#allocation41_spill] sm:$0xff] %v4662_v53  ;;  %670 = vrot.lane.b32.xlu0 %v4410_v0, %s4340_s17  ;;  %s4368_s17 = smov 14  }
  0xcc   :  { %v3416_v34 = vpop.permute.xlu1 %3415 }
  0xcd   :  { %v4671_v32 = vpop.permute.xlu0 %3410  ;;  %v3418_v41 = vunpack.i.h.bf16 %v3416_v34  ;;  %v3417_v28 = vunpack.i.l.bf16 %v3416_v34 }
  0xce   :  { %v7212_v52 = vunpack.i.h.bf16 %v4671_v32 }
  0xcf   :  { %713 = vrot.lane.b32.xlu2 %v4410_v0, %s4341_s18  ;;  %v4714_v54 = vsel %vm7459_vm5, %v3417_v28, %v3418_v41 }
  0xd0   :  { %7497 = vst [vmem:[#allocation46_spill] sm:$0xff] %v4714_v54  ;;  %v4726_v34 = vsel %vm7459_vm5, %v7212_v52, %v3417_v28 }
  0xd1   :  { %v4676_v10 = vpop.permute.xlu2 %3470  ;;  %7499 = vst [vmem:[#allocation48_spill] sm:$0xff] %v4726_v34 }
  0xd2   :  { %3600 = vrot.lane.b32.xlu1 %v4419_v11, %s4341_s18  ;;  %v3472_v61 = vunpack.i.l.bf16 %v4676_v10 }
  0xd3   :  { %3595 = vrot.lane.b32.xlu0 %v4413_v3, %s4341_s18  ;;  %s4369_s18 = smov 18  }
  0xd4   :  { %v4679_v7 = vpop.permute.xlu1 %3430 }
  0xd5   :  { %7493 = vst [vmem:[#allocation42_spill] sm:$0xff] %v4679_v7  ;;  %v7201_v55 = vunpack.i.h.bf16 %v4679_v7  ;;  %v3432_v46 = vunpack.i.l.bf16 %v4679_v7  ;;  %v4683_v30 = vpop.permute.xlu0 %3425 }
  0xd6   :  { %v7207_v39 = vunpack.i.h.bf16 %v4683_v30 }
  0xd7   :  { %v4694_v25 = vsel %vm7440_vm6, %v3432_v46, %v7201_v55  ;;  %3615 = vrot.lane.b32.xlu2 %v4413_v3, %s4342_s19  ;;  %v7210_v55 = vunpack.i.l.bf16 %v4597_v29  ;;  %v3462_v29 = vunpack.i.l.bf16 %v4667_v5 }
  0xd8   :  { %7495 = vst [vmem:[#allocation44_spill] sm:$0xff] %v4694_v25  ;;  %v4702_v24 = vsel %vm7440_vm6, %v7207_v39, %v3432_v46 }
  0xd9   :  { %7496 = vst [vmem:[#allocation45_spill] sm:$0xff] %v4702_v24  ;;  %v4707_v8 = vpop.permute.xlu2 %455  ;;  %v4719_v26 = vsel %vm7459_vm5, %v3418_v41, %v7210_v55  ;;  %v3473_v55 = vunpack.i.h.bf16 %v4676_v10  ;;  %v4797_v5 = vsel %vm414_vm7, %v3462_v29, %v3463_v60 }
  0xda   :  { %3610 = vrot.lane.b32.xlu1 %v4421_v12, %s4342_s19  ;;  %7498 = vst [vmem:[#allocation47_spill] sm:$0xff] %v4719_v26 }
  0xdb   :  { %3605 = vrot.lane.b32.xlu0 %v4415_v6, %s4342_s19  ;;  %v4763_v53 = vsel %vm457_vm8, %v3472_v61, %v3473_v55  ;;  %7508 = vst [vmem:[#allocation57_spill] sm:$0xff] %v4797_v5 }
  0xdc   :  { %v370_v18 = vpop.permute.xlu1 %369  ;;  %7505 = vst [vmem:[#allocation54_spill] sm:$0xff] %v4763_v53  ;;  %v5070_v53 = vld [vmem:[#allocation6] sm:$0xff] }
  0xdd   :  { %v3441_v46 = vpop.permute.xlu0 %3440 }
  0xde   :  { %v3443_v4 = vunpack.i.h.bf16 %v3441_v46  ;;  %v3442_v39 = vunpack.i.l.bf16 %v3441_v46 }
  0xdf   :  { %3625 = vrot.lane.b32.xlu2 %v4415_v6, %s4343_s20 }
  0xe0   :  { %v4731_v46 = vsel %vm7440_vm6, %v7213_v44, %v3442_v39  ;;  %v4734_v47 = vsel %vm7440_vm6, %v3442_v39, %v3443_v4  ;;  %v4737_v41 = vsel %vm7440_vm6, %v3443_v4, %v370_v18  ;;  %v7217_v39 = vunpack.i.h.bf16 %v4638_v33 }
  0xe1   :  { %7500 = vst [vmem:[#allocation49_spill] sm:$0xff] %v4731_v46  ;;  %v4746_v52 = vpop.permute.xlu2 %3495 }
  0xe2   :  { %7501 = vst [vmem:[#allocation50_spill] sm:$0xff] %v4734_v47  ;;  %756 = vrot.lane.b32.xlu1 %v4410_v0, %s4342_s19 }
  0xe3   :  { %7502 = vst [vmem:[#allocation51_spill] sm:$0xff] %v4737_v41  ;;  %3620 = vrot.lane.b32.xlu0 %v4419_v11, %s4342_s19  ;;  %s4370_s19 = smov 118  }
  0xe4   :  { %v3456_v44 = vpop.permute.xlu1 %3455 }
  0xe5   :  { %v3451_v18 = vpop.permute.xlu0 %3450  ;;  %v3458_v59 = vunpack.i.h.bf16 %v3456_v44  ;;  %v3457_v47 = vunpack.i.l.bf16 %v3456_v44 }
  0xe6   :  { %v3452_v4 = vunpack.i.l.bf16 %v3451_v18  ;;  %v3453_v58 = vunpack.i.h.bf16 %v3451_v18 }
  0xe7   :  { %3640 = vrot.lane.b32.xlu2 %v4419_v11, %s4343_s20  ;;  %v4794_v63 = vsel %vm414_vm7, %v3458_v59, %v3462_v29  ;;  %v4803_v44 = vsel %vm414_vm7, %v3457_v47, %v3458_v59 }
  0xe8   :  { %v4757_v28 = vsel %vm414_vm7, %v7217_v39, %v3452_v4  ;;  %v4760_v15 = vsel %vm414_vm7, %v3452_v4, %v3453_v58  ;;  %7507 = vst [vmem:[#allocation56_spill] sm:$0xff] %v4794_v63 }
  0xe9   :  { %7503 = vst [vmem:[#allocation52_spill] sm:$0xff] %v4757_v28  ;;  %v4767_v10 = vpop.permute.xlu2 %3505 }
  0xea   :  { %7504 = vst [vmem:[#allocation53_spill] sm:$0xff] %v4760_v15  ;;  %3635 = vrot.lane.b32.xlu1 %v4413_v3, %s4343_s20 }
  0xeb   :  { %3630 = vrot.lane.b32.xlu0 %v4421_v12, %s4343_s20  ;;  %7510 = vst [vmem:[#allocation59_spill] sm:$0xff] %v4803_v44 }
  0xec   :  { %v4773_v41 = vpop.permute.xlu1 %3465 }
  0xed   :  { %v7225_v39 = vunpack.i.h.bf16 %v4773_v41  ;;  %v413_v4 = vpop.permute.xlu0 %412 }
  0xee   :  { %v4800_v22 = vsel %vm414_vm7, %v3463_v60, %v413_v4 }
  0xef   :  { %v4779_v57 = vsel %vm457_vm8, %v7225_v39, %v3472_v61  ;;  %3650 = vrot.lane.b32.xlu2 %v4421_v12, %s4344_s21  ;;  %7509 = vst [vmem:[#allocation58_spill] sm:$0xff] %v4800_v22 }
  0xf0   :  { %7506 = vst [vmem:[#allocation55_spill] sm:$0xff] %v4779_v57 }
  0xf1   :  { %v4789_v2 = vpop.permute.xlu2 %3520 }
  0xf2   :  { %3645 = vrot.lane.b32.xlu1 %v4415_v6, %s4344_s21  ;;  %v3523_v22 = vunpack.i.h.bf16 %v4789_v2 }
  0xf3   :  { %799 = vrot.lane.b32.xlu0 %v4410_v0, %s4343_s20 }
  0xf4   :  { %v3481_v61 = vpop.permute.xlu1 %3480 }
  0xf5   :  { %v3483_v39 = vunpack.i.h.bf16 %v3481_v61  ;;  %v3482_v56 = vunpack.i.l.bf16 %v3481_v61  ;;  %v3476_v1 = vpop.permute.xlu0 %3475 }
  0xf6   :  { %v3478_v62 = vunpack.i.h.bf16 %v3476_v1  ;;  %v3477_v18 = vunpack.i.l.bf16 %v3476_v1  ;;  %v4815_v1 = vsel %vm414_vm7, %v3453_v58, %v3457_v47 }
  0xf7   :  { %v4806_v46 = vsel %vm457_vm8, %v3482_v56, %v3483_v39  ;;  %v4810_v61 = vsel %vm457_vm8, %v3483_v39, %v4707_v8  ;;  %842 = vrot.lane.b32.xlu2 %v4410_v0, %s4344_s21  ;;  %7513 = vst [vmem:[#allocation62_spill] sm:$0xff] %v4815_v1 }
  0xf8   :  { %7511 = vst [vmem:[#allocation60_spill] sm:$0xff] %v4806_v46  ;;  %v4818_v29 = vsel %vm457_vm8, %v3473_v55, %v3477_v18  ;;  %v4821_v60 = vsel %vm457_vm8, %v3478_v62, %v3482_v56  ;;  %v4824_v59 = vsel %vm457_vm8, %v3477_v18, %v3478_v62 }
  0xf9   :  { %7512 = vst [vmem:[#allocation61_spill] sm:$0xff] %v4810_v61  ;;  %v4836_v56 = vpop.permute.xlu2 %3530  ;;  %v3522_v61 = vunpack.i.l.bf16 %v4789_v2  ;;  %v3497_v2 = vunpack.i.l.bf16 %v4746_v52 }
  0xfa   :  { %7514 = vst [vmem:[#allocation63_spill] sm:$0xff] %v4818_v29  ;;  %3660 = vrot.lane.b32.xlu1 %v4419_v11, %s4344_s21 }
  0xfb   :  { %7515 = vst [vmem:[#allocation64_spill] sm:$0xff] %v4821_v60  ;;  %3655 = vrot.lane.b32.xlu0 %v4413_v3, %s4344_s21  ;;  %v4867_v19 = vsel %vm543_vm10, %v3522_v61, %v3523_v22  ;;  %v7253_v60 = vunpack.i.h.bf16 %v4767_v10 }
  0xfc   :  { %7516 = vst [vmem:[#allocation65_spill] sm:$0xff] %v4824_v59  ;;  %v3491_v47 = vpop.permute.xlu1 %3490 }
  0xfd   :  { %v3492_v55 = vunpack.i.l.bf16 %v3491_v47  ;;  %v4842_v18 = vpop.permute.xlu0 %3485  ;;  %7519 = vst [vmem:[#allocation68_spill] sm:$0xff] %v4867_v19 }
  0xfe   :  { %v7236_v39 = vunpack.i.h.bf16 %v4842_v18  ;;  %v7550_v27 = vunpack.i.h.bf16 %v4842_v18 }
  0xff   :  { %3675 = vrot.lane.b32.xlu2 %v4413_v3, %s4345_s22 }
 0x100   :  { %v4849_v58 = vsel %vm500_vm9, %v7236_v39, %v3492_v55  ;;  %v3498_v39 = vunpack.i.h.bf16 %v4746_v52 }
 0x101   :  { %7517 = vst [vmem:[#allocation66_spill] sm:$0xff] %v4849_v58  ;;  %v4852_v62 = vpop.permute.xlu2 %584 }
 0x102   :  { %3670 = vrot.lane.b32.xlu1 %v4421_v12, %s4345_s22  ;;  %v4878_v34 = vsel %vm500_vm9, %v3497_v2, %v3498_v39 }
 0x103   :  { %3665 = vrot.lane.b32.xlu0 %v4415_v6, %s4345_s22  ;;  %7521 = vst [vmem:[#allocation70_spill] sm:$0xff] %v4878_v34 }
 0x104   :  { %v499_v8 = vpop.permute.xlu1 %498 }
 0x105   :  { %v3501_v4 = vpop.permute.xlu0 %3500 }
 0x106   :  { %v3503_v5 = vunpack.i.h.bf16 %v3501_v4  ;;  %v3502_v46 = vunpack.i.l.bf16 %v3501_v4  ;;  %v3493_v4 = vunpack.i.h.bf16 %v3491_v47 }
 0x107   :  { %3685 = vrot.lane.b32.xlu2 %v4415_v6, %s4346_s23 }
 0x108   :  { %v4864_v59 = vsel %vm500_vm9, %v3502_v46, %v3503_v5  ;;  %v4875_v7 = vsel %vm500_vm9, %v3498_v39, %v3502_v46  ;;  %v4881_v52 = vsel %vm500_vm9, %v3492_v55, %v3493_v4  ;;  %v4884_v47 = vsel %vm500_vm9, %v3493_v4, %v3497_v2 }
 0x109   :  { %v4861_v44 = vpop.permute.xlu2 %3555  ;;  %7518 = vst [vmem:[#allocation67_spill] sm:$0xff] %v4864_v59  ;;  %v4926_v2 = vsel %vm500_vm9, %v3503_v5, %v499_v8 }
 0x10a   :  { %885 = vrot.lane.b32.xlu1 %v4410_v0, %s4345_s22  ;;  %7520 = vst [vmem:[#allocation69_spill] sm:$0xff] %v4875_v7  ;;  %v3558_v8 = vunpack.i.h.bf16 %v4861_v44 }
 0x10b   :  { %3680 = vrot.lane.b32.xlu0 %v4419_v11, %s4345_s22  ;;  %7522 = vst [vmem:[#allocation71_spill] sm:$0xff] %v4881_v52  ;;  %v3447_v52 = vunpack.i.l.bf16 %v4638_v33 }
 0x10c   :  { %v3516_v1 = vpop.permute.xlu1 %3515  ;;  %7523 = vst [vmem:[#allocation72_spill] sm:$0xff] %v4884_v47 }
 0x10d   :  { %v3518_v29 = vunpack.i.h.bf16 %v3516_v1  ;;  %v3517_v51 = vunpack.i.l.bf16 %v3516_v1  ;;  %v3511_v45 = vpop.permute.xlu0 %3510  ;;  %7529 = vst [vmem:[#allocation78_spill] sm:$0xff] %v4926_v2 }
 0x10e   :  { %v3513_v50 = vunpack.i.h.bf16 %v3511_v45  ;;  %v3512_v54 = vunpack.i.l.bf16 %v3511_v45 }
 0x10f   :  { %v4887_v63 = vsel %vm543_vm10, %v3518_v29, %v3522_v61  ;;  %v4890_v1 = vsel %vm543_vm10, %v3517_v51, %v3518_v29  ;;  %3700 = vrot.lane.b32.xlu2 %v4419_v11, %s4346_s23 }
 0x110   :  { %7524 = vst [vmem:[#allocation73_spill] sm:$0xff] %v4887_v63  ;;  %v4897_v45 = vsel %vm543_vm10, %v7253_v60, %v3512_v54  ;;  %v4900_v46 = vsel %vm543_vm10, %v3512_v54, %v3513_v50  ;;  %v4903_v39 = vsel %vm543_vm10, %v3513_v50, %v3517_v51  ;;  %v3532_v51 = vunpack.i.l.bf16 %v4836_v56 }
 0x111   :  { %7525 = vst [vmem:[#allocation74_spill] sm:$0xff] %v4890_v1  ;;  %v4915_v54 = vpop.permute.xlu2 %3565 }
 0x112   :  { %7526 = vst [vmem:[#allocation75_spill] sm:$0xff] %v4897_v45  ;;  %3695 = vrot.lane.b32.xlu1 %v4413_v3, %s4346_s23 }
 0x113   :  { %7527 = vst [vmem:[#allocation76_spill] sm:$0xff] %v4900_v46  ;;  %3690 = vrot.lane.b32.xlu0 %v4421_v12, %s4346_s23 }
 0x114   :  { %7528 = vst [vmem:[#allocation77_spill] sm:$0xff] %v4903_v39  ;;  %v4922_v4 = vpop.permute.xlu1 %3525 }
 0x115   :  { %v7256_v61 = vunpack.i.h.bf16 %v4922_v4  ;;  %v542_v55 = vpop.permute.xlu0 %541  ;;  %v3527_v46 = vunpack.i.l.bf16 %v4922_v4 }
 0x116   :  { %v4929_v29 = vsel %vm543_vm10, %v3523_v22, %v542_v55  ;;  %v3557_v55 = vunpack.i.l.bf16 %v4861_v44 }
 0x117   :  { %7530 = vst [vmem:[#allocation79_spill] sm:$0xff] %v4929_v29  ;;  %v4936_v60 = vsel %vm586_vm11, %v7256_v61, %v3532_v51  ;;  %3710 = vrot.lane.b32.xlu2 %v4421_v12, %s4347_s24  ;;  %v3533_v61 = vunpack.i.h.bf16 %v4836_v56 }
 0x118   :  { %7531 = vst [vmem:[#allocation80_spill] sm:$0xff] %v4936_v60  ;;  %v4955_v34 = vsel %vm629_vm12, %v3557_v55, %v3558_v8 }
 0x119   :  { %v4940_v59 = vpop.permute.xlu2 %3580  ;;  %7533 = vst [vmem:[#allocation82_spill] sm:$0xff] %v4955_v34  ;;  %v4963_v7 = vsel %vm586_vm11, %v3532_v51, %v3533_v61 }
 0x11a   :  { %3705 = vrot.lane.b32.xlu1 %v4415_v6, %s4347_s24  ;;  %7534 = vst [vmem:[#allocation83_spill] sm:$0xff] %v4963_v7 }
 0x11b   :  { %928 = vrot.lane.b32.xlu0 %v4410_v0, %s4346_s23 }
 0x11c   :  { %v3541_v22 = vpop.permute.xlu1 %3540 }
 0x11d   :  { %v3536_v5 = vpop.permute.xlu0 %3535 }
 0x11e   :  { %v3538_v50 = vunpack.i.h.bf16 %v3536_v5  ;;  %v3537_v2 = vunpack.i.l.bf16 %v3536_v5 }
 0x11f   :  { %971 = vrot.lane.b32.xlu2 %v4410_v0, %s4347_s24 }
 0x120   :  { %v4952_v19 = vsel %vm586_vm11, %v3537_v2, %v3538_v50  ;;  %v4967_v47 = vsel %vm586_vm11, %v3533_v61, %v3537_v2 }
 0x121   :  { %v4949_v29 = vpop.permute.xlu2 %3590  ;;  %7532 = vst [vmem:[#allocation81_spill] sm:$0xff] %v4952_v19 }
 0x122   :  { %3720 = vrot.lane.b32.xlu1 %v4419_v11, %s4347_s24  ;;  %7535 = vst [vmem:[#allocation84_spill] sm:$0xff] %v4967_v47 }
 0x123   :  { %3715 = vrot.lane.b32.xlu0 %v4413_v3, %s4347_s24 }
 0x124   :  { %v3551_v5 = vpop.permute.xlu1 %3550 }
 0x125   :  { %v3553_v0 = vunpack.i.h.bf16 %v3551_v5  ;;  %v3552_v1 = vunpack.i.l.bf16 %v3551_v5  ;;  %v4960_v56 = vpop.permute.xlu0 %3545 }
 0x126   :  { %v7266_v63 = vunpack.i.h.bf16 %v4960_v56 }
 0x127   :  { %v4970_v39 = vsel %vm629_vm12, %v3552_v1, %v3553_v0  ;;  %v4973_v36 = vsel %vm629_vm12, %v3553_v0, %v3557_v55  ;;  %3735 = vrot.lane.b32.xlu2 %v4413_v3, %s4348_s25  ;;  %v3543_v0 = vunpack.i.h.bf16 %v3541_v22  ;;  %v3542_v3 = vunpack.i.l.bf16 %v3541_v22 }
 0x128   :  { %7536 = vst [vmem:[#allocation85_spill] sm:$0xff] %v4970_v39  ;;  %v4979_v5 = vsel %vm629_vm12, %v7266_v63, %v3552_v1 }
 0x129   :  { %7537 = vst [vmem:[#allocation86_spill] sm:$0xff] %v4973_v36  ;;  %v4988_v55 = vpop.permute.xlu2 %713  ;;  %v4992_v51 = vsel %vm586_vm11, %v3542_v3, %v3543_v0  ;;  %v4996_v61 = vsel %vm586_vm11, %v3543_v0, %v4852_v62  ;;  %v7276_v0 = vunpack.i.h.bf16 %v4949_v29  ;;  %v3487_v36 = vunpack.i.l.bf16 %v4842_v18 }
 0x12a   :  { %7538 = vst [vmem:[#allocation87_spill] sm:$0xff] %v4979_v5  ;;  %3730 = vrot.lane.b32.xlu1 %v4421_v12, %s4348_s25  ;;  %v5001_v12 = vsel %vm586_vm11, %v3538_v50, %v3542_v3  ;;  %v5018_v50 = vld [vmem:[#allocation8] sm:$0xff]  ;;  %v4198_v3 = vld [vmem:[#allocation6 + $0x38] sm:$0xff] }
 0x12b   :  { %3725 = vrot.lane.b32.xlu0 %v4415_v6, %s4348_s25  ;;  %7539 = vst [vmem:[#allocation88_spill] sm:$0xff] %v4992_v51 }
 0x12c   :  { %v628_v44 = vpop.permute.xlu1 %627  ;;  %7540 = vst [vmem:[#allocation89_spill] sm:$0xff] %v4996_v61 }
 0x12d   :  { %v3561_v1 = vpop.permute.xlu0 %3560  ;;  %7541 = vst [vmem:[#allocation90_spill] sm:$0xff] %v5001_v12  ;;  %v4202_v12 = vld [vmem:[#allocation6 + $0x18] sm:$0xff] }
 0x12e   :  { %v3563_v63 = vunpack.i.h.bf16 %v3561_v1  ;;  %v3562_v19 = vunpack.i.l.bf16 %v3561_v1 }
 0x12f   :  { %3745 = vrot.lane.b32.xlu2 %v4415_v6, %s4349_s27  ;;  %v3592_v6 = vunpack.i.l.bf16 %v4949_v29 }
 0x130   :  { %v5004_v22 = vsel %vm629_vm12, %v3558_v8, %v3562_v19  ;;  %v5007_v2 = vsel %vm629_vm12, %v3562_v19, %v3563_v63  ;;  %v5010_v1 = vsel %vm629_vm12, %v3563_v63, %v628_v44  ;;  %v3568_v19 = vunpack.i.h.bf16 %v4915_v54  ;;  %v4197_v44 = vld [vmem:[#allocation6 + $0x30] sm:$0xff] }
 0x131   :  { %7542 = vst [vmem:[#allocation91_spill] sm:$0xff] %v5004_v22  ;;  %v5021_v8 = vpop.permute.xlu2 %3615  ;;  %v5027_v62 = vpack.i.bf16 %v4198_v3, %v4197_v44  ;;  %v5040_v44 = vsel %vm715_vm13, %v3592_v6, %v7276_v0  ;;  %v5042_v3 = vld [vmem:[#allocation6 + $0x10] sm:$0xff] }
 0x132   :  { %7543 = vst [vmem:[#allocation92_spill] sm:$0xff] %v5007_v2  ;;  %1014 = vrot.lane.b32.xlu1 %v5018_v50, %s4348_s25  ;;  %v4200_v2 = vld [vmem:[#allocation6 + $0x28] sm:$0xff]  ;;  %v5045_v22 = vpack.i.bf16 %v4202_v12, %v5042_v3  ;;  %v5076_v12 = vpack.i.bf16 %v5072_v14, %v5070_v53 }
 0x133   :  { %7544 = vst [vmem:[#allocation93_spill] sm:$0xff] %v5010_v1  ;;  %3740 = vrot.lane.b32.xlu0 %v4419_v11, %s4348_s25  ;;  %v4199_v11 = vld [vmem:[#allocation6 + $0x20] sm:$0xff] }
 0x134   :  { %v5025_v63 = vpop.permute.xlu1 %3575  ;;  %v5035_v34 = vpack.i.bf16 %v4200_v2, %v4199_v11  ;;  %7545 = vst [vmem:[#allocation94_spill] sm:$0xff] %v5040_v44  ;;  %v3567_v11 = vunpack.i.l.bf16 %v4915_v54 }
 0x135   :  { %v5031_v61 = vpop.permute.xlu0 %3570  ;;  %v3578_v26 = vunpack.i.h.bf16 %v5025_v63 }
 0x136   :  { %v7277_v1 = vunpack.i.h.bf16 %v5031_v61  ;;  %v3572_v51 = vunpack.i.l.bf16 %v5031_v61  ;;  %v673_v15 = vsel %vm672_vm14, %v3567_v11, %v3568_v19  ;;  %v3583_v11 = vunpack.i.h.bf16 %v4940_v59 }
 0x137   :  { %3760 = vrot.lane.b32.xlu2 %v5027_v62, %s4349_s27 }
 0x138   :  { %v5050_v47 = vsel %vm672_vm14, %v3572_v51, %v7277_v1  ;;  %v5055_v2 = vsel %vm672_vm14, %v3568_v19, %v3572_v51  ;;  %v3507_v1 = vunpack.i.l.bf16 %v4767_v10  ;;  %v3547_v51 = vunpack.i.l.bf16 %v4960_v56 }
 0x139   :  { %7546 = vst [vmem:[#allocation95_spill] sm:$0xff] %v5050_v47  ;;  %v5060_v0 = vpop.permute.xlu2 %3625  ;;  %v7549_v47 = vunpack.i.h.bf16 %v4960_v56  ;;  %v3427_v56 = vunpack.i.l.bf16 %v4683_v30 }
 0x13a   :  { %7547 = vst [vmem:[#allocation96_spill] sm:$0xff] %v5055_v2  ;;  %3755 = vrot.lane.b32.xlu1 %v5035_v34, %s4349_s27 }
 0x13b   :  { %3750 = vrot.lane.b32.xlu0 %v5045_v22, %s4349_s27  ;;  %v630_v44 = vsel %vm629_vm12, %v3547_v51, %v7549_v47  ;;  %v3582_v47 = vunpack.i.l.bf16 %v4940_v59  ;;  %vm1188_vm12 = vcmask 465920  }
 0x13c   :  { %v3586_v37 = vpop.permute.xlu1 %3585 }
 0x13d   :  { %v3588_v23 = vunpack.i.h.bf16 %v3586_v37  ;;  %v3587_v54 = vunpack.i.l.bf16 %v3586_v37  ;;  %v671_v25 = vpop.permute.xlu0 %670  ;;  %v5116_v59 = vsel %vm672_vm14, %v3582_v47, %v3583_v11 }
 0x13e   :  { %7554 = vst [vmem:[#allocation98_spill] sm:$0xff] %v5116_v59 }
 0x13f   :  { %v716_v7 = vsel %vm715_vm13, %v3587_v54, %v3588_v23  ;;  %v5082_v39 = vsel %vm715_vm13, %v3588_v23, %v3592_v6  ;;  %3770 = vrot.lane.b32.xlu2 %v5045_v22, %s4350_s2  ;;  %v501_v54 = vsel %vm500_vm9, %v3487_v36, %v7550_v27  ;;  %v7551_v23 = vunpack.i.h.bf16 %v4767_v10 }
 0x140   :  { %7548 = vst [vmem:[#allocation97_spill] sm:$0xff] %v5082_v39  ;;  %v2519_v37 = vpack.c.bf16 %v716_v7, %v673_v15  ;;  %v3577_v15 = vunpack.i.l.bf16 %v5025_v63  ;;  %v7552_v27 = vunpack.i.h.bf16 %v4922_v4  ;;  %v7553_v10 = vunpack.i.h.bf16 %v4638_v33 }
 0x141   :  { %v544_v6 = vsel %vm543_vm10, %v3507_v1, %v7551_v23  ;;  %v5102_v7 = vpop.permute.xlu2 %3640  ;;  %v3467_v1 = vunpack.i.l.bf16 %v4773_v41  ;;  %vm1059_vm9 = vcmask 490496   ;;  %vm1102_vm10 = vcmask 482304  }
 0x142   :  { %3765 = vrot.lane.b32.xlu1 %v5076_v12, %s4350_s2  ;;  %2723 = vmatpush.bf16.msra.mxu0 %v2519_v37  ;;  %v587_v36 = vsel %vm586_vm11, %v3527_v46, %v7552_v27  ;;  %v415_v18 = vsel %vm414_vm7, %v3447_v52, %v7553_v10  ;;  %v2503_v37 = vpack.c.bf16 %v544_v6, %v501_v54  ;;  %v7560_v6 = vunpack.i.h.bf16 %v5031_v61 }
 0x143   :  { %1057 = vrot.lane.b32.xlu0 %v5018_v50, %s4349_s27  ;;  %v2511_v51 = vpack.c.bf16 %v630_v44, %v587_v36  ;;  %v5119_v4 = vsel %vm672_vm14, %v3577_v15, %v3578_v26  ;;  %v5122_v52 = vsel %vm672_vm14, %v3578_v26, %v3582_v47  ;;  %v5125_v27 = vsel %vm672_vm14, %v3583_v11, %v671_v25  ;;  %s3193_s27 = sshll.u32 %s7197_s4, 4  ;;  %s3194_s27 = int_to_ptr.hbm [resolvable:$true] %s3193_s27 }
 0x144   :  { %v3601_v63 = vpop.permute.xlu1 %3600  ;;  %7555 = vst [vmem:[#allocation99_spill] sm:$0xff] %v5119_v4  ;;  %v5137_v36 = vsel %vm672_vm14, %v7560_v6, %v3577_v15  ;;  %v7563_v26 = vunpack.i.h.bf16 %v4949_v29  ;;  %v3312_v10 = vunpack.i.l.bf16 %v4458_v16  ;;  %v3332_v29 = vunpack.i.l.bf16 %v4521_v40 }
 0x145   :  { %v3603_v23 = vunpack.i.h.bf16 %v3601_v63  ;;  %v3602_v19 = vunpack.i.l.bf16 %v3601_v63  ;;  %v3596_v35 = vpop.permute.xlu0 %3595  ;;  %7556 = vst [vmem:[#allocation100_spill] sm:$0xff] %v5122_v52  ;;  %v3377_v63 = vunpack.i.l.bf16 %v4515_v38  ;;  %v3643_v15 = vunpack.i.h.bf16 %v5102_v7 }
 0x146   :  { %v3598_v46 = vunpack.i.h.bf16 %v3596_v35  ;;  %v3597_v33 = vunpack.i.l.bf16 %v3596_v35  ;;  %2724 = vmatpush.bf16.msra.mxu0 %v2511_v51  ;;  %7557 = vst [vmem:[#allocation101_spill] sm:$0xff] %v5125_v27  ;;  %vm973_vm7 = vcmask 506880   ;;  %vm1145_vm11 = vcmask 474112  }
 0x147   :  { %v5128_v44 = vsel %vm715_vm13, %v3602_v19, %v3603_v23  ;;  %v5132_v54 = vsel %vm715_vm13, %v3603_v23, %v4988_v55  ;;  %7561 = vst [vmem:[#allocation104_spill] sm:$0xff] %v5137_v36  ;;  %1100 = vrot.lane.b32.xlu2 %v5018_v50, %s4350_s2  ;;  %v7566_v55 = vunpack.i.h.bf16 %v4773_v41  ;;  %v7568_v41 = vunpack.i.h.bf16 %v4645_v21 }
 0x148   :  { %7558 = vst [vmem:[#allocation102_spill] sm:$0xff] %v5128_v44  ;;  %v5140_v35 = vsel %vm715_vm13, %v3598_v46, %v3602_v19  ;;  %v5145_v25 = vsel %vm715_vm13, %v7563_v26, %v3597_v33  ;;  %v5148_v11 = vsel %vm715_vm13, %v3597_v33, %v3598_v46  ;;  %v3352_v46 = vunpack.i.l.bf16 %v4589_v17 }
 0x149   :  { %7559 = vst [vmem:[#allocation103_spill] sm:$0xff] %v5132_v54  ;;  %v458_v61 = vsel %vm457_vm8, %v3467_v1, %v7566_v55  ;;  %v5163_v47 = vpop.permute.xlu2 %3650  ;;  %v3402_v1 = vunpack.i.l.bf16 %v4645_v21  ;;  %v7567_v26 = vunpack.i.h.bf16 %v4683_v30  ;;  %v7571_v21 = vunpack.i.h.bf16 %v4515_v38 }
 0x14a   :  { %7562 = vst [vmem:[#allocation105_spill] sm:$0xff] %v5140_v35  ;;  %3780 = vrot.lane.b32.xlu1 %v5027_v62, %s4350_s2  ;;  %2725 = vmatpush.bf16.msra.mxu0 %v2503_v37  ;;  %v2495_v23 = vpack.c.bf16 %v458_v61, %v415_v18  ;;  %v7573_v38 = vunpack.i.h.bf16 %v4521_v40  ;;  %vm1016_vm8 = vcmask 498688   ;;  %vm1231_vm13 = vcmask 457728  }
 0x14b   :  { %7564 = vst [vmem:[#allocation106_spill] sm:$0xff] %v5145_v25  ;;  %3775 = vrot.lane.b32.xlu0 %v5035_v34, %s4350_s2  ;;  %v372_v55 = vsel %vm7440_vm6, %v3427_v56, %v7567_v26  ;;  %v329_v18 = vsel %vm7459_vm5, %v3402_v1, %v7568_v41  ;;  %v7570_v56 = vunpack.i.h.bf16 %v4589_v17  ;;  %v286_v41 = vsel %vm285_vm4, %v3377_v63, %v7571_v21  ;;  %s4373_s2 = smov 1024  }
 0x14c   :  { %7565 = vst [vmem:[#allocation107_spill] sm:$0xff] %v5148_v11  ;;  %v5173_v51 = vpop.permute.xlu1 %3610  ;;  %v2487_v30 = vpack.c.bf16 %v372_v55, %v329_v18  ;;  %v7572_v26 = vunpack.i.h.bf16 %v4458_v16  ;;  %v3618_v17 = vunpack.i.h.bf16 %v5021_v8  ;;  %v200_v63 = vsel %vm199_vm2, %v3332_v29, %v7573_v38 }
 0x14d   :  { %v3613_v37 = vunpack.i.h.bf16 %v5173_v51  ;;  %v7295_v33 = vunpack.i.l.bf16 %v5173_v51  ;;  %v5178_v6 = vpop.permute.xlu0 %3605  ;;  %v7296_v21 = vunpack.i.h.bf16 %v5163_v47  ;;  %v3652_v16 = vunpack.i.l.bf16 %v5163_v47 }
 0x14e   :  { %2726 = vmatpush.bf16.msra.mxu0 %v2495_v23  ;;  %v243_v23 = vsel %vm242_vm3, %v3352_v46, %v7570_v56  ;;  %v157_v55 = vsel %vm156_vm1, %v3312_v10, %v7572_v26  ;;  %v3292_v56 = vunpack.i.l.bf16 %v4473_v20  ;;  %v3642_v26 = vunpack.i.l.bf16 %v5102_v7 }
 0x14f   :  { %v5190_v61 = vsel %vm758_vm15, %v7295_v33, %v3613_v37  ;;  %3795 = vrot.lane.b32.xlu2 %v5035_v34, %s4351_s28  ;;  %v2479_v18 = vpack.c.bf16 %v286_v41, %v243_v23  ;;  %v2471_v10 = vpack.c.bf16 %v200_v63, %v157_v55  ;;  %vm844_vm1 = vcmask 654336  }
 0x150   :  { %7569 = vst [vmem:[#allocation108_spill] sm:$0xff] %v5190_v61  ;;  %v7575_v29 = vunpack.i.h.bf16 %v4473_v20  ;;  %vm801_vm2 = vcmask 662528   ;;  %v5230_v41 = vsel %vm844_vm1, %v3652_v16, %v7296_v21  ;;  %v3617_v20 = vunpack.i.l.bf16 %v5021_v8 }
 0x151   :  { %v5203_v1 = vpop.permute.xlu2 %842  ;;  %7576 = vst [vmem:[#allocation110_spill] sm:$0xff] %v5230_v41  ;;  %vm887_vm3 = vcmask 646144   ;;  %vm930_vm4 = vcmask 637952   ;;  %vm1274_vm14 = vcmask 326656   ;;  %vm2042_vm6 = vcmask 965632  }
 0x152   :  { %3790 = vrot.lane.b32.xlu1 %v5045_v22, %s4351_s28  ;;  %2727 = vmatpush.bf16.msra.mxu0 %v2487_v30  ;;  %v114_v23 = vsel %vm113_vm0, %v3292_v56, %v7575_v29 }
 0x153   :  { %3785 = vrot.lane.b32.xlu0 %v5076_v12, %s4351_s28  ;;  %v2463_v56 = vpack.c.bf16 %v114_v23, %v5070_v53 }
 0x154   :  { %v757_v46 = vpop.permute.xlu1 %756 }
 0x155   :  { %v3621_v30 = vpop.permute.xlu0 %3620 }
 0x156   :  { %v3622_v19 = vunpack.i.l.bf16 %v3621_v30  ;;  %2728 = vmatpush.bf16.msra.mxu0 %v2479_v18  ;;  %v3623_v33 = vunpack.i.h.bf16 %v3621_v30  ;;  %v5240_v18 = vsel %vm801_vm2, %v3642_v26, %v3643_v15 }
 0x157   :  { %3805 = vrot.lane.b32.xlu2 %v5076_v12, %s4352_s29  ;;  %7578 = vst [vmem:[#allocation112_spill] sm:$0xff] %v5240_v18 }
 0x158   :  { %v5222_v40 = vsel %vm758_vm15, %v3618_v17, %v3622_v19  ;;  %v5237_v55 = vsel %vm758_vm15, %v3622_v19, %v3623_v33  ;;  %v5251_v19 = vsel %vm758_vm15, %v3617_v20, %v3618_v17  ;;  %v5269_v17 = vsel %vm758_vm15, %v3613_v37, %v3617_v20 }
 0x159   :  { %7574 = vst [vmem:[#allocation109_spill] sm:$0xff] %v5222_v40  ;;  %v5234_v7 = vpop.permute.xlu2 %3675 }
 0x15a   :  { %1143 = vrot.lane.b32.xlu1 %v5018_v50, %s4351_s28  ;;  %2729 = vmatpush.bf16.msra.mxu0 %v2471_v10  ;;  %7577 = vst [vmem:[#allocation111_spill] sm:$0xff] %v5237_v55  ;;  %v7589_v55 = vunpack.i.h.bf16 %v5163_v47 }
 0x15b   :  { %3800 = vrot.lane.b32.xlu0 %v5027_v62, %s4351_s28  ;;  %7579 = vst [vmem:[#allocation113_spill] sm:$0xff] %v5251_v19  ;;  %s4374_s28 = smov 64  }
 0x15c   :  { %v3636_v63 = vpop.permute.xlu1 %3635  ;;  %7583 = vst [vmem:[#allocation117_spill] sm:$0xff] %v5269_v17 }
 0x15d   :  { %v3638_v30 = vunpack.i.h.bf16 %v3636_v63  ;;  %v3637_v29 = vunpack.i.l.bf16 %v3636_v63  ;;  %v5248_v10 = vpop.permute.xlu0 %3630  ;;  %v5289_v63 = vsel %vm758_vm15, %v3623_v33, %v757_v46 }
 0x15e   :  { %v3633_v21 = vunpack.i.h.bf16 %v5248_v10  ;;  %v7298_v8 = vunpack.i.l.bf16 %v5248_v10  ;;  %2730 = vmatpush.bf16.msra.mxu0 %v2463_v56  ;;  %7585 = vst [vmem:[#allocation119_spill] sm:$0xff] %v5289_v63  ;;  %v3678_v56 = vunpack.i.h.bf16 %v5234_v7 }
 0x15f   :  { %v5256_v27 = vsel %vm801_vm2, %v3637_v29, %v3638_v30  ;;  %v5259_v38 = vsel %vm801_vm2, %v3638_v30, %v3642_v26  ;;  %3820 = vrot.lane.b32.xlu2 %v5027_v62, %s4352_s29 }
 0x160   :  { %7580 = vst [vmem:[#allocation114_spill] sm:$0xff] %v5256_v27  ;;  %v5266_v53 = vsel %vm801_vm2, %v7298_v8, %v3633_v21  ;;  %v5272_v23 = vsel %vm801_vm2, %v3633_v21, %v3637_v29 }
 0x161   :  { %7581 = vst [vmem:[#allocation115_spill] sm:$0xff] %v5259_v38  ;;  %v5282_v30 = vpop.permute.xlu2 %3685 }
 0x162   :  { %7582 = vst [vmem:[#allocation116_spill] sm:$0xff] %v5266_v53  ;;  %3815 = vrot.lane.b32.xlu1 %v5035_v34, %s4352_s29 }
 0x163   :  { %7584 = vst [vmem:[#allocation118_spill] sm:$0xff] %v5272_v23  ;;  %3810 = vrot.lane.b32.xlu0 %v5045_v22, %s4352_s29 }
 0x164   :  { %v3646_v21 = vpop.permute.xlu1 %3645 }
 0x165   :  { %v3648_v20 = vunpack.i.h.bf16 %v3646_v21  ;;  %v800_v29 = vpop.permute.xlu0 %799  ;;  %v3647_v47 = vunpack.i.l.bf16 %v3646_v21 }
 0x166   :  { %v5292_v26 = vsel %vm801_vm2, %v3643_v15, %v800_v29 }
 0x167   :  { %7586 = vst [vmem:[#allocation120_spill] sm:$0xff] %v5292_v26  ;;  %v5297_v8 = vsel %vm844_vm1, %v3648_v20, %v3652_v16  ;;  %3830 = vrot.lane.b32.xlu2 %v5045_v22, %s4353_s30  ;;  %v3677_v16 = vunpack.i.l.bf16 %v5234_v7  ;;  %v5337_v4 = vsel %vm844_vm1, %v3647_v47, %v3648_v20 }
 0x169   :  { %v5301_v37 = vpop.permute.xlu2 %3700  ;;  %v5327_v18 = vsel %vm887_vm3, %v3677_v16, %v3678_v56 }
 0x16a   :  { %3825 = vrot.lane.b32.xlu1 %v5076_v12, %s4353_s30  ;;  %7593 = vst [vmem:[#allocation126_spill] sm:$0xff] %v5327_v18  ;;  %v3702_v21 = vunpack.i.l.bf16 %v5301_v37  ;;  %v7605_v36 = vunpack.i.h.bf16 %v5301_v37 }
 0x16b   :  { %1186 = vrot.lane.b32.xlu0 %v5018_v50, %s4352_s29 }
 0x16c   :  { %v3661_v33 = vpop.permute.xlu1 %3660 }
 0x16d   :  { %v3663_v46 = vunpack.i.h.bf16 %v3661_v33  ;;  %v3662_v15 = vunpack.i.l.bf16 %v3661_v33  ;;  %v3656_v29 = vpop.permute.xlu0 %3655 }
 0x16e   :  { %v3658_v40 = vunpack.i.h.bf16 %v3656_v29  ;;  %v3657_v38 = vunpack.i.l.bf16 %v3656_v29 }
 0x16f   :  { %v5308_v63 = vsel %vm844_vm1, %v3662_v15, %v3663_v46  ;;  %v5312_v26 = vsel %vm844_vm1, %v3663_v46, %v5203_v1  ;;  %1229 = vrot.lane.b32.xlu2 %v5018_v50, %s4353_s30 }
 0x170   :  { %7587 = vst [vmem:[#allocation121_spill] sm:$0xff] %v5308_v63  ;;  %v5318_v33 = vsel %vm844_vm1, %v7589_v55, %v3657_v38  ;;  %v5321_v29 = vsel %vm844_vm1, %v3658_v40, %v3662_v15  ;;  %v5324_v7 = vsel %vm844_vm1, %v3657_v38, %v3658_v40  ;;  %v7312_v40 = vunpack.i.h.bf16 %v5301_v37 }
 0x171   :  { %7588 = vst [vmem:[#allocation122_spill] sm:$0xff] %v5312_v26  ;;  %v5330_v1 = vpop.permute.xlu2 %3710  ;;  %vm1360_vm1 = vcmask 310272  }
 0x172   :  { %7590 = vst [vmem:[#allocation123_spill] sm:$0xff] %v5318_v33  ;;  %3840 = vrot.lane.b32.xlu1 %v5027_v62, %s4353_s30  ;;  %v5367_v47 = vsel %vm930_vm4, %v3702_v21, %v7312_v40  ;;  %v3713_v63 = vunpack.i.h.bf16 %v5330_v1  ;;  %v3712_v19 = vunpack.i.l.bf16 %v5330_v1 }
 0x173   :  { %7591 = vst [vmem:[#allocation124_spill] sm:$0xff] %v5321_v29  ;;  %3835 = vrot.lane.b32.xlu0 %v5035_v34, %s4353_s30 }
 0x174   :  { %7592 = vst [vmem:[#allocation125_spill] sm:$0xff] %v5324_v7  ;;  %v3671_v55 = vpop.permute.xlu1 %3670  ;;  %v5413_v29 = vsel %vm973_vm7, %v3712_v19, %v3713_v63 }
 0x175   :  { %v3673_v54 = vunpack.i.h.bf16 %v3671_v55  ;;  %v3672_v15 = vunpack.i.l.bf16 %v3671_v55  ;;  %v3666_v59 = vpop.permute.xlu0 %3665  ;;  %7596 = vst [vmem:[#allocation129_spill] sm:$0xff] %v5367_v47 }
 0x176   :  { %v3668_v38 = vunpack.i.h.bf16 %v3666_v59  ;;  %v3667_v44 = vunpack.i.l.bf16 %v3666_v59  ;;  %7604 = vst [vmem:[#allocation137_spill] sm:$0xff] %v5413_v29 }
 0x177   :  { %v5340_v11 = vsel %vm887_vm3, %v3672_v15, %v3673_v54  ;;  %v5343_v52 = vsel %vm887_vm3, %v3673_v54, %v3677_v16  ;;  %3855 = vrot.lane.b32.xlu2 %v5035_v34, %s4354_s5 }
 0x178   :  { %7594 = vst [vmem:[#allocation127_spill] sm:$0xff] %v5340_v11  ;;  %v5348_v55 = vsel %vm887_vm3, %v3667_v44, %v3668_v38  ;;  %v5351_v46 = vsel %vm887_vm3, %v3668_v38, %v3672_v15 }
 0x179   :  { %7595 = vst [vmem:[#allocation128_spill] sm:$0xff] %v5343_v52  ;;  %v5362_v44 = vpop.permute.xlu2 %971 }
 0x17a   :  { %3850 = vrot.lane.b32.xlu1 %v5045_v22, %s4354_s5 }
 0x17b   :  { %3845 = vrot.lane.b32.xlu0 %v5076_v12, %s4354_s5 }
 0x17c   :  { %v886_v15 = vpop.permute.xlu1 %885 }
 0x17d   :  { %v3681_v38 = vpop.permute.xlu0 %3680 }
 0x17e   :  { %v3683_v59 = vunpack.i.h.bf16 %v3681_v38  ;;  %v3682_v20 = vunpack.i.l.bf16 %v3681_v38 }
 0x17f   :  { %3865 = vrot.lane.b32.xlu2 %v5076_v12, %s4355_s0 }
 0x180   :  { %v5373_v16 = vsel %vm887_vm3, %v3682_v20, %v3683_v59  ;;  %v5376_v54 = vsel %vm887_vm3, %v3678_v56, %v3682_v20  ;;  %v5379_v35 = vsel %vm887_vm3, %v3683_v59, %v886_v15  ;;  %v3688_v56 = vunpack.i.h.bf16 %v5282_v30 }
 0x181   :  { %7597 = vst [vmem:[#allocation130_spill] sm:$0xff] %v5373_v16  ;;  %v5388_v27 = vpop.permute.xlu2 %3735  ;;  %vm1317_vm3 = vcmask 318464  }
 0x182   :  { %7598 = vst [vmem:[#allocation131_spill] sm:$0xff] %v5376_v54  ;;  %1272 = vrot.lane.b32.xlu1 %v5018_v50, %s4354_s5  ;;  %v3737_v7 = vunpack.i.l.bf16 %v5388_v27 }
 0x183   :  { %7599 = vst [vmem:[#allocation132_spill] sm:$0xff] %v5379_v35  ;;  %3860 = vrot.lane.b32.xlu0 %v5027_v62, %s4354_s5 }
 0x184   :  { %v3696_v20 = vpop.permute.xlu1 %3695 }
 0x185   :  { %v3698_v59 = vunpack.i.h.bf16 %v3696_v20  ;;  %v3697_v15 = vunpack.i.l.bf16 %v3696_v20  ;;  %v3691_v17 = vpop.permute.xlu0 %3690 }
 0x186   :  { %v3693_v23 = vunpack.i.h.bf16 %v3691_v17  ;;  %v3692_v40 = vunpack.i.l.bf16 %v3691_v17  ;;  %v3687_v17 = vunpack.i.l.bf16 %v5282_v30  ;;  %v7327_v30 = vunpack.i.h.bf16 %v5388_v27 }
 0x187   :  { %v5395_v38 = vsel %vm930_vm4, %v3697_v15, %v3698_v59  ;;  %v5398_v26 = vsel %vm930_vm4, %v3698_v59, %v3702_v21  ;;  %3880 = vrot.lane.b32.xlu2 %v5027_v62, %s4355_s0 }
 0x188   :  { %7600 = vst [vmem:[#allocation133_spill] sm:$0xff] %v5395_v38  ;;  %v5403_v35 = vsel %vm930_vm4, %v3688_v56, %v3692_v40  ;;  %v5406_v20 = vsel %vm930_vm4, %v3693_v23, %v3697_v15  ;;  %v5410_v1 = vsel %vm930_vm4, %v3692_v40, %v3693_v23  ;;  %v5425_v16 = vsel %vm930_vm4, %v3687_v17, %v3688_v56 }
 0x189   :  { %7601 = vst [vmem:[#allocation134_spill] sm:$0xff] %v5398_v26  ;;  %v5417_v21 = vpop.permute.xlu2 %3745 }
 0x18a   :  { %7602 = vst [vmem:[#allocation135_spill] sm:$0xff] %v5406_v20  ;;  %3875 = vrot.lane.b32.xlu1 %v5035_v34, %s4355_s0 }
 0x18b   :  { %7603 = vst [vmem:[#allocation136_spill] sm:$0xff] %v5410_v1  ;;  %3870 = vrot.lane.b32.xlu0 %v5045_v22, %s4355_s0 }
 0x18c   :  { %v3706_v15 = vpop.permute.xlu1 %3705 }
 0x18d   :  { %v3708_v54 = vunpack.i.h.bf16 %v3706_v15  ;;  %v3707_v23 = vunpack.i.l.bf16 %v3706_v15  ;;  %v929_v40 = vpop.permute.xlu0 %928 }
 0x18e   :  { %v5430_v25 = vsel %vm930_vm4, %v7605_v36, %v929_v40  ;;  %v5447_v36 = vsel %vm1016_vm8, %v3737_v7, %v7327_v30  ;;  %vm1403_vm4 = vcmask 302080  }
 0x18f   :  { %7606 = vst [vmem:[#allocation138_spill] sm:$0xff] %v5430_v25  ;;  %v5434_v59 = vsel %vm973_vm7, %v3707_v23, %v3708_v54  ;;  %v5437_v18 = vsel %vm973_vm7, %v3708_v54, %v3712_v19  ;;  %3890 = vrot.lane.b32.xlu2 %v5045_v22, %s4356_s3 }
 0x190   :  { %7607 = vst [vmem:[#allocation139_spill] sm:$0xff] %v5447_v36 }
 0x191   :  { %v5450_v17 = vpop.permute.xlu2 %3760 }
 0x192   :  { %3885 = vrot.lane.b32.xlu1 %v5076_v12, %s4356_s3 }
 0x193   :  { %1315 = vrot.lane.b32.xlu0 %v5018_v50, %s4355_s0 }
 0x194   :  { %v3721_v19 = vpop.permute.xlu1 %3720 }
 0x195   :  { %v3723_v54 = vunpack.i.h.bf16 %v3721_v19  ;;  %v3722_v15 = vunpack.i.l.bf16 %v3721_v19  ;;  %v3716_v23 = vpop.permute.xlu0 %3715 }
 0x196   :  { %v3718_v40 = vunpack.i.h.bf16 %v3716_v23  ;;  %v3717_v56 = vunpack.i.l.bf16 %v3716_v23  ;;  %v3747_v23 = vunpack.i.l.bf16 %v5417_v21 }
 0x197   :  { %v5455_v37 = vsel %vm973_vm7, %v3722_v15, %v3723_v54  ;;  %v5459_v30 = vsel %vm973_vm7, %v3723_v54, %v5362_v44  ;;  %1358 = vrot.lane.b32.xlu2 %v5018_v50, %s4356_s3 }
 0x198   :  { %7608 = vst [vmem:[#allocation140_spill] sm:$0xff] %v5455_v37  ;;  %v5463_v33 = vsel %vm973_vm7, %v3713_v63, %v3717_v56  ;;  %v5466_v52 = vsel %vm973_vm7, %v3717_v56, %v3718_v40  ;;  %v5475_v44 = vsel %vm973_vm7, %v3718_v40, %v3722_v15  ;;  %v3748_v37 = vunpack.i.h.bf16 %v5417_v21 }
 0x199   :  { %7609 = vst [vmem:[#allocation141_spill] sm:$0xff] %v5459_v30  ;;  %v5478_v54 = vpop.permute.xlu2 %3770  ;;  %vm1446_vm7 = vcmask 293888  }
 0x19a   :  { %7610 = vst [vmem:[#allocation142_spill] sm:$0xff] %v5463_v33  ;;  %3900 = vrot.lane.b32.xlu1 %v5027_v62, %s4356_s3 }
 0x19b   :  { %7611 = vst [vmem:[#allocation143_spill] sm:$0xff] %v5466_v52  ;;  %3895 = vrot.lane.b32.xlu0 %v5035_v34, %s4356_s3 }
 0x19c   :  { %7612 = vst [vmem:[#allocation144_spill] sm:$0xff] %v5475_v44  ;;  %v3731_v19 = vpop.permute.xlu1 %3730  ;;  %v7616_v44 = vunpack.i.h.bf16 %v5388_v27 }
 0x19d   :  { %v3733_v38 = vunpack.i.h.bf16 %v3731_v19  ;;  %v3732_v61 = vunpack.i.l.bf16 %v3731_v19  ;;  %v3726_v47 = vpop.permute.xlu0 %3725 }
 0x19e   :  { %v3728_v15 = vunpack.i.h.bf16 %v3726_v47  ;;  %v3727_v40 = vunpack.i.l.bf16 %v3726_v47  ;;  %v5501_v47 = vsel %vm1059_vm9, %v3747_v23, %v3748_v37  ;;  %v3772_v23 = vunpack.i.l.bf16 %v5478_v54 }
 0x19f   :  { %v5488_v52 = vsel %vm1016_vm8, %v3732_v61, %v3733_v38  ;;  %v5491_v63 = vsel %vm1016_vm8, %v3733_v38, %v3737_v7  ;;  %3915 = vrot.lane.b32.xlu2 %v5035_v34, %s4357_s6 }
 0x1a0   :  { %7613 = vst [vmem:[#allocation145_spill] sm:$0xff] %v5488_v52  ;;  %v5495_v56 = vsel %vm1016_vm8, %v3728_v15, %v3732_v61  ;;  %v5498_v19 = vsel %vm1016_vm8, %v3727_v40, %v3728_v15  ;;  %v3763_v15 = vunpack.i.h.bf16 %v5450_v17  ;;  %v3762_v40 = vunpack.i.l.bf16 %v5450_v17 }
 0x1a1   :  { %7614 = vst [vmem:[#allocation146_spill] sm:$0xff] %v5491_v63  ;;  %v5504_v21 = vpop.permute.xlu2 %1100 }
 0x1a2   :  { %3910 = vrot.lane.b32.xlu1 %v5045_v22, %s4357_s6 }
 0x1a3   :  { %3905 = vrot.lane.b32.xlu0 %v5076_v12, %s4357_s6 }
 0x1a4   :  { %v1015_v38 = vpop.permute.xlu1 %1014 }
 0x1a5   :  { %v3741_v61 = vpop.permute.xlu0 %3740 }
 0x1a6   :  { %v3743_v30 = vunpack.i.h.bf16 %v3741_v61  ;;  %v3742_v26 = vunpack.i.l.bf16 %v3741_v61  ;;  %v7618_v61 = vunpack.i.h.bf16 %v5478_v54 }
 0x1a7   :  { %3925 = vrot.lane.b32.xlu2 %v5076_v12, %s4358_s7 }
 0x1a8   :  { %v5516_v7 = vsel %vm1016_vm8, %v3743_v30, %v1015_v38  ;;  %v5521_v25 = vsel %vm1016_vm8, %v7616_v44, %v3742_v26  ;;  %v5526_v20 = vsel %vm1102_vm10, %v3772_v23, %v7618_v61  ;;  %v5532_v33 = vsel %vm1016_vm8, %v3742_v26, %v3743_v30 }
 0x1a9   :  { %7615 = vst [vmem:[#allocation147_spill] sm:$0xff] %v5516_v7  ;;  %v5529_v17 = vpop.permute.xlu2 %3795  ;;  %v5535_v38 = vsel %vm1059_vm9, %v3762_v40, %v3763_v15  ;;  %vm1489_vm8 = vcmask 285696  }
 0x1aa   :  { %7617 = vst [vmem:[#allocation148_spill] sm:$0xff] %v5521_v25  ;;  %1401 = vrot.lane.b32.xlu1 %v5018_v50, %s4357_s6 }
 0x1ab   :  { %7619 = vst [vmem:[#allocation149_spill] sm:$0xff] %v5526_v20  ;;  %3920 = vrot.lane.b32.xlu0 %v5027_v62, %s4357_s6 }
 0x1ac   :  { %7620 = vst [vmem:[#allocation150_spill] sm:$0xff] %v5532_v33  ;;  %v3756_v44 = vpop.permute.xlu1 %3755 }
 0x1ad   :  { %7621 = vst [vmem:[#allocation151_spill] sm:$0xff] %v5535_v38  ;;  %v3758_v53 = vunpack.i.h.bf16 %v3756_v44  ;;  %v3757_v41 = vunpack.i.l.bf16 %v3756_v44  ;;  %v3751_v61 = vpop.permute.xlu0 %3750 }
 0x1ae   :  { %v3753_v11 = vunpack.i.h.bf16 %v3751_v61  ;;  %v3752_v43 = vunpack.i.l.bf16 %v3751_v61 }
 0x1af   :  { %v5541_v1 = vsel %vm1059_vm9, %v3757_v41, %v3758_v53  ;;  %v5544_v26 = vsel %vm1059_vm9, %v3758_v53, %v3762_v40  ;;  %3940 = vrot.lane.b32.xlu2 %v5027_v62, %s4358_s7  ;;  %v3798_v53 = vunpack.i.h.bf16 %v5529_v17 }
 0x1b0   :  { %7622 = vst [vmem:[#allocation152_spill] sm:$0xff] %v5541_v1  ;;  %v5549_v30 = vsel %vm1059_vm9, %v3748_v37, %v3752_v43  ;;  %v5552_v27 = vsel %vm1059_vm9, %v3752_v43, %v3753_v11  ;;  %v5555_v44 = vsel %vm1059_vm9, %v3753_v11, %v3757_v41  ;;  %v7629_v1 = vunpack.i.h.bf16 %v5478_v54 }
 0x1b1   :  { %7623 = vst [vmem:[#allocation153_spill] sm:$0xff] %v5544_v26  ;;  %v5565_v37 = vpop.permute.xlu2 %3805 }
 0x1b2   :  { %7624 = vst [vmem:[#allocation154_spill] sm:$0xff] %v5552_v27  ;;  %3935 = vrot.lane.b32.xlu1 %v5035_v34, %s4358_s7 }
 0x1b3   :  { %7625 = vst [vmem:[#allocation155_spill] sm:$0xff] %v5555_v44  ;;  %3930 = vrot.lane.b32.xlu0 %v5045_v22, %s4358_s7 }
 0x1b4   :  { %v3766_v41 = vpop.permute.xlu1 %3765 }
 0x1b5   :  { %v3768_v40 = vunpack.i.h.bf16 %v3766_v41  ;;  %v1058_v33 = vpop.permute.xlu0 %1057  ;;  %v3767_v54 = vunpack.i.l.bf16 %v3766_v41 }
 0x1b6   :  { %v5574_v61 = vsel %vm1059_vm9, %v3763_v15, %v1058_v33  ;;  %vm1956_vm9 = vcmask 982016  }
 0x1b7   :  { %7626 = vst [vmem:[#allocation156_spill] sm:$0xff] %v5574_v61  ;;  %v5579_v38 = vsel %vm1102_vm10, %v3768_v40, %v3772_v23  ;;  %3950 = vrot.lane.b32.xlu2 %v5045_v22, %s4359_s8  ;;  %v3797_v23 = vunpack.i.l.bf16 %v5529_v17  ;;  %v5619_v52 = vsel %vm1102_vm10, %v3767_v54, %v3768_v40 }
 0x1b9   :  { %v5583_v11 = vpop.permute.xlu2 %3820  ;;  %v5609_v63 = vsel %vm1145_vm11, %v3797_v23, %v3798_v53 }
 0x1ba   :  { %3945 = vrot.lane.b32.xlu1 %v5076_v12, %s4359_s8  ;;  %7633 = vst [vmem:[#allocation162_spill] sm:$0xff] %v5609_v63  ;;  %v3822_v41 = vunpack.i.l.bf16 %v5583_v11  ;;  %v7645_v63 = vunpack.i.h.bf16 %v5583_v11 }
 0x1bb   :  { %1444 = vrot.lane.b32.xlu0 %v5018_v50, %s4358_s7 }
 0x1bc   :  { %v3781_v43 = vpop.permute.xlu1 %3780 }
 0x1bd   :  { %v3783_v25 = vunpack.i.h.bf16 %v3781_v43  ;;  %v3782_v33 = vunpack.i.l.bf16 %v3781_v43  ;;  %v3776_v15 = vpop.permute.xlu0 %3775 }
 0x1be   :  { %v3778_v26 = vunpack.i.h.bf16 %v3776_v15  ;;  %v3777_v36 = vunpack.i.l.bf16 %v3776_v15 }
 0x1bf   :  { %v5590_v7 = vsel %vm1102_vm10, %v3782_v33, %v3783_v25  ;;  %v5594_v61 = vsel %vm1102_vm10, %v3783_v25, %v5504_v21  ;;  %1487 = vrot.lane.b32.xlu2 %v5018_v50, %s4359_s8 }
 0x1c0   :  { %7627 = vst [vmem:[#allocation157_spill] sm:$0xff] %v5590_v7  ;;  %v5600_v43 = vsel %vm1102_vm10, %v7629_v1, %v3777_v36  ;;  %v5603_v15 = vsel %vm1102_vm10, %v3778_v26, %v3782_v33  ;;  %v5606_v17 = vsel %vm1102_vm10, %v3777_v36, %v3778_v26  ;;  %v7359_v36 = vunpack.i.h.bf16 %v5583_v11 }
 0x1c1   :  { %7628 = vst [vmem:[#allocation158_spill] sm:$0xff] %v5594_v61  ;;  %v5612_v25 = vpop.permute.xlu2 %3830  ;;  %vm1913_vm10 = vcmask 990208  }
 0x1c2   :  { %7630 = vst [vmem:[#allocation159_spill] sm:$0xff] %v5600_v43  ;;  %3960 = vrot.lane.b32.xlu1 %v5027_v62, %s4359_s8 }
 0x1c3   :  { %7631 = vst [vmem:[#allocation160_spill] sm:$0xff] %v5603_v15  ;;  %3955 = vrot.lane.b32.xlu0 %v5035_v34, %s4359_s8 }
 0x1c4   :  { %7632 = vst [vmem:[#allocation161_spill] sm:$0xff] %v5606_v17  ;;  %v3791_v1 = vpop.permute.xlu1 %3790 }
 0x1c5   :  { %v3793_v21 = vunpack.i.h.bf16 %v3791_v1  ;;  %v3792_v33 = vunpack.i.l.bf16 %v3791_v1  ;;  %v3786_v44 = vpop.permute.xlu0 %3785 }
 0x1c6   :  { %v3788_v26 = vunpack.i.h.bf16 %v3786_v44  ;;  %v3787_v29 = vunpack.i.l.bf16 %v3786_v44 }
 0x1c7   :  { %v5622_v62 = vsel %vm1145_vm11, %v3792_v33, %v3793_v21  ;;  %v5625_v27 = vsel %vm1145_vm11, %v3793_v21, %v3797_v23  ;;  %3975 = vrot.lane.b32.xlu2 %v5035_v34, %s4360_s9 }
 0x1c8   :  { %7634 = vst [vmem:[#allocation163_spill] sm:$0xff] %v5622_v62  ;;  %v5631_v1 = vsel %vm1145_vm11, %v3787_v29, %v3788_v26  ;;  %v5634_v44 = vsel %vm1145_vm11, %v3788_v26, %v3792_v33  ;;  %v5651_v29 = vsel %vm1188_vm12, %v3822_v41, %v7359_v36  ;;  %v3989_v26 = vpack.i.bf16 %v5042_v3, %v5072_v14 }
 0x1c9   :  { %7635 = vst [vmem:[#allocation164_spill] sm:$0xff] %v5625_v27  ;;  %v5646_v34 = vpop.permute.xlu2 %1229  ;;  %v3833_v14 = vunpack.i.h.bf16 %v5612_v25  ;;  %v3832_v3 = vunpack.i.l.bf16 %v5612_v25 }
 0x1ca   :  { %3970 = vrot.lane.b32.xlu1 %v5045_v22, %s4360_s9  ;;  %7636 = vst [vmem:[#allocation165_spill] sm:$0xff] %v5651_v29 }
 0x1cb   :  { %3965 = vrot.lane.b32.xlu0 %v5076_v12, %s4360_s9  ;;  %v5699_v15 = vsel %vm1231_vm13, %v3832_v3, %v3833_v14 }
 0x1cc   :  { %v1144_v33 = vpop.permute.xlu1 %1143  ;;  %7644 = vst [vmem:[#allocation173_spill] sm:$0xff] %v5699_v15 }
 0x1cd   :  { %v3801_v50 = vpop.permute.xlu0 %3800 }
 0x1ce   :  { %v3803_v40 = vunpack.i.h.bf16 %v3801_v50  ;;  %v3802_v21 = vunpack.i.l.bf16 %v3801_v50 }
 0x1cf   :  { %3990 = vrot.lane.b32.xlu2 %v3989_v26, %s4361_s10 }
 0x1d0   :  { %v5659_v22 = vsel %vm1145_vm11, %v3802_v21, %v3803_v40  ;;  %v5662_v54 = vsel %vm1145_vm11, %v3798_v53, %v3802_v21  ;;  %v5665_v23 = vsel %vm1145_vm11, %v3803_v40, %v1144_v33  ;;  %v3808_v53 = vunpack.i.h.bf16 %v5565_v37 }
 0x1d1   :  { %7637 = vst [vmem:[#allocation166_spill] sm:$0xff] %v5659_v22  ;;  %v5674_v50 = vpop.permute.xlu2 %3855  ;;  %vm1790_vm11 = vcmask 105472  }
 0x1d2   :  { %7638 = vst [vmem:[#allocation167_spill] sm:$0xff] %v5662_v54  ;;  %3985 = vrot.lane.b32.xlu1 %v3989_v26, %s4362_s11 }
 0x1d3   :  { %7639 = vst [vmem:[#allocation168_spill] sm:$0xff] %v5665_v23  ;;  %3980 = vrot.lane.b32.xlu0 %v3989_v26, %s4363_s12 }
 0x1d4   :  { %v3816_v40 = vpop.permute.xlu1 %3815 }
 0x1d5   :  { %v3818_v21 = vunpack.i.h.bf16 %v3816_v40  ;;  %v3817_v33 = vunpack.i.l.bf16 %v3816_v40  ;;  %v3811_v36 = vpop.permute.xlu0 %3810  ;;  %v3807_v40 = vunpack.i.l.bf16 %v5565_v37 }
 0x1d6   :  { %v3813_v7 = vunpack.i.h.bf16 %v3811_v36  ;;  %v3812_v22 = vunpack.i.l.bf16 %v3811_v36 }
 0x1d7   :  { %v5681_v61 = vsel %vm1188_vm12, %v3817_v33, %v3818_v21  ;;  %v5684_v23 = vsel %vm1188_vm12, %v3818_v21, %v3822_v41  ;;  %4005 = vrot.lane.b32.xlu2 %v5076_v12, %s4364_s13  ;;  %v5711_v17 = vsel %vm1188_vm12, %v3807_v40, %v3808_v53  ;;  %v3857_v21 = vunpack.i.l.bf16 %v5674_v50 }
 0x1d8   :  { %7640 = vst [vmem:[#allocation169_spill] sm:$0xff] %v5681_v61  ;;  %v5689_v26 = vsel %vm1188_vm12, %v3808_v53, %v3812_v22  ;;  %v5692_v36 = vsel %vm1188_vm12, %v3813_v7, %v3817_v33  ;;  %v5696_v25 = vsel %vm1188_vm12, %v3812_v22, %v3813_v7  ;;  %v7371_v7 = vunpack.i.h.bf16 %v5674_v50  ;;  %v5742_v53 = vld [vmem:[#allocation6 + $0x20] sm:$0xff] }
 0x1d9   :  { %7641 = vst [vmem:[#allocation170_spill] sm:$0xff] %v5684_v23  ;;  %v5703_v41 = vpop.permute.xlu2 %3865  ;;  %v5796_v23 = vld [vmem:[#allocation6 + $0x8] sm:$0xff] }
 0x1da   :  { %7642 = vst [vmem:[#allocation171_spill] sm:$0xff] %v5692_v36  ;;  %4000 = vrot.lane.b32.xlu1 %v5076_v12, %s4365_s14 }
 0x1db   :  { %7643 = vst [vmem:[#allocation172_spill] sm:$0xff] %v5696_v25  ;;  %3995 = vrot.lane.b32.xlu0 %v5076_v12, %s4366_s15 }
 0x1dc   :  { %v3826_v37 = vpop.permute.xlu1 %3825  ;;  %7653 = vst [vmem:[#allocation181_spill] sm:$0xff] %v5796_v23 }
 0x1dd   :  { %v3828_v22 = vunpack.i.h.bf16 %v3826_v37  ;;  %v3827_v33 = vunpack.i.l.bf16 %v3826_v37  ;;  %v1187_v54 = vpop.permute.xlu0 %1186 }
 0x1de   :  { %v5716_v43 = vsel %vm1188_vm12, %v7645_v63, %v1187_v54  ;;  %v5734_v63 = vsel %vm1274_vm14, %v3857_v21, %v7371_v7  ;;  %v4206_v7 = vld [vmem:[#allocation6 + $0x18] sm:$0xff]  ;;  %vm1833_vm12 = vcmask 97280  }
 0x1df   :  { %7646 = vst [vmem:[#allocation174_spill] sm:$0xff] %v5716_v43  ;;  %v5720_v27 = vsel %vm1231_vm13, %v3827_v33, %v3828_v22  ;;  %v5723_v24 = vsel %vm1231_vm13, %v3828_v22, %v3832_v3  ;;  %4020 = vrot.lane.b32.xlu2 %v5076_v12, %s4325_s26  ;;  %v5745_v20 = vpack.i.bf16 %v5742_v53, %v4206_v7 }
 0x1e0   :  { %7647 = vst [vmem:[#allocation175_spill] sm:$0xff] %v5734_v63 }
 0x1e1   :  { %v5738_v54 = vpop.permute.xlu2 %3880 }
 0x1e2   :  { %4015 = vrot.lane.b32.xlu1 %v5076_v12, %s4367_s16 }
 0x1e3   :  { %4010 = vrot.lane.b32.xlu0 %v5076_v12, %s4368_s17 }
 0x1e4   :  { %v3841_v3 = vpop.permute.xlu1 %3840 }
 0x1e5   :  { %v3843_v40 = vunpack.i.h.bf16 %v3841_v3  ;;  %v3842_v37 = vunpack.i.l.bf16 %v3841_v3  ;;  %v3836_v22 = vpop.permute.xlu0 %3835 }
 0x1e6   :  { %v3838_v33 = vunpack.i.h.bf16 %v3836_v22  ;;  %v3837_v11 = vunpack.i.l.bf16 %v3836_v22 }
 0x1e7   :  { %v5748_v62 = vsel %vm1231_vm13, %v3842_v37, %v3843_v40  ;;  %v5752_v28 = vsel %vm1231_vm13, %v3843_v40, %v5646_v34  ;;  %4035 = vrot.lane.b32.xlu2 %v5076_v12, %s4369_s18 }
 0x1e8   :  { %7648 = vst [vmem:[#allocation176_spill] sm:$0xff] %v5748_v62  ;;  %v5757_v3 = vsel %vm1231_vm13, %v3833_v14, %v3837_v11  ;;  %v5760_v22 = vsel %vm1231_vm13, %v3837_v11, %v3838_v33  ;;  %v5769_v40 = vsel %vm1231_vm13, %v3838_v33, %v3842_v37  ;;  %v4207_v33 = vld [vmem:[#allocation6 + $0x10] sm:$0xff]  ;;  %vm1704_vm13 = vcmask 121856  }
 0x1e9   :  { %7649 = vst [vmem:[#allocation177_spill] sm:$0xff] %v5752_v28  ;;  %v5773_v12 = vpop.permute.xlu2 %3890  ;;  %v4049_v34 = vpack.i.bf16 %v4206_v7, %v4207_v33 }
 0x1ea   :  { %7650 = vst [vmem:[#allocation178_spill] sm:$0xff] %v5757_v3  ;;  %4030 = vrot.lane.b32.xlu1 %v5745_v20, %s4362_s11  ;;  %v7383_v57 = vunpack.i.h.bf16 %v5773_v12  ;;  %v7382_v25 = vunpack.i.l.bf16 %v5773_v12 }
 0x1eb   :  { %7651 = vst [vmem:[#allocation179_spill] sm:$0xff] %v5760_v22  ;;  %4025 = vrot.lane.b32.xlu0 %v5745_v20, %s4363_s12  ;;  %v3883_v22 = vunpack.i.h.bf16 %v5738_v54 }
 0x1ec   :  { %7652 = vst [vmem:[#allocation180_spill] sm:$0xff] %v5769_v40  ;;  %v5783_v37 = vpop.permute.xlu1 %3850  ;;  %v5790_v14 = vsel %vm1360_vm1, %v7382_v25, %v7383_v57  ;;  %v4044_v40 = vpack.i.bf16 %v4207_v33, %v5796_v23 }
 0x1ed   :  { %v3853_v11 = vunpack.i.h.bf16 %v5783_v37  ;;  %v7387_v43 = vunpack.i.l.bf16 %v5783_v37  ;;  %v5794_v28 = vpop.permute.xlu0 %3845 }
 0x1ef   :  { %v5802_v7 = vsel %vm1274_vm14, %v7387_v43, %v3853_v11  ;;  %v5805_v29 = vsel %vm1274_vm14, %v3853_v11, %v3857_v21  ;;  %4050 = vrot.lane.b32.xlu2 %v4049_v34, %s4366_s15  ;;  %v3882_v43 = vunpack.i.l.bf16 %v5738_v54  ;;  %v7657_v11 = vunpack.i.h.bf16 %v5674_v50 }
 0x1f0   :  { %7654 = vst [vmem:[#allocation182_spill] sm:$0xff] %v5802_v7 }
 0x1f1   :  { %7655 = vst [vmem:[#allocation183_spill] sm:$0xff] %v5805_v29  ;;  %v1359_v25 = vpop.permute.xlu2 %1358  ;;  %v5829_v54 = vsel %vm1317_vm3, %v3882_v43, %v3883_v22 }
 0x1f2   :  { %4045 = vrot.lane.b32.xlu1 %v4044_v40, %s4370_s19  ;;  %7660 = vst [vmem:[#allocation187_spill] sm:$0xff] %v5829_v54 }
 0x1f3   :  { %4040 = vrot.lane.b32.xlu0 %v5745_v20, %s4361_s10 }
 0x1f4   :  { %v1273_v57 = vpop.permute.xlu1 %1272 }
 0x1f5   :  { %v3861_v62 = vpop.permute.xlu0 %3860 }
 0x1f6   :  { %v3863_v33 = vunpack.i.h.bf16 %v3861_v62  ;;  %v3862_v61 = vunpack.i.l.bf16 %v3861_v62 }
 0x1f7   :  { %4065 = vrot.lane.b32.xlu2 %v4049_v34, %s4368_s17 }
 0x1f8   :  { %v5815_v21 = vsel %vm1274_vm14, %v3863_v33, %v1273_v57  ;;  %v5820_v40 = vsel %vm1274_vm14, %v7657_v11, %v3862_v61  ;;  %v5826_v62 = vsel %vm1274_vm14, %v3862_v61, %v3863_v33 }
 0x1f9   :  { %7656 = vst [vmem:[#allocation184_spill] sm:$0xff] %v5815_v21  ;;  %v5823_v36 = vpop.permute.xlu2 %3915 }
 0x1fa   :  { %7658 = vst [vmem:[#allocation185_spill] sm:$0xff] %v5820_v40  ;;  %4060 = vrot.lane.b32.xlu1 %v4049_v34, %s4364_s13  ;;  %v7395_v3 = vunpack.i.h.bf16 %v5823_v36  ;;  %v7396_v57 = vunpack.i.l.bf16 %v5823_v36 }
 0x1fb   :  { %7659 = vst [vmem:[#allocation186_spill] sm:$0xff] %v5826_v62  ;;  %4055 = vrot.lane.b32.xlu0 %v4049_v34, %s4365_s14 }
 0x1fc   :  { %v3876_v11 = vpop.permute.xlu1 %3875  ;;  %v5841_v61 = vsel %vm1403_vm4, %v7396_v57, %v7395_v3 }
 0x1fd   :  { %7661 = vst [vmem:[#allocation188_spill] sm:$0xff] %v5841_v61  ;;  %v3878_v33 = vunpack.i.h.bf16 %v3876_v11  ;;  %v3877_v23 = vunpack.i.l.bf16 %v3876_v11  ;;  %v5843_v15 = vpop.permute.xlu0 %3870 }
 0x1fe   :  { %v3873_v58 = vunpack.i.h.bf16 %v5843_v15  ;;  %v7398_v45 = vunpack.i.l.bf16 %v5843_v15 }
 0x1ff   :  { %v5848_v60 = vsel %vm1317_vm3, %v3877_v23, %v3878_v33  ;;  %v5851_v50 = vsel %vm1317_vm3, %v3878_v33, %v3882_v43  ;;  %4080 = vrot.lane.b32.xlu2 %v5745_v20, %s4370_s19 }
 0x200   :  { %7662 = vst [vmem:[#allocation189_spill] sm:$0xff] %v5848_v60  ;;  %v5858_v3 = vsel %vm1317_vm3, %v7398_v45, %v3873_v58  ;;  %v5861_v11 = vsel %vm1317_vm3, %v3873_v58, %v3877_v23  ;;  %v4209_v23 = vld [vmem:[#allocation6 + $0x28] sm:$0xff]  ;;  %v5875_v45 = vld [vmem:[#allocation6 + $0x30] sm:$0xff] }
 0x201   :  { %7663 = vst [vmem:[#allocation190_spill] sm:$0xff] %v5851_v50  ;;  %v5868_v43 = vpop.permute.xlu2 %3925  ;;  %v5878_v57 = vpack.i.bf16 %v5875_v45, %v4209_v23  ;;  %v5893_v40 = vpack.i.bf16 %v4209_v23, %v5742_v53 }
 0x202   :  { %7664 = vst [vmem:[#allocation191_spill] sm:$0xff] %v5858_v3  ;;  %4075 = vrot.lane.b32.xlu1 %v4049_v34, %s4325_s26 }
 0x203   :  { %7665 = vst [vmem:[#allocation192_spill] sm:$0xff] %v5861_v11  ;;  %4070 = vrot.lane.b32.xlu0 %v4049_v34, %s4367_s16 }
 0x204   :  { %v3886_v58 = vpop.permute.xlu1 %3885 }
 0x205   :  { %v1316_v62 = vpop.permute.xlu0 %1315  ;;  %v3888_v23 = vunpack.i.h.bf16 %v3886_v58 }
 0x206   :  { %v5881_v54 = vsel %vm1317_vm3, %v3883_v22, %v1316_v62 }
 0x207   :  { %7666 = vst [vmem:[#allocation193_spill] sm:$0xff] %v5881_v54  ;;  %4095 = vrot.lane.b32.xlu2 %v5878_v57, %s4362_s11 }
 0x209   :  { %v5889_v33 = vpop.permute.xlu2 %3940 }
 0x20a   :  { %4090 = vrot.lane.b32.xlu1 %v5878_v57, %s4363_s12  ;;  %v3942_v42 = vunpack.i.l.bf16 %v5889_v33 }
 0x20b   :  { %4085 = vrot.lane.b32.xlu0 %v4049_v34, %s4369_s18  ;;  %v7670_v34 = vunpack.i.h.bf16 %v5773_v12 }
 0x20c   :  { %v3901_v20 = vpop.permute.xlu1 %3900 }
 0x20d   :  { %v3903_v50 = vunpack.i.h.bf16 %v3901_v20  ;;  %v3902_v22 = vunpack.i.l.bf16 %v3901_v20  ;;  %v3896_v62 = vpop.permute.xlu0 %3895 }
 0x20e   :  { %v3898_v63 = vunpack.i.h.bf16 %v3896_v62  ;;  %v3897_v60 = vunpack.i.l.bf16 %v3896_v62  ;;  %v3847_v62 = vunpack.i.l.bf16 %v5794_v28 }
 0x20f   :  { %v5896_v29 = vsel %vm1360_vm1, %v3902_v22, %v3903_v50  ;;  %v5899_v21 = vsel %vm1360_vm1, %v3903_v50, %v1359_v25  ;;  %4110 = vrot.lane.b32.xlu2 %v5893_v40, %s4365_s14  ;;  %v3887_v25 = vunpack.i.l.bf16 %v3886_v58 }
 0x210   :  { %7667 = vst [vmem:[#allocation194_spill] sm:$0xff] %v5896_v29  ;;  %v5902_v54 = vsel %vm1360_vm1, %v3898_v63, %v3902_v22  ;;  %v5907_v11 = vsel %vm1360_vm1, %v7670_v34, %v3897_v60  ;;  %v5910_v53 = vsel %vm1360_vm1, %v3897_v60, %v3898_v63  ;;  %v3868_v22 = vunpack.i.h.bf16 %v5703_v41 }
 0x211   :  { %7668 = vst [vmem:[#allocation195_spill] sm:$0xff] %v5899_v21  ;;  %v5918_v50 = vpop.permute.xlu2 %3950  ;;  %v3867_v60 = vunpack.i.l.bf16 %v5703_v41  ;;  %v3848_v63 = vunpack.i.h.bf16 %v5794_v28  ;;  %v1361_v5 = vsel %vm1360_vm1, %v3887_v25, %v3888_v23  ;;  %v7672_v41 = vunpack.i.l.bf16 %v5823_v36 }
 0x212   :  { %7669 = vst [vmem:[#allocation196_spill] sm:$0xff] %v5902_v54  ;;  %4105 = vrot.lane.b32.xlu1 %v5893_v40, %s4366_s15  ;;  %v7673_v28 = vunpack.i.l.bf16 %v5773_v12 }
 0x213   :  { %7671 = vst [vmem:[#allocation197_spill] sm:$0xff] %v5910_v53  ;;  %4100 = vrot.lane.b32.xlu0 %v5878_v57, %s4361_s10 }
 0x214   :  { %v3911_v34 = vpop.permute.xlu1 %3910 }
 0x215   :  { %v3913_v20 = vunpack.i.h.bf16 %v3911_v34  ;;  %v3912_v53 = vunpack.i.l.bf16 %v3911_v34  ;;  %v3906_v58 = vpop.permute.xlu0 %3905  ;;  %v1362_v34 = vsel %vm1360_vm1, %v3888_v23, %v7673_v28  ;;  %v1275_v23 = vsel %vm1274_vm14, %v3847_v62, %v3848_v63 }
 0x216   :  { %v3908_v7 = vunpack.i.h.bf16 %v3906_v58  ;;  %v3907_v3 = vunpack.i.l.bf16 %v3906_v58  ;;  %v7674_v28 = vunpack.i.h.bf16 %v5889_v33  ;;  %v7677_v62 = vunpack.i.l.bf16 %v5783_v37 }
 0x217   :  { %v5930_v48 = vsel %vm1403_vm4, %v3912_v53, %v3913_v20  ;;  %v5935_v2 = vsel %vm1403_vm4, %v3913_v20, %v7672_v41  ;;  %4125 = vrot.lane.b32.xlu2 %v5893_v40, %s4367_s16  ;;  %v1318_v41 = vsel %vm1317_vm3, %v3867_v60, %v3868_v22  ;;  %vm1618_vm1 = vcmask 138240  }
 0x218   :  { %v1404_v58 = vsel %vm1403_vm4, %v3907_v3, %v3908_v7  ;;  %v1405_v39 = vsel %vm1403_vm4, %v3908_v7, %v3912_v53  ;;  %v5957_v25 = vsel %vm1446_vm7, %v3942_v42, %v7674_v28  ;;  %v2575_v53 = vpack.c.bf16 %v1318_v41, %v1275_v23 }
 0x219   :  { %v2583_v31 = vpack.c.bf16 %v1404_v58, %v1361_v5  ;;  %v2584_v20 = vpack.c.bf16 %v1405_v39, %v1362_v34  ;;  %v5950_v12 = vpop.permute.xlu2 %1487  ;;  %7675 = vst [vmem:[#allocation198_spill] sm:$0xff] %v5957_v25  ;;  %v7676_v39 = vunpack.i.l.bf16 %v5843_v15  ;;  %v1276_v60 = vsel %vm1274_vm14, %v3848_v63, %v7677_v62 }
 0x21a   :  { %4120 = vrot.lane.b32.xlu1 %v5893_v40, %s4368_s17  ;;  %v7425_v23 = vunpack.i.h.bf16 %v5868_v43  ;;  %v7682_v41 = vpack.c.bf16 %v5723_v24, %v5689_v26  ;;  %v7683_v24 = vpack.c.bf16 %v5631_v1, %v5619_v52  ;;  %vm1747_vm14 = vcmask 113664  }
 0x21b   :  { %4115 = vrot.lane.b32.xlu0 %v5893_v40, %s4364_s13  ;;  %2737 = vmatpush.bf16.msra.mxu1 %v2583_v31  ;;  %v1319_v5 = vsel %vm1317_vm3, %v3868_v22, %v7676_v39  ;;  %v7679_v31 = vunpack.i.h.bf16 %v5823_v36  ;;  %vm1661_vm3 = vcmask 130048  }
 0x21c   :  { %2793 = vmatpush.bf16.msrb.mxu0 %v2584_v20  ;;  %v1402_v3 = vpop.permute.xlu1 %1401  ;;  %v2576_v28 = vpack.c.bf16 %v1319_v5, %v1276_v60  ;;  %v5999_v5 = vld [vmem:[#allocation8] sm:$0xff] }
 0x21d   :  { %v3921_v7 = vpop.permute.xlu0 %3920 }
 0x21e   :  { %v3923_v34 = vunpack.i.h.bf16 %v3921_v7  ;;  %v3922_v58 = vunpack.i.l.bf16 %v3921_v7 }
 0x21f   :  { %2738 = vmatpush.bf16.msra.mxu1 %v2575_v53  ;;  %4140 = vrot.lane.b32.xlu2 %v5878_v57, %s4370_s19  ;;  %v7681_v57 = vpack.c.bf16 %v5720_v27, %v5711_v17  ;;  %v3953_v17 = vunpack.i.h.bf16 %v5918_v50 }
 0x220   :  { %v5968_v61 = vsel %vm1403_vm4, %v3923_v34, %v1402_v3  ;;  %v5973_v15 = vsel %vm1403_vm4, %v7679_v31, %v3922_v58  ;;  %v5976_v22 = vsel %vm1403_vm4, %v3922_v58, %v3923_v34  ;;  %2794 = vmatpush.bf16.msrb.mxu0 %v2576_v28  ;;  %v6001_v3 = vld [vmem:[#allocation6 + $0x38] sm:$0xff]  ;;  %v3952_v34 = vunpack.i.l.bf16 %v5918_v50 }
 0x221   :  { %7678 = vst [vmem:[#allocation199_spill] sm:$0xff] %v5968_v61  ;;  %v5988_v36 = vpop.permute.xlu2 %3975  ;;  %v4154_v7 = vpack.i.bf16 %v5999_v5, %v6001_v3  ;;  %v7684_v28 = vpack.c.bf16 %v5634_v44, %v5579_v38  ;;  %v7685_v44 = vpack.c.bf16 %v5501_v47, %v5498_v19  ;;  %v7689_v47 = vpack.c.bf16 %v5434_v59, %v5425_v16 }
 0x222   :  { %7680 = vst [vmem:[#allocation200_spill] sm:$0xff] %v5973_v15  ;;  %4135 = vrot.lane.b32.xlu1 %v5893_v40, %s4369_s18  ;;  %vm1575_vm4 = vcmask 146432  }
 0x223   :  { %4130 = vrot.lane.b32.xlu0 %v5893_v40, %s4325_s26  ;;  %2739 = vmatpush.bf16.msra.mxu1 %v7681_v57  ;;  %v7686_v57 = vpack.c.bf16 %v5549_v30, %v5495_v56  ;;  %v3628_v56 = vunpack.i.h.bf16 %v5060_v0 }
 0x224   :  { %2795 = vmatpush.bf16.msrb.mxu0 %v7682_v41  ;;  %v3936_v39 = vpop.permute.xlu1 %3935 }
 0x225   :  { %v3938_v53 = vunpack.i.h.bf16 %v3936_v39  ;;  %v3937_v40 = vunpack.i.l.bf16 %v3936_v39  ;;  %v3931_v62 = vpop.permute.xlu0 %3930  ;;  %v4169_v39 = vpack.i.bf16 %v6001_v3, %v5875_v45 }
 0x226   :  { %v3933_v60 = vunpack.i.h.bf16 %v3931_v62  ;;  %v3932_v27 = vunpack.i.l.bf16 %v3931_v62  ;;  %v3627_v62 = vunpack.i.l.bf16 %v5060_v0 }
 0x227   :  { %2740 = vmatpush.bf16.msra.mxu1 %v7683_v24  ;;  %v6011_v26 = vsel %vm1446_vm7, %v3937_v40, %v3938_v53  ;;  %v6014_v58 = vsel %vm1446_vm7, %v3938_v53, %v3942_v42  ;;  %4155 = vrot.lane.b32.xlu2 %v4154_v7, %s4361_s10  ;;  %v6032_v42 = vsel %vm1489_vm8, %v3952_v34, %v3953_v17 }
 0x228   :  { %2796 = vmatpush.bf16.msrb.mxu0 %v7684_v28  ;;  %v6023_v50 = vsel %vm1446_vm7, %v7425_v23, %v3932_v27  ;;  %v6026_v52 = vsel %vm1446_vm7, %v3933_v60, %v3937_v40  ;;  %v6029_v1 = vsel %vm1446_vm7, %v3932_v27, %v3933_v60  ;;  %v7687_v60 = vunpack.i.h.bf16 %v5889_v33 }
 0x229   :  { %v6034_v31 = vpop.permute.xlu2 %3990  ;;  %v3608_v27 = vunpack.i.h.bf16 %v5178_v6  ;;  %v7690_v24 = vpack.c.bf16 %v5437_v18, %v5403_v35  ;;  %v802_v59 = vsel %vm801_vm2, %v3627_v62, %v3628_v56  ;;  %v7692_v35 = vunpack.i.l.bf16 %v5248_v10 }
 0x22a   :  { %4150 = vrot.lane.b32.xlu1 %v4154_v7, %s4362_s11  ;;  %v7694_v62 = vunpack.i.l.bf16 %v5173_v51 }
 0x22b   :  { %4145 = vrot.lane.b32.xlu0 %v4154_v7, %s4363_s12  ;;  %2741 = vmatpush.bf16.msra.mxu1 %v7685_v44  ;;  %v3607_v7 = vunpack.i.l.bf16 %v5178_v6  ;;  %v7691_v6 = vpack.c.bf16 %v5348_v55, %v5337_v4  ;;  %v803_v18 = vsel %vm801_vm2, %v3628_v56, %v7692_v35  ;;  %vm1999_vm2 = vcmask 973824  }
 0x22c   :  { %2797 = vmatpush.bf16.msrb.mxu0 %v7686_v57  ;;  %v6046_v41 = vpop.permute.xlu1 %3945 }
 0x22d   :  { %v7424_v53 = vunpack.i.h.bf16 %v6046_v41  ;;  %v1445_v40 = vpop.permute.xlu0 %1444  ;;  %v759_v16 = vsel %vm758_vm15, %v3607_v7, %v3608_v27 }
 0x22e   :  { %v6056_v19 = vsel %vm1446_vm7, %v7687_v60, %v1445_v40  ;;  %v2527_v7 = vpack.c.bf16 %v802_v59, %v759_v16  ;;  %v760_v60 = vsel %vm758_vm15, %v3608_v27, %v7694_v62  ;;  %v7419_v16 = vunpack.i.l.bf16 %v5988_v36 }
 0x22f   :  { %7688 = vst [vmem:[#allocation201_spill] sm:$0xff] %v6056_v19  ;;  %2742 = vmatpush.bf16.msra.mxu1 %v7689_v47  ;;  %v6065_v30 = vsel %vm1489_vm8, %v7424_v53, %v3952_v34  ;;  %4170 = vrot.lane.b32.xlu2 %v4169_v39, %s4364_s13  ;;  %v7693_v34 = vpack.c.bf16 %v5351_v46, %v5297_v8  ;;  %vm1532_vm15 = vcmask 277504  }
 0x230   :  { %2798 = vmatpush.bf16.msrb.mxu0 %v7690_v24  ;;  %v2528_v55 = vpack.c.bf16 %v803_v18, %v760_v60 }
 0x231   :  { %v6074_v33 = vpop.permute.xlu2 %4005 }
 0x232   :  { %4165 = vrot.lane.b32.xlu1 %v4169_v39, %s4365_s14 }
 0x233   :  { %4160 = vrot.lane.b32.xlu0 %v4169_v39, %s4366_s15  ;;  %2743 = vmatpush.bf16.msra.mxu1 %v7691_v6  ;;  %v6159_v6 = vld [vmem:[#allocation8 + $0x8] sm:$0xff] }
 0x234   :  { %2799 = vmatpush.bf16.msrb.mxu0 %v7693_v34  ;;  %v3961_v28 = vpop.permute.xlu1 %3960 }
 0x235   :  { %v3963_v44 = vunpack.i.h.bf16 %v3961_v28  ;;  %v3962_v57 = vunpack.i.l.bf16 %v3961_v28  ;;  %v3956_v40 = vpop.permute.xlu0 %3955 }
 0x236   :  { %v3958_v47 = vunpack.i.h.bf16 %v3956_v40  ;;  %v3957_v4 = vunpack.i.l.bf16 %v3956_v40 }
 0x237   :  { %2744 = vmatpush.bf16.msra.mxu1 %v2527_v7  ;;  %v6094_v10 = vsel %vm1489_vm8, %v3963_v44, %v5950_v12  ;;  %v6097_v8 = vsel %vm1489_vm8, %v3962_v57, %v3963_v44  ;;  %4185 = vrot.lane.b32.xlu2 %v4169_v39, %s4325_s26  ;;  %v3210_v44 = vld [vmem:[#allocation3] sm:$0xf] }
 0x238   :  { %7695 = vst [vmem:[#allocation202_spill] sm:$0xff] %v6094_v10  ;;  %2800 = vmatpush.bf16.msrb.mxu0 %v2528_v55  ;;  %v6101_v46 = vsel %vm1489_vm8, %v3953_v17, %v3957_v4  ;;  %v6104_v51 = vsel %vm1489_vm8, %v3957_v4, %v3958_v47  ;;  %v6114_v24 = vsel %vm1489_vm8, %v3958_v47, %v3962_v57  ;;  %v3234_v57 = vld [vmem:[#allocation3 + $0xc] sm:$0xf0]  ;;  %v7423_v55 = vunpack.i.h.bf16 %v6034_v31 }
 0x239   :  { %7696 = vst [vmem:[#allocation203_spill] sm:$0xff] %v6097_v8  ;;  %v6106_v56 = vpop.permute.xlu2 %4020  ;;  %v6142_v7 = vor.u32 %v3234_v57, %v3210_v44 }
 0x23a   :  { %4180 = vrot.lane.b32.xlu1 %v4169_v39, %s4367_s16  ;;  %v7697_v25 = vunpack.i.h.bf16 %v6106_v56 }
 0x23b   :  { %4175 = vrot.lane.b32.xlu0 %v4169_v39, %s4368_s17  ;;  %2731 = vmatmul.bf16.vlgmr.msra.gmra.mxu0 %v6142_v7 }
 0x23c   :  { %v6124_v35 = vpop.permute.xlu1 %3970 }
 0x23d   :  { %v7420_v18 = vunpack.i.h.bf16 %v6124_v35  ;;  %v6127_v34 = vpop.permute.xlu0 %3965 }
 0x23e   :  { %v3967_v23 = vunpack.i.l.bf16 %v6127_v34 }
 0x23f   :  { %v6134_v28 = vsel %vm1532_vm15, %v7420_v18, %v7419_v16  ;;  %2036 = vrot.lane.b32.xlu2 %v6001_v3, %s4370_s19  ;;  %v4007_v16 = vunpack.i.l.bf16 %v6074_v33 }
 0x241   :  { %v6138_v40 = vpop.permute.xlu2 %4035 }
 0x242   :  { %1569 = vrot.lane.b32.xlu1 %v5875_v45, %s4369_s18  ;;  %v3992_v45 = vunpack.i.l.bf16 %v6034_v31 }
 0x243   :  { %4190 = vrot.lane.b32.xlu0 %v4169_v39, %s4360_s9 }
 0x244   :  { %v6145_v62 = vpop.permute.xlu1 %3985  ;;  %v1914_v20 = vsel %vm1913_vm10, %v3992_v45, %v7423_v55 }
 0x245   :  { %v7428_v60 = vunpack.i.h.bf16 %v6145_v62  ;;  %v3987_v47 = vunpack.i.l.bf16 %v6145_v62  ;;  %v6150_v4 = vpop.permute.xlu0 %3980  ;;  %v7699_v19 = vunpack.i.h.bf16 %v6145_v62 }
 0x246   :  { %v7426_v44 = vunpack.i.h.bf16 %v6150_v4  ;;  %v3982_v39 = vunpack.i.l.bf16 %v6150_v4 }
 0x247   :  { %v2000_v57 = vsel %vm1999_vm2, %v3987_v47, %v7428_v60  ;;  %1911 = vrot.lane.b32.xlu2 %v6159_v6, %s4361_s10  ;;  %v3212_v60 = vld [vmem:[#allocation3 + $0x10] sm:$0xf0] }
 0x248   :  { %v1957_v17 = vsel %vm1956_vm9, %v3982_v39, %v7426_v44  ;;  %v2639_v39 = vpack.c.bf16 %v1914_v20, %v4651_v13 }
 0x249   :  { %v2647_v37 = vpack.c.bf16 %v2000_v57, %v1957_v17  ;;  %v6166_v63 = vpop.permute.xlu2 %4050 }
 0x24a   :  { %1997 = vrot.lane.b32.xlu1 %v6159_v6, %s4362_s11 }
 0x24b   :  { %1954 = vrot.lane.b32.xlu0 %v6159_v6, %s4363_s12  ;;  %2751 = vmatpush.bf16.msra.mxu2 %v2647_v37  ;;  %v7427_v37 = vunpack.i.h.bf16 %v6074_v33 }
 0x24c   :  { %v6175_v47 = vpop.permute.xlu1 %4000 }
 0x24d   :  { %v6177_v59 = vpop.permute.xlu0 %3995  ;;  %v7422_v17 = vunpack.i.h.bf16 %v6175_v47  ;;  %v4002_v57 = vunpack.i.l.bf16 %v6175_v47 }
 0x24e   :  { %v7421_v27 = vunpack.i.h.bf16 %v6177_v59  ;;  %v3997_v45 = vunpack.i.l.bf16 %v6177_v59 }
 0x24f   :  { %2752 = vmatpush.bf16.msra.mxu2 %v2639_v39  ;;  %1831 = vrot.lane.b32.xlu2 %v5999_v5, %s4365_s14  ;;  %v1834_v38 = vsel %vm1833_vm12, %v4002_v57, %v7422_v17  ;;  %v1705_v57 = vsel %vm1704_vm13, %v4007_v16, %v7427_v37  ;;  %v3232_v37 = vld [vmem:[#allocation3 + $0x4] sm:$0xf] }
 0x250   :  { %v1791_v20 = vsel %vm1790_vm11, %v3997_v45, %v7421_v27  ;;  %v4022_v45 = vunpack.i.l.bf16 %v6106_v56 }
 0x251   :  { %v6188_v12 = vpop.permute.xlu2 %4065  ;;  %v2623_v27 = vpack.c.bf16 %v1834_v38, %v1791_v20  ;;  %v4037_v38 = vunpack.i.l.bf16 %v6138_v40 }
 0x252   :  { %1788 = vrot.lane.b32.xlu1 %v5999_v5, %s4366_s15  ;;  %v1662_v8 = vsel %vm1661_vm3, %v4022_v45, %v7697_v25 }
 0x253   :  { %1571 = vrot.lane.b32.xlu0 %v6001_v3, %s4369_s18  ;;  %2753 = vmatpush.bf16.msra.mxu2 %v4630_v49 }
 0x254   :  { %v6201_v39 = vpop.permute.xlu1 %4015 }
 0x255   :  { %v6205_v18 = vpop.permute.xlu0 %4010  ;;  %v7431_v17 = vunpack.i.h.bf16 %v6201_v39  ;;  %v4017_v3 = vunpack.i.l.bf16 %v6201_v39 }
 0x256   :  { %v7432_v55 = vunpack.i.h.bf16 %v6205_v18  ;;  %v4012_v53 = vunpack.i.l.bf16 %v6205_v18 }
 0x257   :  { %2754 = vmatpush.bf16.msra.mxu2 %v2623_v27  ;;  %1745 = vrot.lane.b32.xlu2 %v5999_v5, %s4368_s17  ;;  %v7433_v27 = vunpack.i.h.bf16 %v6127_v34  ;;  %v1619_v44 = vsel %vm1618_vm1, %v4017_v3, %v7431_v17  ;;  %v7698_v3 = vunpack.i.h.bf16 %v6138_v40 }
 0x258   :  { %v1748_v16 = vsel %vm1747_vm14, %v4012_v53, %v7432_v55  ;;  %v6233_v53 = vor.u32 %v3232_v37, %v3212_v60  ;;  %v2607_v45 = vpack.c.bf16 %v1662_v8, %v1619_v44  ;;  %v3947_v55 = vunpack.i.l.bf16 %v6046_v41 }
 0x259   :  { %v2615_v20 = vpack.c.bf16 %v1748_v16, %v1705_v57  ;;  %v6223_v0 = vpop.permute.xlu2 %4080  ;;  %v1533_v16 = vsel %vm1532_vm15, %v3967_v23, %v7433_v27  ;;  %v1576_v17 = vsel %vm1575_vm4, %v4037_v38, %v7698_v3  ;;  %v7700_v44 = vunpack.i.h.bf16 %v6150_v4 }
 0x25a   :  { %1702 = vrot.lane.b32.xlu1 %v5999_v5, %s4364_s13  ;;  %2745 = vmatmul.bf16.vlgmr.msra.gmra.mxu1 %v6233_v53  ;;  %v2599_v3 = vpack.c.bf16 %v1576_v17, %v1533_v16  ;;  %v7701_v17 = vunpack.i.h.bf16 %v5868_v43  ;;  %v7441_v4 = vunpack.i.l.bf16 %v4671_v32 }
 0x25b   :  { %2038 = vrot.lane.b32.xlu0 %v5999_v5, %s4370_s19  ;;  %2755 = vmatpush.bf16.msra.mxu2 %v2615_v20  ;;  %v3927_v20 = vunpack.i.l.bf16 %v5868_v43 }
 0x25c   :  { %v6237_v57 = vpop.permute.xlu1 %4030  ;;  %2801 = vmatmul.bf16.vlgmr.msrb.gmra.mxu0 %v6233_v53 }
 0x25d   :  { %v7439_v25 = vunpack.i.h.bf16 %v6237_v57  ;;  %v4032_v60 = vunpack.i.l.bf16 %v6237_v57  ;;  %v6249_v37 = vpop.permute.xlu0 %4025  ;;  %v1447_v62 = vsel %vm1446_vm7, %v3927_v20, %v7701_v17  ;;  %vm2698_vm7 = vcmask 1043456  }
 0x25e   :  { %v7443_v23 = vunpack.i.h.bf16 %v6249_v37  ;;  %v4027_v27 = vunpack.i.l.bf16 %v6249_v37  ;;  %v7704_v17 = vunpack.i.h.bf16 %v6034_v31 }
 0x25f   :  { %v2002_v38 = vsel %vm1999_vm2, %v4032_v60, %v7439_v25  ;;  %2756 = vmatpush.bf16.msra.mxu2 %v2607_v45  ;;  %v2001_v10 = vsel %vm1999_vm2, %v7699_v19, %v4032_v60  ;;  %1530 = vrot.lane.b32.xlu2 %v5999_v5, %s4360_s9  ;;  %v7702_v19 = vunpack.i.h.bf16 %v6046_v41 }
 0x260   :  { %v1959_v8 = vsel %vm1956_vm9, %v4027_v27, %v7443_v23  ;;  %v1958_v21 = vsel %vm1956_vm9, %v7700_v44, %v4027_v27  ;;  %v7446_v27 = vunpack.i.l.bf16 %v6223_v0 }
 0x261   :  { %v2649_v61 = vpack.c.bf16 %v2002_v38, %v1959_v8  ;;  %v2648_v54 = vpack.c.bf16 %v2001_v10, %v1958_v21  ;;  %v6269_v25 = vpop.permute.xlu2 %4095  ;;  %v1490_v16 = vsel %vm1489_vm8, %v3947_v55, %v7702_v19  ;;  %v3218_v21 = vld [vmem:[#allocation3 + $0x8] sm:$0xf]  ;;  %v3235_v10 = vld [vmem:[#allocation3 + $0x14] sm:$0xf0]  ;;  %vm2694_vm8 = vcmask 64512  }
 0x262   :  { %1659 = vrot.lane.b32.xlu1 %v5999_v5, %s4325_s26  ;;  %v2591_v45 = vpack.c.bf16 %v1490_v16, %v1447_v62  ;;  %v6287_v8 = vor.u32 %v3235_v10, %v3218_v21  ;;  %v4052_v21 = vunpack.i.l.bf16 %v6166_v63  ;;  %v7705_v10 = vld [vmem:[#allocation43_spill] sm:$0xff] }
 0x263   :  { %2757 = vmatpush.bf16.msra.mxu2 %v2599_v3  ;;  %2807 = vmatpush.bf16.msrb.mxu1 %v2648_v54  ;;  %v7703_v54 = vunpack.i.h.bf16 %v4583_v9 }
 0x264   :  { %2863 = vmatpush.bf16.msra.mxu0 %v2649_v61  ;;  %v4046_v60 = vpop.permute.xlu1 %4045  ;;  %1616 = vrot.lane.b32.xlu0 %v5999_v5, %s4367_s16 }
 0x265   :  { %v4048_v43 = vunpack.i.h.bf16 %v4046_v60  ;;  %v4047_v41 = vunpack.i.l.bf16 %v4046_v60  ;;  %v6283_v55 = vpop.permute.xlu0 %4040  ;;  %v6294_v61 = vsel %vm7459_vm5, %v7703_v54, %v7441_v4  ;;  %v3220_v54 = vld [vmem:[#allocation3 + $0x18] sm:$0xf0] }
 0x266   :  { %v7442_v20 = vunpack.i.h.bf16 %v6283_v55  ;;  %v4042_v38 = vunpack.i.l.bf16 %v6283_v55 }
 0x267   :  { %2758 = vmatpush.bf16.msra.mxu2 %v2591_v45  ;;  %v2043_v3 = vsel %vm2042_vm6, %v4047_v41, %v4048_v43  ;;  %v2044_v44 = vsel %vm2042_vm6, %v4048_v43, %v7446_v27  ;;  %v3233_v45 = vld [vmem:[#allocation3 + $0xc] sm:$0xf]  ;;  %v7444_v43 = vunpack.i.h.bf16 %v6166_v63 }
 0x268   :  { %v1915_v62 = vsel %vm1913_vm10, %v7704_v17, %v4042_v38  ;;  %v1916_v19 = vsel %vm1913_vm10, %v4042_v38, %v7442_v20  ;;  %v2655_v16 = vpack.c.bf16 %v2043_v3, %v2043_v3  ;;  %v2656_v9 = vpack.c.bf16 %v2044_v44, %v2044_v44  ;;  %v7707_v20 = vld [vmem:[#allocation96_spill] sm:$0xff] }
 0x269   :  { %v2640_v60 = vpack.c.bf16 %v1915_v62, %v7705_v10  ;;  %v2641_v41 = vpack.c.bf16 %v1916_v19, %v6294_v61  ;;  %v6310_v4 = vpop.permute.xlu2 %4110  ;;  %v7449_v38 = vunpack.i.h.bf16 %v6188_v12  ;;  %v6320_v44 = vor.u32 %v3233_v45, %v3220_v54 }
 0x26a   :  { %v2700_v31 = vsel %vm2698_vm7, %v2655_v16, 0  ;;  %v2703_v17 = vsel %vm2698_vm7, %v2656_v9, 0  ;;  %2759 = vmatmul.bf16.vlgmr.msra.gmra.mxu2 %v6287_v8  ;;  %2040 = vrot.lane.b32.xlu1 %v6159_v6, %s4370_s19  ;;  %v4067_v62 = vunpack.i.l.bf16 %v6188_v12  ;;  %v7706_v9 = vld [vmem:[#allocation97_spill] sm:$0xff]  ;;  %v7709_v6 = vpack.c.bf16 %v5930_v48, %v5790_v14  ;;  %v7711_v48 = vld [vmem:[#allocation36_spill] sm:$0xff] }
 0x26b   :  { %2808 = vmatpush.bf16.msrb.mxu1 %v2640_v60  ;;  %2864 = vmatpush.bf16.msra.mxu0 %v2641_v41  ;;  %v7708_v23 = vpack.c.bf16 %v7706_v9, %v7707_v20  ;;  %v7710_v60 = vunpack.i.h.bf16 %v6177_v59  ;;  %v1793_v20 = vsel %vm1790_vm11, %v4052_v21, %v7444_v43  ;;  %v7712_v14 = vld [vmem:[#allocation37_spill] sm:$0xff]  ;;  %v7713_v59 = vunpack.i.h.bf16 %v6175_v47 }
 0x26c   :  { %2772 = vmatpush.bf16.msra.mxu3 %v2700_v31  ;;  %2828 = vmatpush.bf16.msrb.mxu2 %v2703_v17  ;;  %v6318_v3 = vpop.permute.xlu1 %4060 }
 0x26d   :  { %v7447_v19 = vunpack.i.h.bf16 %v6318_v3  ;;  %v6324_v16 = vpop.permute.xlu0 %4055  ;;  %v1792_v41 = vsel %vm1790_vm11, %v7710_v60, %v4052_v21  ;;  %v4062_v45 = vunpack.i.l.bf16 %v6318_v3  ;;  %1573 = vrot.lane.b32.xlu0 %v5999_v5, %s4369_s18  ;;  %v1750_v5 = vsel %vm1747_vm14, %v4067_v62, %v7449_v38  ;;  %v7714_v21 = vld [vmem:[#allocation87_spill] sm:$0xff] }
 0x26e   :  { %v7445_v54 = vunpack.i.h.bf16 %v6324_v16  ;;  %v4057_v31 = vunpack.i.l.bf16 %v6324_v16  ;;  %v7717_v60 = vld [vmem:[#allocation191_spill] sm:$0xff]  ;;  %v7721_v38 = vunpack.i.h.bf16 %v6205_v18 }
 0x26f   :  { %2809 = vmatpush.bf16.msrb.mxu1 %v7711_v48  ;;  %2865 = vmatpush.bf16.msra.mxu0 %v7712_v14  ;;  %v1707_v9 = vsel %vm1704_vm13, %v4062_v45, %v7447_v19  ;;  %v7720_v19 = vunpack.i.h.bf16 %v6074_v33 }
 0x270   :  { %2779 = vmatpush.bf16.msrb.mxu3 %v7708_v23  ;;  %2849 = vmatpush.bf16.msra.mxu2 %v7709_v6  ;;  %v1835_v23 = vsel %vm1833_vm12, %v7713_v59, %v4057_v31  ;;  %v1836_v17 = vsel %vm1833_vm12, %v4057_v31, %v7445_v54  ;;  %v7715_v6 = vld [vmem:[#allocation80_spill] sm:$0xff]  ;;  %v7718_v59 = vld [vmem:[#allocation182_spill] sm:$0xff]  ;;  %v1749_v29 = vsel %vm1747_vm14, %v7721_v38, %v4067_v62 }
 0x271   :  { %3224 = vmatmul.msk.bf16.vlgmr.msra.gmra.mxu3 %vm2694_vm8, %v6320_v44  ;;  %v7716_v47 = vpack.c.bf16 %v7714_v21, %v7715_v6  ;;  %v7719_v43 = vpack.c.bf16 %v7717_v60, %v7718_v59  ;;  %v2624_v31 = vpack.c.bf16 %v1835_v23, %v1792_v41  ;;  %v2625_v54 = vpack.c.bf16 %v1836_v17, %v1793_v20  ;;  %v6365_v27 = vpop.permute.xlu2 %4125  ;;  %v7722_v20 = vld [vmem:[#allocation75_spill] sm:$0xff]  ;;  %v7723_v23 = vld [vmem:[#allocation66_spill] sm:$0xff] }
 0x272   :  { %v1706_v15 = vsel %vm1704_vm13, %v7720_v19, %v4062_v45  ;;  %v2617_v21 = vpack.c.bf16 %v1750_v5, %v1707_v9  ;;  %v7724_v33 = vpack.c.bf16 %v7722_v20, %v7723_v23  ;;  %v7725_v19 = vld [vmem:[#allocation173_spill] sm:$0xff]  ;;  %v7726_v45 = vld [vmem:[#allocation172_spill] sm:$0xff]  ;;  %v2664_v62 = vld [vmem:[%s7194_s1 + $0x8] sm:$0xff]  ;;  %v4371_v9 = vmov 0  }
 0x273   :  { %2810 = vmatpush.bf16.msrb.mxu1 %v2624_v31  ;;  %2866 = vmatpush.bf16.msra.mxu0 %v2625_v54  ;;  %v7727_v18 = vpack.c.bf16 %v7725_v19, %v7726_v45  ;;  %v2616_v38 = vpack.c.bf16 %v1749_v29, %v1706_v15  ;;  %v7728_v5 = vunpack.i.h.bf16 %v6106_v56  ;;  %v7729_v15 = vunpack.i.h.bf16 %v6201_v39  ;;  %v7730_v23 = vld [vmem:[#allocation55_spill] sm:$0xff]  ;;  %v7731_v56 = vld [vmem:[#allocation52_spill] sm:$0xff]  ;;  %v7734_v19 = vld [vmem:[#allocation149_spill] sm:$0xff] }
 0x274   :  { %2780 = vmatpush.bf16.msrb.mxu3 %v7716_v47  ;;  %2850 = vmatpush.bf16.msra.mxu2 %v7719_v43  ;;  %v6373_v6 = vpop.permute.xlu1 %4075  ;;  %v4083_v20 = vunpack.i.h.bf16 %v6223_v0 }
 0x275   :  { %v4078_v47 = vunpack.i.h.bf16 %v6373_v6  ;;  %v4077_v43 = vunpack.i.l.bf16 %v6373_v6  ;;  %v6377_v41 = vpop.permute.xlu0 %4070  ;;  %4195 = vset.pattern.permute.xlu0 %v4371_v9  ;;  %4194 = vset.pattern.permute.xlu2 %v4371_v9  ;;  %v4098_v6 = vunpack.i.h.bf16 %v6269_v25 }
 0x276   :  { %v4073_v54 = vunpack.i.h.bf16 %v6377_v41  ;;  %v4072_v17 = vunpack.i.l.bf16 %v6377_v41  ;;  %2672 = vperm.xlu0 %4195, %v2664_v62  }
 0x277   :  { %2811 = vmatpush.bf16.msrb.mxu1 %v2616_v38  ;;  %v1663_v60 = vsel %vm1661_vm3, %v7728_v5, %v4077_v43  ;;  %2867 = vmatpush.bf16.msra.mxu0 %v2617_v21  ;;  %v1664_v29 = vsel %vm1661_vm3, %v4077_v43, %v4078_v47  ;;  %v7733_v21 = vld [vmem:[#allocation163_spill] sm:$0xff]  ;;  %v3972_v38 = vunpack.i.l.bf16 %v6124_v35  ;;  %v7736_v5 = vld [vmem:[#allocation45_spill] sm:$0xff] }
 0x278   :  { %2781 = vmatpush.bf16.msrb.mxu3 %v7724_v33  ;;  %2851 = vmatpush.bf16.msra.mxu2 %v7727_v18  ;;  %v1620_v59 = vsel %vm1618_vm1, %v7729_v15, %v4072_v17  ;;  %v1621_v31 = vsel %vm1618_vm1, %v4072_v17, %v4073_v54  ;;  %v7732_v33 = vpack.c.bf16 %v7730_v23, %v7731_v56 }
 0x279   :  { %v7735_v45 = vpack.c.bf16 %v7733_v21, %v7734_v19  ;;  %v2608_v43 = vpack.c.bf16 %v1663_v60, %v1620_v59  ;;  %v2609_v18 = vpack.c.bf16 %v1664_v29, %v1621_v31  ;;  %v6409_v39 = vpop.permute.xlu2 %4140  ;;  %v7737_v15 = vpack.c.bf16 %v7736_v5, %v4651_v13  ;;  %v7738_v60 = vld [vmem:[#allocation154_spill] sm:$0xff]  ;;  %v7739_v29 = vld [vmem:[#allocation145_spill] sm:$0xff] }
 0x27a   :  { %3225 = vmatmul.msk.bf16.vlgmr.msrb.gmra.mxu2 %vm2694_vm8, %v6320_v44  ;;  %v4142_v62 = vunpack.i.l.bf16 %v6409_v39  ;;  %v7740_v59 = vpack.c.bf16 %v7738_v60, %v7739_v29  ;;  %v7741_v31 = vunpack.i.l.bf16 %v6223_v0  ;;  %v7742_v19 = vunpack.i.h.bf16 %v6124_v35  ;;  %v7745_v35 = vld [vmem:[#allocation137_spill] sm:$0xff] }
 0x27b   :  { %2812 = vmatpush.bf16.msrb.mxu1 %v2608_v43  ;;  %2868 = vmatpush.bf16.msra.mxu0 %v2609_v18  ;;  %v7744_v0 = vunpack.i.h.bf16 %v6138_v40  ;;  %v4097_v40 = vunpack.i.l.bf16 %v6269_v25  ;;  %v7455_v41 = vunpack.i.h.bf16 %v6409_v39 }
 0x27c   :  { %2782 = vmatpush.bf16.msrb.mxu3 %v7732_v33  ;;  %2852 = vmatpush.bf16.msra.mxu2 %v7735_v45  ;;  %v6415_v17 = vpop.permute.xlu1 %4090  ;;  %v2045_v23 = vsel %vm2042_vm6, %v7741_v31, %v4083_v20  ;;  %v2046_v21 = vsel %vm2042_vm6, %v4083_v20, %v4142_v62  ;;  %v1535_v13 = vsel %vm1532_vm15, %v3972_v38, %v7742_v19  ;;  %v7743_v45 = vunpack.i.h.bf16 %v6127_v34  ;;  %v7746_v20 = vld [vmem:[#allocation136_spill] sm:$0xff] }
 0x27d   :  { %v6417_v9 = vpop.permute.xlu0 %4085  ;;  %v4092_v60 = vunpack.i.l.bf16 %v6415_v17  ;;  %v7747_v29 = vpack.c.bf16 %v7745_v35, %v7746_v20 }
 0x27e   :  { %v4088_v56 = vunpack.i.h.bf16 %v6417_v9  ;;  %v4087_v33 = vunpack.i.l.bf16 %v6417_v9  ;;  %v1534_v43 = vsel %vm1532_vm15, %v7743_v45, %v3972_v38  ;;  %v2658_v38 = vpack.c.bf16 %v2046_v21, %v2046_v21  ;;  %v7749_v21 = vld [vmem:[#allocation21_spill] sm:$0xff] }
 0x280   :  { %2783 = vmatpush.bf16.msrb.mxu3 %v7737_v15  ;;  %2853 = vmatpush.bf16.msra.mxu2 %v7740_v59  ;;  %v1577_v18 = vsel %vm1575_vm4, %v7744_v0, %v4087_v33  ;;  %v1578_v5 = vsel %vm1575_vm4, %v4087_v33, %v4088_v56  ;;  %v2657_v15 = vpack.c.bf16 %v2045_v23, %v2045_v23 }
 0x281   :  { %v2600_v34 = vpack.c.bf16 %v1577_v18, %v1534_v43  ;;  %v2601_v59 = vpack.c.bf16 %v1578_v5, %v1535_v13  ;;  %v6450_v31 = vpop.permute.xlu2 %4155  ;;  %v7750_v43 = vld [vmem:[#allocation18_spill] sm:$0xff]  ;;  %v7752_v18 = vld [vmem:[#allocation127_spill] sm:$0xff] }
 0x282   :  { %v7451_v19 = vunpack.i.h.bf16 %v6450_v31  ;;  %v4157_v33 = vunpack.i.l.bf16 %v6450_v31  ;;  %v7751_v0 = vpack.c.bf16 %v7749_v21, %v7750_v43  ;;  %v7753_v5 = vld [vmem:[#allocation110_spill] sm:$0xff]  ;;  %v2706_v20 = vsel %vm2698_vm7, %v2657_v15, 0 }
 0x283   :  { %2813 = vmatpush.bf16.msrb.mxu1 %v2600_v34  ;;  %2869 = vmatpush.bf16.msra.mxu0 %v2601_v59  ;;  %v7754_v35 = vpack.c.bf16 %v7752_v18, %v7753_v5  ;;  %v7755_v59 = vld [vmem:[#allocation47_spill] sm:$0xff]  ;;  %v7756_v21 = vunpack.i.h.bf16 %v6237_v57  ;;  %v7758_v43 = vpack.c.bf16 %v6032_v42, %v6029_v1  ;;  %v7760_v18 = vld [vmem:[#allocation17_spill] sm:$0xff] }
 0x284   :  { %2784 = vmatpush.bf16.msrb.mxu3 %v4630_v49  ;;  %2854 = vmatpush.bf16.msra.mxu2 %v7747_v29  ;;  %v6455_v23 = vpop.permute.xlu1 %4105  ;;  %v7748_v49 = vunpack.i.h.bf16 %v6249_v37  ;;  %v2709_v29 = vsel %vm2698_vm7, %v2658_v38, 0  ;;  %v6477_v37 = vsel %vm1913_vm10, %v4157_v33, %v7451_v19  ;;  %v7757_v38 = vpack.c.bf16 %v6065_v30, %v6023_v50  ;;  %v7762_v19 = vld [vmem:[#allocation108_spill] sm:$0xff]  ;;  %v7766_v1 = vld [vmem:[#allocation95_spill] sm:$0xff] }
 0x285   :  { %v6462_v13 = vpop.permute.xlu0 %4100  ;;  %v2003_v15 = vsel %vm1999_vm2, %v7756_v21, %v4097_v40  ;;  %v7764_v50 = vunpack.i.h.bf16 %v6283_v55  ;;  %v7765_v21 = vld [vmem:[#allocation94_spill] sm:$0xff]  ;;  %v7770_v55 = vpack.c.bf16 %v5935_v2, %v5907_v11  ;;  %v2663_v2 = vld [vmem:[%s7194_s1] sm:$0xff]  ;;  %s4372_s1 = smov [#allocation9]  }
 0x286   :  { %v1960_v45 = vsel %vm1956_vm9, %v7748_v49, %v4092_v60  ;;  %v4102_v34 = vunpack.i.l.bf16 %v6462_v13  ;;  %v7761_v49 = vld [vmem:[#allocation116_spill] sm:$0xff]  ;;  %v7767_v42 = vpack.c.bf16 %v7765_v21, %v7766_v1  ;;  %v7774_v11 = vld [vmem:[#allocation85_spill] sm:$0xff]  ;;  %2667 = vperm.xlu2 %4194, %v2663_v2   ;;  %v7781_v1 = vld [vmem:[#allocation175_spill] sm:$0xff]  ;;  %s3191_s23 = sshll.u32 %s4372_s1, 4  ;;  %s3192_s23 = int_to_ptr.vmem [resolvable:$true] %s3191_s23 }
 0x287   :  { %2814 = vmatpush.bf16.msrb.mxu1 %v7757_v38  ;;  %2870 = vmatpush.bf16.msra.mxu0 %v7758_v43  ;;  %v7763_v57 = vpack.c.bf16 %v7761_v49, %v7762_v19  ;;  %v7769_v19 = vunpack.i.l.bf16 %v4671_v32  ;;  %v7772_v49 = vld [vmem:[#allocation197_spill] sm:$0xff]  ;;  %v7786_v2 = vld [vmem:[#allocation71_spill] sm:$0xff] }
 0x288   :  { %2785 = vmatpush.bf16.msrb.mxu3 %v7751_v0  ;;  %2855 = vmatpush.bf16.msra.mxu2 %v7754_v35  ;;  %v7759_v0 = vld [vmem:[#allocation181_spill] sm:$0xff]  ;;  %v2650_v35 = vpack.c.bf16 %v2003_v15, %v1960_v45  ;;  %v1917_v30 = vsel %vm1913_vm10, %v7764_v50, %v4102_v34  ;;  %v7768_v45 = vunpack.i.h.bf16 %v4671_v32  ;;  %v7778_v50 = vld [vmem:[#allocation183_spill] sm:$0xff] }
 0x289   :  { %v2464_v5 = vpack.c.bf16 %v7760_v18, %v7759_v0  ;;  %v4112_v0 = vunpack.i.l.bf16 %v6310_v4  ;;  %v4107_v18 = vunpack.i.l.bf16 %v6455_v23  ;;  %v7780_v21 = vld [vmem:[#allocation189_spill] sm:$0xff] }
 0x28a   :  { %2815 = vmatmul.bf16.vlgmr.msrb.gmra.mxu1 %v6287_v8  ;;  %2871 = vmatmul.bf16.vlgmr.msra.gmra.mxu0 %v6287_v8 }
 0x28b   :  { %2884 = vmatpush.bf16.msra.mxu1 %v2706_v20  ;;  %2940 = vmatpush.bf16.msrb.mxu0 %v2709_v29  ;;  %v6513_v20 = vsel %vm7459_vm5, %v7769_v19, %v7768_v45  ;;  %v7771_v29 = vld [vmem:[#allocation188_spill] sm:$0xff]  ;;  %vm7858_vm5 = vcmask 867328  }
 0x28c   :  { %2786 = vmatpush.bf16.msrb.mxu3 %v2464_v5  ;;  %2856 = vmatpush.bf16.msra.mxu2 %v7763_v57  ;;  %v7773_v15 = vpack.c.bf16 %v7771_v29, %v7772_v49  ;;  %v6521_v38 = vpop.permute.xlu1 %4120  ;;  %v2642_v43 = vpack.c.bf16 %v1917_v30, %v6513_v20  ;;  %v7775_v5 = vld [vmem:[#allocation83_spill] sm:$0xff]  ;;  %v7777_v57 = vld [vmem:[#allocation192_spill] sm:$0xff]  ;;  %v7784_v49 = vunpack.i.h.bf16 %v6324_v16 }
 0x28d   :  { %v6526_v32 = vpop.permute.xlu0 %4115  ;;  %v7779_v30 = vpack.c.bf16 %v7777_v57, %v7778_v50  ;;  %v7452_v45 = vunpack.i.l.bf16 %v6521_v38  ;;  %v7789_v57 = vld [vmem:[#allocation178_spill] sm:$0xff]  ;;  %v7790_v50 = vld [vmem:[#allocation171_spill] sm:$0xff] }
 0x28e   :  { %v4117_v19 = vunpack.i.l.bf16 %v6526_v32 }
 0x28f   :  { %2905 = vmatpush.bf16.msrb.mxu1 %v7770_v55  ;;  %2961 = vmatpush.bf16.msra.mxu0 %v7773_v15  ;;  %v7783_v55 = vunpack.i.h.bf16 %v6166_v63  ;;  %v1837_v15 = vsel %vm1833_vm12, %v7784_v49, %v4112_v0  ;;  %v7792_v63 = vld [vmem:[#allocation179_spill] sm:$0xff]  ;;  %v7795_v49 = vunpack.i.h.bf16 %v6318_v3 }
 0x290   :  { %2835 = vmatpush.bf16.msra.mxu3 %v7767_v42  ;;  %2919 = vmatpush.bf16.msrb.mxu2 %v2650_v35  ;;  %v7776_v35 = vpack.c.bf16 %v7774_v11, %v7775_v5  ;;  %v7782_v42 = vpack.c.bf16 %v7780_v21, %v7781_v1  ;;  %v7788_v5 = vld [vmem:[#allocation35_spill] sm:$0xff]  ;;  %v7793_v21 = vld [vmem:[#allocation169_spill] sm:$0xff] }
 0x291   :  { %2857 = vmatmul.bf16.vlgmr.msra.gmra.mxu2 %v6233_v53  ;;  %2787 = vmatmul.bf16.vlgmr.msrb.gmra.mxu3 %v6142_v7  ;;  %v1794_v29 = vsel %vm1790_vm11, %v7783_v55, %v4107_v18  ;;  %v7794_v1 = vpack.c.bf16 %v7792_v63, %v7793_v21  ;;  %v7801_v21 = vld [vmem:[#allocation159_spill] sm:$0xff] }
 0x292   :  { %v2626_v16 = vpack.c.bf16 %v1837_v15, %v1794_v29  ;;  %v6588_v29 = vpop.permute.xlu2 %4170  ;;  %v7800_v15 = vld [vmem:[#allocation164_spill] sm:$0xff] }
 0x293   :  { %2906 = vmatpush.bf16.msrb.mxu1 %v7779_v30  ;;  %2962 = vmatpush.bf16.msra.mxu0 %v7782_v42  ;;  %v7791_v30 = vpack.c.bf16 %v7789_v57, %v7790_v50  ;;  %v7797_v50 = vld [vmem:[#allocation54_spill] sm:$0xff] }
 0x294   :  { %2836 = vmatpush.bf16.msra.mxu3 %v7776_v35  ;;  %2920 = vmatpush.bf16.msrb.mxu2 %v2642_v43  ;;  %v7785_v43 = vld [vmem:[#allocation76_spill] sm:$0xff]  ;;  %v4127_v35 = vunpack.i.l.bf16 %v6365_v27  ;;  %v6565_v42 = vpop.permute.xlu1 %4135 }
 0x295   :  { %v7787_v11 = vpack.c.bf16 %v7785_v43, %v7786_v2  ;;  %v6567_v55 = vpop.permute.xlu0 %4130  ;;  %v1708_v43 = vsel %vm1704_vm13, %v7795_v49, %v4117_v19  ;;  %v7796_v2 = vunpack.i.h.bf16 %v6188_v12  ;;  %v7802_v12 = vpack.c.bf16 %v7800_v15, %v7801_v21  ;;  %v7804_v49 = vld [vmem:[#allocation161_spill] sm:$0xff]  ;;  %v7811_v15 = vld [vmem:[#allocation152_spill] sm:$0xff]  ;;  %v7812_v21 = vld [vmem:[#allocation139_spill] sm:$0xff] }
 0x296   :  { %v7458_v57 = vunpack.i.l.bf16 %v6567_v55  ;;  %v1622_v3 = vsel %vm1618_vm1, %v4073_v54, %v4127_v35  ;;  %v7453_v54 = vunpack.i.l.bf16 %v6565_v42 }
 0x297   :  { %2907 = vmatpush.bf16.msrb.mxu1 %v7791_v30  ;;  %2963 = vmatpush.bf16.msra.mxu0 %v7794_v1  ;;  %v7798_v30 = vld [vmem:[#allocation53_spill] sm:$0xff]  ;;  %v7803_v1 = vld [vmem:[#allocation162_spill] sm:$0xff] }
 0x298   :  { %2837 = vmatpush.bf16.msra.mxu3 %v7787_v11  ;;  %2921 = vmatpush.bf16.msrb.mxu2 %v7788_v5  ;;  %v1751_v11 = vsel %vm1747_vm14, %v7796_v2, %v7452_v45  ;;  %v7799_v63 = vpack.c.bf16 %v7797_v50, %v7798_v30  ;;  %v7805_v2 = vpack.c.bf16 %v7803_v1, %v7804_v49  ;;  %v7806_v50 = vld [vmem:[#allocation44_spill] sm:$0xff] }
 0x299   :  { %v2618_v45 = vpack.c.bf16 %v1751_v11, %v1708_v43  ;;  %v7807_v30 = vpack.c.bf16 %v7806_v50, %v7705_v10  ;;  %v7808_v43 = vld [vmem:[#allocation155_spill] sm:$0xff]  ;;  %v1579_v49 = vsel %vm1575_vm4, %v4088_v56, %v7453_v54  ;;  %v7815_v56 = vld [vmem:[#allocation142_spill] sm:$0xff] }
 0x29a   :  { %3226 = vmatmul.msk.bf16.vlgmr.msra.gmra.mxu1 %vm2694_vm8, %v6320_v44  ;;  %3227 = vmatmul.msk.bf16.vlgmr.msrb.gmra.mxu0 %vm2694_vm8, %v6320_v44 }
 0x29b   :  { %2908 = vmatpush.bf16.msrb.mxu1 %v7802_v12  ;;  %2964 = vmatpush.bf16.msra.mxu0 %v7805_v2  ;;  %v7813_v12 = vpack.c.bf16 %v7811_v15, %v7812_v21  ;;  %v2047_v2 = vsel %vm2042_vm6, %v4142_v62, %v7455_v41  ;;  %v7818_v21 = vld [vmem:[#allocation143_spill] sm:$0xff]  ;;  %v7829_v41 = vld [vmem:[#allocation125_spill] sm:$0xff] }
 0x29c   :  { %2838 = vmatpush.bf16.msra.mxu3 %v7799_v63  ;;  %2922 = vmatpush.bf16.msrb.mxu2 %v2626_v16  ;;  %v1665_v16 = vsel %vm1661_vm3, %v4078_v47, %v7458_v57  ;;  %v7809_v47 = vld [vmem:[#allocation146_spill] sm:$0xff]  ;;  %v6617_v10 = vpop.permute.xlu1 %4150  ;;  %v2659_v54 = vpack.c.bf16 %v2047_v2, %v2047_v2 }
 0x29d   :  { %v2610_v63 = vpack.c.bf16 %v1665_v16, %v1622_v3  ;;  %v7810_v11 = vpack.c.bf16 %v7808_v43, %v7809_v47  ;;  %v7454_v3 = vunpack.i.h.bf16 %v6617_v10  ;;  %v4152_v1 = vunpack.i.l.bf16 %v6617_v10  ;;  %v7814_v43 = vld [vmem:[#allocation16_spill] sm:$0xff] }
 0x29e   :  { %v4093_v16 = vunpack.i.h.bf16 %v6415_v17  ;;  %v7457_v47 = vunpack.i.h.bf16 %v7814_v43  ;;  %v7828_v17 = vld [vmem:[#allocation126_spill] sm:$0xff] }
 0x29f   :  { %2909 = vmatpush.bf16.msrb.mxu1 %v7810_v11  ;;  %2965 = vmatpush.bf16.msra.mxu0 %v7813_v12  ;;  %v6641_v9 = vsel %vm1999_vm2, %v4152_v1, %v7454_v3  ;;  %v7816_v11 = vld [vmem:[#allocation135_spill] sm:$0xff]  ;;  %v7819_v12 = vld [vmem:[#allocation133_spill] sm:$0xff]  ;;  %v2004_v3 = vsel %vm1999_vm2, %v4097_v40, %v4098_v6  ;;  %v2005_v25 = vsel %vm1999_vm2, %v4098_v6, %v4152_v1  ;;  %v7822_v40 = vld [vmem:[#allocation20_spill] sm:$0xff]  ;;  %v2712_v6 = vsel %vm2698_vm7, %v2659_v54, 0 }
 0x2a0   :  { %2839 = vmatpush.bf16.msra.mxu3 %v7807_v30  ;;  %2923 = vmatpush.bf16.msrb.mxu2 %v2618_v45  ;;  %v6619_v45 = vpop.permute.xlu0 %4145  ;;  %v7817_v15 = vpack.c.bf16 %v7815_v56, %v7816_v11  ;;  %v1961_v11 = vsel %vm1956_vm9, %v4092_v60, %v4093_v16  ;;  %v7830_v60 = vpack.c.bf16 %v7828_v17, %v7829_v41  ;;  %v7835_v41 = vld [vmem:[#allocation118_spill] sm:$0xff]  ;;  %v7839_v54 = vld [vmem:[#allocation113_spill] sm:$0xff] }
 0x2a1   :  { %v7456_v50 = vunpack.i.h.bf16 %v6619_v45  ;;  %v4147_v30 = vunpack.i.l.bf16 %v6619_v45  ;;  %v2651_v1 = vpack.c.bf16 %v2004_v3, %v1961_v11  ;;  %v4108_v11 = vunpack.i.h.bf16 %v6455_v23  ;;  %v7844_v17 = vld [vmem:[#allocation86_spill] sm:$0xff] }
 0x2a2   :  { %v7851_v23 = vld [vmem:[#allocation90_spill] sm:$0xff] }
 0x2a3   :  { %v6646_v62 = vsel %vm1956_vm9, %v4147_v30, %v7456_v50  ;;  %2910 = vmatpush.bf16.msrb.mxu1 %v7817_v15  ;;  %v7821_v50 = vunpack.i.l.bf16 %v7814_v43  ;;  %v6668_v15 = vpop.permute.xlu2 %4185 }
 0x2a4   :  { %2840 = vmatpush.bf16.msra.mxu3 %v7711_v48  ;;  %2924 = vmatpush.bf16.msrb.mxu2 %v2610_v63  ;;  %v7820_v48 = vpack.c.bf16 %v7818_v21, %v7819_v12  ;;  %v2602_v63 = vpack.c.bf16 %v1579_v49, %v6134_v28  ;;  %v1962_v28 = vsel %vm1956_vm9, %v4093_v16, %v4147_v30  ;;  %v7823_v49 = vld [vmem:[#allocation19_spill] sm:$0xff]  ;;  %v4103_v21 = vunpack.i.h.bf16 %v6462_v13  ;;  %v7825_v12 = vld [vmem:[#allocation128_spill] sm:$0xff]  ;;  %v6682_v16 = vpop.permute.xlu1 %4165  ;;  %v7841_v13 = vld [vmem:[#allocation105_spill] sm:$0xff] }
 0x2a5   :  { %v116_v56 = vsel %vm113_vm0, %v7821_v50, %v7457_v47  ;;  %v7824_v2 = vpack.c.bf16 %v7822_v40, %v7823_v49  ;;  %v4214_v47 = vld [vmem:[#allocation6 + $0x10] sm:$0xff]  ;;  %v2652_v30 = vpack.c.bf16 %v2005_v25, %v1962_v28  ;;  %v7832_v49 = vld [vmem:[#allocation106_spill] sm:$0xff]  ;;  %v7460_v25 = vunpack.i.l.bf16 %v6682_v16 }
 0x2a6   :  { %2966 = vmatpush.bf16.msra.mxu0 %v7820_v48  ;;  %v7826_v48 = vld [vmem:[#allocation123_spill] sm:$0xff]  ;;  %v2465_v57 = vpack.c.bf16 %v116_v56, %v4214_v47  ;;  %v7836_v47 = vld [vmem:[#allocation117_spill] sm:$0xff] }
 0x2a7   :  { %v7827_v50 = vpack.c.bf16 %v7825_v12, %v7826_v48  ;;  %v7837_v56 = vpack.c.bf16 %v7835_v41, %v7836_v47  ;;  %v7838_v48 = vld [vmem:[#allocation114_spill] sm:$0xff]  ;;  %v4123_v41 = vunpack.i.h.bf16 %v6521_v38  ;;  %v4118_v47 = vunpack.i.h.bf16 %v6526_v32  ;;  %v7863_v32 = vld [vmem:[#allocation69_spill] sm:$0xff] }
 0x2a8   :  { %2841 = vmatpush.bf16.msra.mxu3 %v7824_v2  ;;  %2925 = vmatpush.bf16.msrb.mxu2 %v2602_v63  ;;  %v6685_v40 = vpop.permute.xlu0 %4160  ;;  %v7831_v63 = vpack.c.bf16 %v6101_v46, %v6026_v52  ;;  %v7833_v2 = vld [vmem:[#allocation104_spill] sm:$0xff]  ;;  %v7840_v3 = vpack.c.bf16 %v7838_v48, %v7839_v54  ;;  %v1919_v52 = vsel %vm1913_vm10, %v4103_v21, %v4157_v33  ;;  %v4113_v46 = vunpack.i.h.bf16 %v6310_v4 }
 0x2a9   :  { %2911 = vmatpush.bf16.msrb.mxu1 %v7827_v50  ;;  %v7834_v12 = vpack.c.bf16 %v7832_v49, %v7833_v2  ;;  %v7462_v28 = vunpack.i.l.bf16 %v6685_v40  ;;  %v7845_v33 = vld [vmem:[#allocation84_spill] sm:$0xff]  ;;  %v1795_v48 = vsel %vm1790_vm11, %v4107_v18, %v4108_v11  ;;  %v7853_v18 = vld [vmem:[#allocation77_spill] sm:$0xff] }
 0x2aa   :  { %2967 = vmatpush.bf16.msra.mxu0 %v7830_v60  ;;  %v7847_v60 = vld [vmem:[#allocation48_spill] sm:$0xff]  ;;  %v1838_v54 = vsel %vm1833_vm12, %v4112_v0, %v4113_v46  ;;  %v4128_v0 = vunpack.i.h.bf16 %v6365_v27 }
 0x2ab   :  { %v6720_v2 = vpop.permute.xlu2 %2036  ;;  %v7854_v4 = vld [vmem:[#allocation72_spill] sm:$0xff] }
 0x2ac   :  { %2842 = vmatpush.bf16.msra.mxu3 %v2465_v57  ;;  %2926 = vmatpush.bf16.msrb.mxu2 %v7831_v63  ;;  %v1918_v57 = vsel %vm1913_vm10, %v4102_v34, %v4103_v21  ;;  %v7842_v34 = vld [vmem:[#allocation100_spill] sm:$0xff]  ;;  %v7846_v21 = vpack.c.bf16 %v7844_v17, %v7845_v33  ;;  %v7849_v63 = vld [vmem:[#allocation33_spill] sm:$0xff]  ;;  %v7855_v17 = vpack.c.bf16 %v7853_v18, %v7854_v4 }
 0x2ad   :  { %2912 = vmatpush.bf16.msrb.mxu1 %v7837_v56  ;;  %v7843_v50 = vpack.c.bf16 %v7841_v13, %v7842_v34  ;;  %v7461_v49 = vunpack.i.l.bf16 %v7849_v63  ;;  %v1839_v13 = vsel %vm1833_vm12, %v4113_v46, %v7460_v25  ;;  %v7850_v34 = vld [vmem:[#allocation91_spill] sm:$0xff]  ;;  %v2627_v33 = vpack.c.bf16 %v1838_v54, %v1795_v48  ;;  %v7859_v46 = vld [vmem:[#allocation38_spill] sm:$0xff] }
 0x2ae   :  { %2968 = vmatpush.bf16.msra.mxu0 %v7840_v3  ;;  %v4172_v3 = vunpack.i.l.bf16 %v6588_v29  ;;  %v7860_v25 = vld [vmem:[#allocation34_spill] sm:$0xff]  ;;  %v4187_v54 = vunpack.i.l.bf16 %v6668_v15 }
 0x2af   :  { %2927 = vmatmul.bf16.vlgmr.msrb.gmra.mxu2 %v6287_v8  ;;  %2843 = vmatmul.bf16.vlgmr.msra.gmra.mxu3 %v6142_v7 }
 0x2b0   :  { %2891 = vmatpush.bf16.msrb.mxu3 %v7834_v12  ;;  %2996 = vmatpush.bf16.msra.mxu2 %v2712_v6  ;;  %v2643_v6 = vpack.c.bf16 %v1918_v57, %v7847_v60  ;;  %v6722_v12 = vpop.permute.xlu1 %4180  ;;  %v6728_v56 = vpop.permute.xlu0 %4175  ;;  %v1710_v4 = vsel %vm1704_vm13, %v4118_v47, %v4172_v3 }
 0x2b1   :  { %2975 = vmatpush.bf16.msra.mxu1 %v2651_v1  ;;  %v7848_v1 = vld [vmem:[#allocation46_spill] sm:$0xff]  ;;  %2969 = vmatmul.bf16.vlgmr.msra.gmra.mxu0 %v6233_v53  ;;  %v4177_v57 = vunpack.i.l.bf16 %v6728_v56  ;;  %v4182_v18 = vunpack.i.l.bf16 %v6722_v12 }
 0x2b2   :  { %3031 = vmatpush.bf16.msrb.mxu0 %v2652_v30  ;;  %v2644_v30 = vpack.c.bf16 %v1919_v52, %v7848_v1  ;;  %2913 = vmatmul.bf16.vlgmr.msrb.gmra.mxu1 %v6233_v53  ;;  %v1796_v52 = vsel %vm1790_vm11, %v4108_v11, %v7462_v28 }
 0x2b4   :  { %3003 = vmatpush.bf16.msrb.mxu2 %v7843_v50  ;;  %2892 = vmatpush.bf16.msrb.mxu3 %v7846_v21  ;;  %v7852_v50 = vpack.c.bf16 %v7850_v34, %v7851_v23  ;;  %v7856_v21 = vld [vmem:[#allocation42_spill] sm:$0xff]  ;;  %v2628_v34 = vpack.c.bf16 %v1839_v13, %v1796_v52  ;;  %v1709_v23 = vsel %vm1704_vm13, %v4117_v19, %v4118_v47  ;;  %v7862_v13 = vld [vmem:[#allocation73_spill] sm:$0xff]  ;;  %v7865_v19 = vld [vmem:[#allocation63_spill] sm:$0xff] }
 0x2b5   :  { %2976 = vmatpush.bf16.msra.mxu1 %v2643_v6  ;;  %v7857_v6 = vunpack.i.h.bf16 %v7856_v21  ;;  %v1753_v52 = vsel %vm1747_vm14, %v4123_v41, %v4177_v57 }
 0x2b6   :  { %3032 = vmatpush.bf16.msrb.mxu0 %v2644_v30  ;;  %v4133_v30 = vunpack.i.h.bf16 %v6567_v55  ;;  %v2620_v28 = vpack.c.bf16 %v1753_v52, %v1710_v4  ;;  %v3978_v4 = vunpack.i.h.bf16 %v5988_v36 }
 0x2b7   :  { %v375_v11 = vsel %vm7858_vm5, %v7857_v6, %v7461_v49 }
 0x2b8   :  { %3004 = vmatpush.bf16.msrb.mxu2 %v7852_v50  ;;  %2893 = vmatpush.bf16.msrb.mxu3 %v7855_v17  ;;  %v7861_v50 = vunpack.i.l.bf16 %v6521_v38  ;;  %v7864_v17 = vpack.c.bf16 %v7862_v13, %v7863_v32  ;;  %v7866_v38 = vld [vmem:[#allocation62_spill] sm:$0xff]  ;;  %v6779_v6 = vpop.permute.xlu1 %1569  ;;  %v6782_v47 = vpop.permute.xlu0 %4190  ;;  %v7868_v13 = vunpack.i.l.bf16 %v6567_v55  ;;  %v1667_v27 = vsel %vm1661_vm3, %v4133_v30, %v4187_v54 }
 0x2b9   :  { %2977 = vmatpush.bf16.msra.mxu1 %v7859_v46  ;;  %v7867_v21 = vpack.c.bf16 %v7865_v19, %v7866_v38  ;;  %v7463_v19 = vunpack.i.h.bf16 %v6782_v47  ;;  %v4138_v55 = vunpack.i.h.bf16 %v6565_v42  ;;  %v7873_v38 = vld [vmem:[#allocation49_spill] sm:$0xff] }
 0x2ba   :  { %3033 = vmatpush.bf16.msrb.mxu0 %v7860_v25  ;;  %v1752_v48 = vsel %vm1747_vm14, %v7861_v50, %v4123_v41  ;;  %v2490_v50 = vpack.c.bf16 %v375_v11, %v6294_v61  ;;  %v1623_v41 = vsel %vm1618_vm1, %v4127_v35, %v4128_v0  ;;  %v1666_v32 = vsel %vm1661_vm3, %v7868_v13, %v4133_v30  ;;  %v7869_v11 = vld [vmem:[#allocation64_spill] sm:$0xff]  ;;  %v7872_v30 = vld [vmem:[#allocation14_spill] sm:$0xff] }
 0x2bb   :  { %v2619_v49 = vpack.c.bf16 %v1752_v48, %v1709_v23  ;;  %v4192_v61 = vunpack.i.l.bf16 %v6782_v47  ;;  %v7870_v35 = vld [vmem:[#allocation56_spill] sm:$0xff]  ;;  %v2611_v48 = vpack.c.bf16 %v1666_v32, %v1623_v41  ;;  %v3302_v52 = vunpack.i.l.bf16 %v7872_v30 }
 0x2bc   :  { %3005 = vmatpush.bf16.msrb.mxu2 %v7864_v17  ;;  %2894 = vmatpush.bf16.msrb.mxu3 %v7867_v21  ;;  %v6790_v17 = vpop.permute.xlu2 %1911  ;;  %v7874_v21 = vpack.c.bf16 %v7873_v38, %v7847_v60  ;;  %v1581_v41 = vsel %vm1575_vm4, %v4138_v55, %v6779_v6  ;;  %v7876_v13 = vunpack.i.l.bf16 %v6565_v42  ;;  %v7877_v60 = vld [vmem:[#allocation15_spill] sm:$0xff]  ;;  %v7879_v42 = vunpack.i.h.bf16 %v7814_v43  ;;  %v7880_v38 = vld [vmem:[#allocation29_spill] sm:$0xff]  ;;  %v4215_v43 = vld [vmem:[#allocation6 + $0x18] sm:$0xff] }
 0x2bd   :  { %2978 = vmatpush.bf16.msra.mxu1 %v2627_v33  ;;  %v1624_v33 = vsel %vm1618_vm1, %v4128_v0, %v4182_v18  ;;  %v6807_v23 = vsel %vm1532_vm15, %v4192_v61, %v7463_v19  ;;  %v7922_v19 = vld [vmem:[#allocation101_spill] sm:$0xff] }
 0x2be   :  { %3034 = vmatpush.bf16.msrb.mxu0 %v2628_v34  ;;  %v7871_v34 = vpack.c.bf16 %v7869_v11, %v7870_v35  ;;  %v2612_v0 = vpack.c.bf16 %v1667_v27, %v1624_v33  ;;  %v1580_v32 = vsel %vm1575_vm4, %v7876_v13, %v4138_v55  ;;  %v3307_v27 = vunpack.i.l.bf16 %v7877_v60 }
 0x2bf   :  { %3228 = vmatmul.msk.bf16.vlgmr.msra.gmra.mxu2 %vm2694_vm8, %v6320_v44  ;;  %v4178_v11 = vunpack.i.h.bf16 %v6728_v56  ;;  %v7889_v56 = vpack.c.bf16 %v6104_v51, %v6011_v26  ;;  %v7892_v26 = vunpack.i.l.bf16 %v6682_v16 }
 0x2c0   :  { %3006 = vmatpush.bf16.msrb.mxu2 %v7871_v34  ;;  %2895 = vmatpush.bf16.msrb.mxu3 %v2490_v50  ;;  %v7875_v50 = vunpack.i.h.bf16 %v6409_v39  ;;  %v6827_v33 = vpop.permute.xlu1 %1997  ;;  %v4173_v39 = vunpack.i.h.bf16 %v6588_v29  ;;  %v117_v34 = vsel %vm113_vm0, %v7879_v42, %v3302_v52  ;;  %v7887_v29 = vld [vmem:[#allocation99_spill] sm:$0xff] }
 0x2c1   :  { %2979 = vmatpush.bf16.msra.mxu1 %v2619_v49  ;;  %v1538_v49 = vsel %vm1532_vm15, %v3978_v4, %v4192_v61  ;;  %v7878_v61 = vunpack.i.l.bf16 %v5988_v36  ;;  %v3303_v36 = vunpack.i.h.bf16 %v7872_v30  ;;  %v2466_v42 = vpack.c.bf16 %v117_v34, %v4215_v43  ;;  %v7948_v30 = vld [vmem:[#allocation58_spill] sm:$0xff] }
 0x2c2   :  { %3035 = vmatpush.bf16.msrb.mxu0 %v2620_v28  ;;  %v2048_v28 = vsel %vm2042_vm6, %v7875_v50, %v6720_v2  ;;  %v7891_v43 = vunpack.i.l.bf16 %v6685_v40 }
 0x2c3   :  { %v1537_v35 = vsel %vm1532_vm15, %v7878_v61, %v3978_v4  ;;  %v4163_v4 = vunpack.i.h.bf16 %v6685_v40  ;;  %v4168_v61 = vunpack.i.h.bf16 %v6682_v16  ;;  %v7994_v16 = vld [vmem:[#allocation174_spill] sm:$0xff] }
 0x2c4   :  { %3007 = vmatpush.bf16.msrb.mxu2 %v7874_v21  ;;  %2896 = vmatpush.bf16.msrb.mxu3 %v7712_v14  ;;  %v6830_v14 = vpop.permute.xlu0 %1954  ;;  %v6842_v55 = vpop.permute.xlu2 %1831  ;;  %v7881_v21 = vld [vmem:[#allocation28_spill] sm:$0xff]  ;;  %v2603_v13 = vpack.c.bf16 %v1580_v32, %v1537_v35  ;;  %v7884_v32 = vld [vmem:[#allocation22_spill] sm:$0xff] }
 0x2c5   :  { %2980 = vmatpush.bf16.msra.mxu1 %v2611_v48  ;;  %v2660_v48 = vpack.c.bf16 %v2048_v28, %v2048_v28  ;;  %v7882_v50 = vpack.c.bf16 %v7880_v38, %v7881_v21  ;;  %v6859_v28 = vsel %vm1704_vm13, %v4172_v3, %v4173_v39  ;;  %v7886_v38 = vld [vmem:[#allocation107_spill] sm:$0xff]  ;;  %v6897_v51 = vsel %vm1833_vm12, %v7892_v26, %v4168_v61  ;;  %v7918_v26 = vld [vmem:[#allocation68_spill] sm:$0xff] }
 0x2c6   :  { %3036 = vmatpush.bf16.msrb.mxu0 %v2612_v0  ;;  %v2604_v0 = vpack.c.bf16 %v1581_v41, %v1538_v49  ;;  %v6864_v49 = vsel %vm1747_vm14, %v4177_v57, %v4178_v11  ;;  %v7883_v41 = vld [vmem:[#allocation30_spill] sm:$0xff]  ;;  %v7888_v21 = vpack.c.bf16 %v7886_v38, %v7887_v29  ;;  %v7890_v57 = vpack.c.bf16 %v6114_v24, %v6014_v58 }
 0x2c7   :  { %v7885_v35 = vpack.c.bf16 %v7883_v41, %v7884_v32  ;;  %v2715_v34 = vsel %vm2698_vm7, %v2660_v48, 0  ;;  %v4216_v48 = vld [vmem:[#allocation6 + $0x28] sm:$0xff]  ;;  %v4188_v58 = vunpack.i.h.bf16 %v6668_v15  ;;  %v4183_v24 = vunpack.i.h.bf16 %v6722_v12 }
 0x2c8   :  { %3008 = vmatpush.bf16.msrb.mxu2 %v7859_v46  ;;  %2897 = vmatpush.bf16.msrb.mxu3 %v7882_v50  ;;  %v119_v46 = vsel %vm113_vm0, %v3303_v36, %v3307_v27  ;;  %v6875_v3 = vpop.permute.xlu1 %1788  ;;  %v7895_v29 = vld [vmem:[#allocation82_spill] sm:$0xff]  ;;  %v8008_v12 = vunpack.i.h.bf16 %v6782_v47  ;;  %v8015_v47 = vld [vmem:[#allocation115_spill] sm:$0xff] }
 0x2c9   :  { %2981 = vmatpush.bf16.msra.mxu1 %v2603_v13  ;;  %v2468_v13 = vpack.c.bf16 %v119_v46, %v4216_v48 }
 0x2ca   :  { %3037 = vmatpush.bf16.msrb.mxu0 %v2604_v0  ;;  %v7919_v0 = vld [vmem:[#allocation67_spill] sm:$0xff] }
 0x2cb   :  { %v7920_v41 = vpack.c.bf16 %v7918_v26, %v7919_v0  ;;  %v7934_v26 = vld [vmem:[#allocation150_spill] sm:$0xff] }
 0x2cc   :  { %3009 = vmatpush.bf16.msrb.mxu2 %v7885_v35  ;;  %2898 = vmatpush.bf16.msrb.mxu3 %v2466_v42  ;;  %v6883_v50 = vpop.permute.xlu0 %1571  ;;  %v6890_v42 = vsel %vm1790_vm11, %v7891_v43, %v4163_v4  ;;  %v7893_v35 = vld [vmem:[#allocation194_spill] sm:$0xff] }
 0x2cd   :  { %2982 = vmatpush.bf16.msra.mxu1 %v7889_v56  ;;  %v6904_v46 = vsel %vm1575_vm4, %v6779_v6, %v6883_v50  ;;  %v7894_v38 = vpack.c.bf16 %v5976_v22, %v7893_v35  ;;  %v1746_v6 = vpop.permute.xlu2 %1745  ;;  %v6928_v22 = vsel %vm1618_vm1, %v4182_v18, %v4183_v24  ;;  %v7901_v35 = vld [vmem:[#allocation187_spill] sm:$0xff]  ;;  %v7905_v18 = vld [vmem:[#allocation70_spill] sm:$0xff] }
 0x2ce   :  { %3038 = vmatpush.bf16.msrb.mxu0 %v7890_v57  ;;  %v7899_v57 = vld [vmem:[#allocation98_spill] sm:$0xff]  ;;  %v6938_v43 = vsel %vm1747_vm14, %v4178_v11, %v1746_v6  ;;  %v7908_v11 = vld [vmem:[#allocation88_spill] sm:$0xff] }
 0x2cf   :  { %2899 = vmatmul.bf16.vlgmr.msrb.gmra.mxu3 %v6142_v7 }
 0x2d0   :  { %2947 = vmatpush.bf16.msra.mxu3 %v7888_v21  ;;  %3010 = vmatpush.bf16.msrb.mxu2 %v2468_v13  ;;  %v7896_v21 = vld [vmem:[#allocation81_spill] sm:$0xff]  ;;  %v6935_v13 = vsel %vm1661_vm3, %v4187_v54, %v4188_v58 }
 0x2d1   :  { %3052 = vmatpush.bf16.msrb.mxu1 %v2715_v34  ;;  %v7897_v56 = vpack.c.bf16 %v7895_v29, %v7896_v21  ;;  %3039 = vmatmul.bf16.vlgmr.msrb.gmra.mxu0 %v6287_v8  ;;  %v7898_v34 = vld [vmem:[#allocation102_spill] sm:$0xff] }
 0x2d2   :  { %2983 = vmatmul.bf16.vlgmr.msra.gmra.mxu1 %v6287_v8  ;;  %v7900_v48 = vpack.c.bf16 %v7898_v34, %v7899_v57  ;;  %v7904_v21 = vld [vmem:[#allocation74_spill] sm:$0xff]  ;;  %v1703_v34 = vpop.permute.xlu1 %1702 }
 0x2d3   :  { %3011 = vmatmul.bf16.vlgmr.msrb.gmra.mxu2 %v6142_v7  ;;  %v6951_v54 = vsel %vm1704_vm13, %v4173_v39, %v1703_v34  ;;  %v7912_v39 = vld [vmem:[#allocation176_spill] sm:$0xff] }
 0x2d4   :  { %3073 = vmatpush.bf16.msra.mxu2 %v7894_v38  ;;  %2948 = vmatpush.bf16.msra.mxu3 %v7897_v56  ;;  %v7902_v38 = vld [vmem:[#allocation186_spill] sm:$0xff]  ;;  %v7906_v56 = vpack.c.bf16 %v7904_v21, %v7905_v18  ;;  %v6948_v57 = vpop.permute.xlu0 %2038  ;;  %v7911_v21 = vunpack.i.l.bf16 %v7849_v63 }
 0x2d5   :  { %3059 = vmatpush.bf16.msra.mxu1 %v7900_v48  ;;  %v7903_v29 = vpack.c.bf16 %v7901_v35, %v7902_v38  ;;  %v7907_v48 = vld [vmem:[#allocation92_spill] sm:$0xff]  ;;  %v2049_v32 = vsel %vm2042_vm6, %v6720_v2, %v6948_v57  ;;  %v2622_v35 = vpack.c.bf16 %v6938_v43, %v6951_v54  ;;  %v8009_v54 = vld [vmem:[#allocation131_spill] sm:$0xff] }
 0x2d6   :  { %v7909_v6 = vpack.c.bf16 %v7907_v48, %v7908_v11  ;;  %v2661_v38 = vpack.c.bf16 %v2049_v32, %v2049_v32  ;;  %v7915_v48 = vld [vmem:[#allocation65_spill] sm:$0xff]  ;;  %v7916_v11 = vld [vmem:[#allocation59_spill] sm:$0xff] }
 0x2d8   :  { %3074 = vmatpush.bf16.msra.mxu2 %v7903_v29  ;;  %2949 = vmatpush.bf16.msra.mxu3 %v7906_v56  ;;  %v7910_v29 = vunpack.i.h.bf16 %v7849_v63  ;;  %v7913_v56 = vld [vmem:[#allocation165_spill] sm:$0xff]  ;;  %v2718_v2 = vsel %vm2698_vm7, %v2661_v38, 0  ;;  %v7921_v63 = vld [vmem:[#allocation103_spill] sm:$0xff] }
 0x2d9   :  { %3060 = vmatpush.bf16.msra.mxu1 %v7909_v6  ;;  %v7914_v34 = vpack.c.bf16 %v7912_v39, %v7913_v56  ;;  %v7917_v6 = vpack.c.bf16 %v7915_v48, %v7916_v11  ;;  %3108 = vmatpush.bf16.msra.mxu0 %v2718_v2  ;;  %v7925_v39 = vld [vmem:[#allocation157_spill] sm:$0xff]  ;;  %v7938_v2 = vld [vmem:[#allocation79_spill] sm:$0xff] }
 0x2da   :  { %v376_v18 = vsel %vm7858_vm5, %v7911_v21, %v7910_v29  ;;  %v7923_v29 = vpack.c.bf16 %v7921_v63, %v7922_v19  ;;  %v7924_v21 = vld [vmem:[#allocation166_spill] sm:$0xff]  ;;  %v7928_v48 = vld [vmem:[#allocation57_spill] sm:$0xff] }
 0x2db   :  { %v2491_v32 = vpack.c.bf16 %v376_v18, %v6513_v20  ;;  %v7926_v56 = vpack.c.bf16 %v7924_v21, %v7925_v39  ;;  %v7930_v38 = vld [vmem:[#allocation93_spill] sm:$0xff]  ;;  %v7936_v19 = vld [vmem:[#allocation50_spill] sm:$0xff] }
 0x2dc   :  { %3075 = vmatpush.bf16.msra.mxu2 %v7914_v34  ;;  %2950 = vmatpush.bf16.msra.mxu3 %v7917_v6  ;;  %v7927_v34 = vld [vmem:[#allocation60_spill] sm:$0xff]  ;;  %v7931_v6 = vld [vmem:[#allocation89_spill] sm:$0xff]  ;;  %v7937_v18 = vpack.c.bf16 %v7936_v19, %v7848_v1  ;;  %v3308_v1 = vunpack.i.h.bf16 %v7877_v60  ;;  %v7952_v19 = vld [vmem:[#allocation130_spill] sm:$0xff]  ;;  %v7964_v60 = vunpack.i.h.bf16 %v6450_v31 }
 0x2dd   :  { %3061 = vmatpush.bf16.msra.mxu1 %v7920_v41  ;;  %3115 = vmatpush.bf16.msrb.mxu0 %v7923_v29  ;;  %v7929_v11 = vpack.c.bf16 %v7927_v34, %v7928_v48  ;;  %v7932_v0 = vpack.c.bf16 %v7930_v38, %v7931_v6  ;;  %v7933_v41 = vld [vmem:[#allocation151_spill] sm:$0xff]  ;;  %v7941_v29 = vld [vmem:[#allocation140_spill] sm:$0xff]  ;;  %v7942_v21 = vld [vmem:[#allocation129_spill] sm:$0xff] }
 0x2de   :  { %v7935_v20 = vpack.c.bf16 %v7933_v41, %v7934_v26  ;;  %v7943_v39 = vpack.c.bf16 %v7941_v29, %v7942_v21  ;;  %v7945_v34 = vld [vmem:[#allocation25_spill] sm:$0xff]  ;;  %v7951_v26 = vunpack.i.h.bf16 %v6617_v10  ;;  %v7959_v21 = vld [vmem:[#allocation26_spill] sm:$0xff]  ;;  %v7960_v10 = vld [vmem:[#allocation23_spill] sm:$0xff] }
 0x2df   :  { %v4217_v38 = vld [vmem:[#allocation6 + $0x20] sm:$0xff] }
 0x2e0   :  { %3076 = vmatpush.bf16.msra.mxu2 %v7926_v56  ;;  %2951 = vmatpush.bf16.msra.mxu3 %v2491_v32  ;;  %v7939_v32 = vld [vmem:[#allocation78_spill] sm:$0xff]  ;;  %v7944_v56 = vld [vmem:[#allocation31_spill] sm:$0xff] }
 0x2e1   :  { %3062 = vmatpush.bf16.msra.mxu1 %v7929_v11  ;;  %3116 = vmatpush.bf16.msrb.mxu0 %v7932_v0  ;;  %v7940_v63 = vpack.c.bf16 %v7938_v2, %v7939_v32  ;;  %v7946_v48 = vpack.c.bf16 %v7944_v56, %v7945_v34  ;;  %v7015_v11 = vpop.permute.xlu0 %1616  ;;  %v7947_v0 = vld [vmem:[#allocation61_spill] sm:$0xff]  ;;  %v7956_v32 = vld [vmem:[#allocation196_spill] sm:$0xff]  ;;  %v7962_v34 = vld [vmem:[#allocation51_spill] sm:$0xff] }
 0x2e2   :  { %3229 = vmatmul.msk.bf16.vlgmr.msrb.gmra.mxu1 %vm2694_vm8, %v6320_v44  ;;  %3230 = vmatmul.msk.bf16.vlgmr.msra.gmra.mxu0 %vm2694_vm8, %v6320_v44  ;;  %v7949_v41 = vpack.c.bf16 %v7947_v0, %v7948_v30  ;;  %v4218_v30 = vld [vmem:[#allocation6 + $0x30] sm:$0xff] }
 0x2e4   :  { %3077 = vmatpush.bf16.msra.mxu2 %v7935_v20  ;;  %2952 = vmatpush.bf16.msra.mxu3 %v7788_v5  ;;  %v118_v5 = vsel %vm113_vm0, %v3302_v52, %v3303_v36  ;;  %v7950_v52 = vunpack.i.h.bf16 %v6619_v45  ;;  %v2007_v20 = vsel %vm1999_vm2, %v7951_v26, %v6827_v33  ;;  %v120_v45 = vsel %vm113_vm0, %v3307_v27, %v3308_v1  ;;  %v2732_v33 = vpop.f32.mrf.mxu0 }
 0x2e5   :  { %3063 = vmatpush.bf16.msra.mxu1 %v7937_v18  ;;  %3117 = vmatpush.bf16.msrb.mxu0 %v7940_v63  ;;  %v2467_v6 = vpack.c.bf16 %v118_v5, %v4217_v38  ;;  %v7953_v18 = vld [vmem:[#allocation121_spill] sm:$0xff]  ;;  %v1531_v5 = vpop.permute.xlu2 %1530  ;;  %v1921_v27 = vsel %vm1913_vm10, %v7964_v60, %v6790_v17  ;;  %v7965_v38 = vld [vmem:[#allocation112_spill] sm:$0xff]  ;;  %vm7972_vm2 = vcmask 998400   ;;  %v7974_v17 = vld [vmem:[#allocation195_spill] sm:$0xff] }
 0x2e6   :  { %v1964_v36 = vsel %vm1956_vm9, %v7950_v52, %v6830_v14  ;;  %v7954_v2 = vpack.c.bf16 %v7952_v19, %v7953_v18  ;;  %v7958_v14 = vld [vmem:[#allocation32_spill] sm:$0xff]  ;;  %v7968_v52 = vld [vmem:[#allocation190_spill] sm:$0xff] }
 0x2e7   :  { %v3423_v29 = vunpack.i.h.bf16 %v7958_v14  ;;  %v2654_v56 = vpack.c.bf16 %v2007_v20, %v1964_v36  ;;  %v7969_v36 = vld [vmem:[#allocation185_spill] sm:$0xff]  ;;  %v7971_v19 = vunpack.i.l.bf16 %v7958_v14 }
 0x2e8   :  { %3078 = vmatpush.bf16.msra.mxu2 %v7943_v39  ;;  %2953 = vmatpush.bf16.msra.mxu3 %v7946_v48  ;;  %v7961_v39 = vpack.c.bf16 %v7959_v21, %v7960_v10  ;;  %v7963_v48 = vpack.c.bf16 %v7962_v34, %v7755_v59  ;;  %v7970_v26 = vpack.c.bf16 %v7968_v52, %v7969_v36  ;;  %v7978_v21 = vld [vmem:[#allocation170_spill] sm:$0xff]  ;;  %v7980_v14 = vld [vmem:[#allocation13_spill] sm:$0xff]  ;;  %v7988_v52 = vld [vmem:[#allocation39_spill] sm:$0xff] }
 0x2e9   :  { %3064 = vmatpush.bf16.msra.mxu1 %v7860_v25  ;;  %3118 = vmatpush.bf16.msrb.mxu0 %v7949_v41  ;;  %v7955_v25 = vld [vmem:[#allocation200_spill] sm:$0xff]  ;;  %v2469_v41 = vpack.c.bf16 %v120_v45, %v4218_v30  ;;  %v1574_v20 = vpop.permute.xlu0 %1573  ;;  %v1885_v18 = vsel %vm7972_vm2, %v7971_v19, %v3423_v29  ;;  %v121_v29 = vsel %vm113_vm0, %v3308_v1, %v7980_v14  ;;  %v7981_v34 = vld [vmem:[#allocation193_spill] sm:$0xff] }
 0x2ea   :  { %v7957_v63 = vpack.c.bf16 %v7955_v25, %v7956_v32  ;;  %v2646_v31 = vpack.c.bf16 %v1921_v27, %v1885_v18  ;;  %v7976_v32 = vld [vmem:[#allocation41_spill] sm:$0xff]  ;;  %v7977_v45 = vld [vmem:[#allocation180_spill] sm:$0xff]  ;;  %v7984_v27 = vld [vmem:[#allocation27_spill] sm:$0xff]  ;;  %v1841_v1 = vsel %vm1833_vm12, %v4168_v61, %v6842_v55 }
 0x2eb   :  { %v7979_v10 = vpack.c.bf16 %v7977_v45, %v7978_v21  ;;  %v7991_v19 = vld [vmem:[#allocation160_spill] sm:$0xff]  ;;  %v7996_v45 = vld [vmem:[#allocation153_spill] sm:$0xff] }
 0x2ec   :  { %3079 = vmatpush.bf16.msra.mxu2 %v7954_v2  ;;  %2954 = vmatpush.bf16.msra.mxu3 %v2467_v6  ;;  %v7966_v6 = vld [vmem:[#allocation111_spill] sm:$0xff]  ;;  %v2734_v30 = vpop.f32.mrf.mxu0  ;;  %v7997_v21 = vld [vmem:[#allocation148_spill] sm:$0xff] }
 0x2ed   :  { %3065 = vmatpush.bf16.msra.mxu1 %v7961_v39  ;;  %3119 = vmatpush.bf16.msrb.mxu0 %v7963_v48  ;;  %v7967_v0 = vpack.c.bf16 %v7965_v38, %v7966_v6  ;;  %v7973_v2 = vld [vmem:[#allocation199_spill] sm:$0xff]  ;;  %v7067_v39 = vpop.permute.xlu2 %2667  ;;  %v7982_v48 = vld [vmem:[#allocation184_spill] sm:$0xff]  ;;  %v2760_v40 = vpop.f32.mrf.mxu2 }
 0x2ee   :  { %v7975_v25 = vpack.c.bf16 %v7973_v2, %v7974_v17  ;;  %v7983_v60 = vpack.c.bf16 %v7981_v34, %v7982_v48  ;;  %v7985_v38 = vld [vmem:[#allocation24_spill] sm:$0xff] }
 0x2ef   :  { %2955 = vmatmul.bf16.vlgmr.msra.gmra.mxu3 %v6142_v7  ;;  %v7986_v6 = vpack.c.bf16 %v7984_v27, %v7985_v38  ;;  %v1626_v27 = vsel %vm1618_vm1, %v4183_v24, %v7015_v11  ;;  %v1540_v24 = vsel %vm1532_vm15, %v8008_v12, %v1531_v5  ;;  %v1583_v11 = vsel %vm1575_vm4, %v6883_v50, %v1574_v20  ;;  %v8019_v20 = vld [vmem:[#allocation132_spill] sm:$0xff] }
 0x2f0   :  { %3017 = vmatpush.bf16.msrb.mxu3 %v7957_v63  ;;  %3080 = vmatpush.bf16.msra.mxu2 %v7967_v0  ;;  %v2746_v63 = vpop.f32.mrf.mxu1  ;;  %v1798_v0 = vsel %vm1790_vm11, %v4163_v4, %v6875_v3  ;;  %v7993_v3 = vld [vmem:[#allocation177_spill] sm:$0xff]  ;;  %v8018_v50 = vpack.c.bf16 %v6641_v9, %v6646_v62  ;;  %v8029_v9 = vpack.c.bf16 %v6897_v51, %v6890_v42 }
 0x2f1   :  { %3066 = vmatpush.bf16.msra.mxu1 %v2469_v41  ;;  %3120 = vmatpush.bf16.msrb.mxu0 %v7976_v32  ;;  %v7987_v41 = vld [vmem:[#allocation40_spill] sm:$0xff]  ;;  %v7093_v17 = vpop.permute.xlu0 %2672  ;;  %v2630_v4 = vpack.c.bf16 %v1841_v1, %v1798_v0  ;;  %v8003_v0 = vld [vmem:[#allocation134_spill] sm:$0xff]  ;;  %v8030_v62 = vpack.c.bf16 %v6864_v49, %v6859_v28  ;;  %v8032_v28 = vpack.c.bf16 %v6904_v46, %v6807_v23 }
 0x2f2   :  { %v7989_v36 = vpack.c.bf16 %v7987_v41, %v7988_v52  ;;  %v2735_v61 = vadd.f32 %v2734_v30, %v7093_v17  ;;  %v8005_v30 = vld [vmem:[#allocation156_spill] sm:$0xff] }
 0x2f3   :  { %3081 = vmatmul.bf16.vlgmr.msra.gmra.mxu2 %v6233_v53 }
 0x2f4   :  { %3143 = vmatpush.bf16.msrb.mxu2 %v2654_v56  ;;  %3018 = vmatpush.bf16.msrb.mxu3 %v7970_v26  ;;  %v2733_v56 = vadd.f32 %v2732_v33, %v7067_v39  ;;  %v7990_v26 = vld [vmem:[#allocation167_spill] sm:$0xff]  ;;  %v2774_v48 = vpop.f32.mrf.mxu3 }
 0x2f5   :  { %3129 = vmatpush.bf16.msrb.mxu1 %v7975_v25  ;;  %3121 = vmatpush.bf16.msrb.mxu0 %v7986_v6  ;;  %v7992_v18 = vpack.c.bf16 %v7990_v26, %v7991_v19  ;;  %v7995_v25 = vpack.c.bf16 %v7993_v3, %v7994_v16  ;;  %v8012_v26 = vld [vmem:[#allocation141_spill] sm:$0xff]  ;;  %v8013_v19 = vld [vmem:[#allocation138_spill] sm:$0xff] }
 0x2f6   :  { %3067 = vmatmul.bf16.vlgmr.msra.gmra.mxu1 %v6142_v7  ;;  %v2747_v33 = vadd.f32 %v2746_v63, %v2733_v56  ;;  %v1660_v63 = vpop.permute.xlu1 %1659  ;;  %v8000_v56 = vld [vmem:[#allocation158_spill] sm:$0xff] }
 0x2f7   :  { %v8022_v16 = vld [vmem:[#allocation202_spill] sm:$0xff] }
 0x2f8   :  { %3144 = vmatpush.bf16.msrb.mxu2 %v2646_v31  ;;  %3019 = vmatpush.bf16.msrb.mxu3 %v7979_v10  ;;  %v4219_v31 = vld [vmem:[#allocation6 + $0x38] sm:$0xff]  ;;  %v2761_v55 = vadd.f32 %v2760_v40, %v2747_v33  ;;  %v7998_v10 = vpack.c.bf16 %v7996_v45, %v7997_v21  ;;  %v2748_v14 = vpop.f32.mrf.mxu1  ;;  %v2762_v33 = vpop.f32.mrf.mxu2  ;;  %v8016_v40 = vld [vmem:[#allocation109_spill] sm:$0xff]  ;;  %v8027_v45 = vld [vmem:[#allocation119_spill] sm:$0xff] }
 0x2f9   :  { %3130 = vmatpush.bf16.msrb.mxu1 %v7983_v60  ;;  %v2470_v2 = vpack.c.bf16 %v121_v29, %v4219_v31  ;;  %v7999_v29 = vld [vmem:[#allocation168_spill] sm:$0xff]  ;;  %v1669_v60 = vsel %vm1661_vm3, %v4188_v58, %v1660_v63  ;;  %v2749_v6 = vadd.f32 %v2748_v14, %v2735_v61  ;;  %v8006_v58 = vld [vmem:[#allocation147_spill] sm:$0xff]  ;;  %v8017_v5 = vpack.c.bf16 %v8015_v47, %v8016_v40 }
 0x2fa   :  { %v8001_v34 = vpack.c.bf16 %v7999_v29, %v8000_v56  ;;  %v2775_v38 = vadd.f32 %v2774_v48, %v2761_v55  ;;  %v2614_v15 = vpack.c.bf16 %v1669_v60, %v1626_v27  ;;  %v8007_v41 = vpack.c.bf16 %v8005_v30, %v8006_v58  ;;  %v8026_v63 = vld [vmem:[#allocation120_spill] sm:$0xff] }
 0x2fb   :  { %3122 = vmatpush.bf16.msrb.mxu0 %v2470_v2  ;;  %v2763_v43 = vadd.f32 %v2762_v33, %v2749_v6  ;;  %v8025_v61 = vpack.c.bf16 %v6477_v37, %v7755_v59  ;;  %v8028_v21 = vpack.c.bf16 %v8026_v63, %v8027_v45  ;;  %v2802_v37 = vpop.f32.mrf.mxu0  ;;  %v8031_v56 = vpack.c.bf16 %v6935_v13, %v6928_v22  ;;  %v8034_v22 = vld [vmem:[#allocation198_spill] sm:$0xff] }
 0x2fc   :  { %3145 = vmatpush.bf16.msrb.mxu2 %v7989_v36  ;;  %3020 = vmatpush.bf16.msrb.mxu3 %v7992_v18  ;;  %3171 = vst [vmem:[#allocation9] sm:$0xff] %v2775_v38  ;;  %v2606_v36 = vpack.c.bf16 %v1583_v11, %v1540_v24  ;;  %v8014_v18 = vpack.c.bf16 %v8012_v26, %v8013_v19  ;;  %v2776_v31 = vpop.f32.mrf.mxu3  ;;  %v8033_v38 = vld [vmem:[#allocation203_spill] sm:$0xff] }
 0x2fd   :  { %3131 = vmatpush.bf16.msrb.mxu1 %v7995_v25  ;;  %v2777_v2 = vadd.f32 %v2776_v31, %v2763_v43  ;;  %v8023_v25 = vld [vmem:[#allocation201_spill] sm:$0xff]  ;;  %v8035_v13 = vpack.c.bf16 %v8033_v38, %v8034_v22 }
 0x2fe   :  { %3123 = vmatmul.bf16.vlgmr.msrb.gmra.mxu0 %v6142_v7  ;;  %v8002_v7 = vld [vmem:[#allocation144_spill] sm:$0xff]  ;;  %v8024_v55 = vpack.c.bf16 %v8022_v16, %v8023_v25  ;;  %v2041_v59 = vpop.permute.xlu1 %2040 }
 0x2ff   :  { %v8004_v1 = vpack.c.bf16 %v8002_v7, %v8003_v0  ;;  %3179 = vst [vmem:[#allocation9 + $0x40] sm:$0xff] %v2777_v2 }
 0x300   :  { %3146 = vmatpush.bf16.msrb.mxu2 %v2630_v4  ;;  %3021 = vmatpush.bf16.msrb.mxu3 %v7998_v10  ;;  %v8020_v4 = vld [vmem:[#allocation122_spill] sm:$0xff] }
 0x301   :  { %3132 = vmatpush.bf16.msrb.mxu1 %v8001_v34  ;;  %v8021_v3 = vpack.c.bf16 %v8019_v20, %v8020_v4 }
 0x303   :  { %v2804_v60 = vpop.f32.mrf.mxu0 }
 0x304   :  { %3147 = vmatpush.bf16.msrb.mxu2 %v2622_v35  ;;  %3022 = vmatpush.bf16.msrb.mxu3 %v8004_v1  ;;  %v8010_v35 = vld [vmem:[#allocation124_spill] sm:$0xff] }
 0x305   :  { %3133 = vmatpush.bf16.msrb.mxu1 %v8007_v41  ;;  %v8011_v52 = vpack.c.bf16 %v8009_v54, %v8010_v35 }
 0x307   :  { %v2816_v14 = vpop.f32.mrf.mxu1 }
 0x308   :  { %3148 = vmatpush.bf16.msrb.mxu2 %v2614_v15  ;;  %3023 = vmatpush.bf16.msrb.mxu3 %v8011_v52 }
 0x309   :  { %3134 = vmatpush.bf16.msrb.mxu1 %v8014_v18 }
 0x30b   :  { %v2872_v15 = vpop.f32.mrf.mxu0 }
 0x30c   :  { %3149 = vmatpush.bf16.msrb.mxu2 %v2606_v36  ;;  %3024 = vmatpush.bf16.msrb.mxu3 %v8017_v5 }
 0x30d   :  { %3135 = vmatpush.bf16.msrb.mxu1 %v8021_v3 }
 0x30f   :  { %3025 = vmatmul.bf16.vlgmr.msrb.gmra.mxu3 %v6233_v53 }
 0x310   :  { %3087 = vmatpush.bf16.msra.mxu3 %v8018_v50  ;;  %3150 = vmatpush.bf16.msrb.mxu2 %v8024_v55 }
 0x311   :  { %3136 = vmatpush.bf16.msrb.mxu1 %v8028_v21 }
 0x313   :  { %3151 = vmatmul.bf16.vlgmr.msrb.gmra.mxu2 %v6287_v8  ;;  %v2874_v54 = vpop.f32.mrf.mxu0 }
 0x314   :  { %3088 = vmatpush.bf16.msra.mxu3 %v8025_v61  ;;  %3137 = vmatmul.bf16.vlgmr.msrb.gmra.mxu1 %v6233_v53  ;;  %v2788_v10 = vpop.f32.mrf.mxu3  ;;  %v2050_v53 = vsel %vm2042_vm6, %v6948_v57, %v2041_v59  ;;  %v2818_v57 = vpop.f32.mrf.mxu1 }
 0x315   :  { %v2789_v29 = vadd.f32 %v2788_v10, %v7067_v39  ;;  %v2662_v34 = vpack.c.bf16 %v2050_v53, %v2050_v53 }
 0x317   :  { %v2803_v42 = vadd.f32 %v2802_v37, %v2789_v29  ;;  %v2721_v6 = vsel %vm2698_vm7, %v2662_v34, 0 }
 0x318   :  { %3089 = vmatpush.bf16.msra.mxu3 %v7976_v32  ;;  %v2830_v32 = vpop.f32.mrf.mxu2 }
 0x319   :  { %v2817_v51 = vadd.f32 %v2816_v14, %v2803_v42 }
 0x31b   :  { %v2831_v49 = vadd.f32 %v2830_v32, %v2817_v51  ;;  %v2942_v2 = vpop.f32.mrf.mxu0 }
 0x31c   :  { %3090 = vmatpush.bf16.msra.mxu3 %v8029_v9  ;;  %v2790_v48 = vpop.f32.mrf.mxu3  ;;  %v2886_v41 = vpop.f32.mrf.mxu1 }
 0x31d   :  { %3172 = vst [vmem:[#allocation9 + $0x8] sm:$0xff] %v2831_v49  ;;  %v2791_v27 = vadd.f32 %v2790_v48, %v7093_v17 }
 0x31f   :  { %v2805_v7 = vadd.f32 %v2804_v60, %v2791_v27 }
 0x320   :  { %3091 = vmatpush.bf16.msra.mxu3 %v8030_v62  ;;  %v2832_v0 = vpop.f32.mrf.mxu2 }
 0x321   :  { %v2819_v23 = vadd.f32 %v2818_v57, %v2805_v7 }
 0x323   :  { %v2833_v46 = vadd.f32 %v2832_v0, %v2819_v23  ;;  %v2944_v25 = vpop.f32.mrf.mxu0 }
 0x324   :  { %3092 = vmatpush.bf16.msra.mxu3 %v8031_v56  ;;  %v2888_v36 = vpop.f32.mrf.mxu1 }
 0x325   :  { %3180 = vst [vmem:[#allocation9 + $0x48] sm:$0xff] %v2833_v46 }
 0x328   :  { %3093 = vmatpush.bf16.msra.mxu3 %v8032_v28  ;;  %v2858_v1 = vpop.f32.mrf.mxu2 }
 0x32c   :  { %3094 = vmatpush.bf16.msra.mxu3 %v8035_v13 }
 0x32e   :  { %v2970_v63 = vpop.f32.mrf.mxu0 }
 0x32f   :  { %3095 = vmatmul.bf16.vlgmr.msra.gmra.mxu3 %v6287_v8 }
 0x330   :  { %3164 = vmatpush.bf16.msrb.mxu3 %v2721_v6  ;;  %v2860_v43 = vpop.f32.mrf.mxu2 }
 0x332   :  { %v2844_v33 = vpop.f32.mrf.mxu3 }
 0x333   :  { %v2845_v30 = vadd.f32 %v2844_v33, %v7067_v39 }
 0x335   :  { %v2859_v58 = vadd.f32 %v2858_v1, %v2845_v30 }
 0x336   :  { %v2972_v29 = vpop.f32.mrf.mxu0 }
 0x337   :  { %v2873_v12 = vadd.f32 %v2872_v15, %v2859_v58 }
 0x338   :  { %v2928_v18 = vpop.f32.mrf.mxu2 }
 0x339   :  { %v2887_v24 = vadd.f32 %v2886_v41, %v2873_v12 }
 0x33a   :  { %v2846_v11 = vpop.f32.mrf.mxu3 }
 0x33b   :  { %3173 = vst [vmem:[#allocation9 + $0x10] sm:$0xff] %v2887_v24  ;;  %v2847_v8 = vadd.f32 %v2846_v11, %v7093_v17 }
 0x33d   :  { %v2861_v35 = vadd.f32 %v2860_v43, %v2847_v8 }
 0x33f   :  { %3231 = vmatmul.msk.bf16.vlgmr.msrb.gmra.mxu3 %vm2694_vm8, %v6320_v44  ;;  %v2875_v52 = vadd.f32 %v2874_v54, %v2861_v35  ;;  %v2914_v44 = vpop.f32.mrf.mxu1 }
 0x340   :  { %v2930_v3 = vpop.f32.mrf.mxu2 }
 0x341   :  { %v2889_v26 = vadd.f32 %v2888_v36, %v2875_v52 }
 0x343   :  { %3181 = vst [vmem:[#allocation9 + $0x50] sm:$0xff] %v2889_v26 }
 0x347   :  { %v2916_v20 = vpop.f32.mrf.mxu1 }
 0x348   :  { %v2998_v37 = vpop.f32.mrf.mxu2 }
 0x34e   :  { %v3040_v28 = vpop.f32.mrf.mxu0 }
 0x34f   :  { %v2984_v9 = vpop.f32.mrf.mxu1 }
 0x350   :  { %v3000_v51 = vpop.f32.mrf.mxu2 }
 0x352   :  { %v2900_v19 = vpop.f32.mrf.mxu3 }
 0x353   :  { %v2901_v31 = vadd.f32 %v2900_v19, %v7067_v39 }
 0x355   :  { %v2915_v47 = vadd.f32 %v2914_v44, %v2901_v31 }
 0x356   :  { %v3042_v22 = vpop.f32.mrf.mxu0 }
 0x357   :  { %v2929_v40 = vadd.f32 %v2928_v18, %v2915_v47  ;;  %v2986_v53 = vpop.f32.mrf.mxu1 }
 0x358   :  { %v3012_v49 = vpop.f32.mrf.mxu2 }
 0x359   :  { %v2943_v5 = vadd.f32 %v2942_v2, %v2929_v40  ;;  %v3013_v60 = vadd.f32 %v3012_v49, %v7067_v39 }
 0x35a   :  { %v2902_v50 = vpop.f32.mrf.mxu3 }
 0x35b   :  { %3174 = vst [vmem:[#allocation9 + $0x18] sm:$0xff] %v2943_v5  ;;  %v2903_v4 = vadd.f32 %v2902_v50, %v7093_v17 }
 0x35d   :  { %v2917_v16 = vadd.f32 %v2916_v20, %v2903_v4 }
 0x35f   :  { %v2931_v55 = vadd.f32 %v2930_v3, %v2917_v16  ;;  %v3054_v48 = vpop.f32.mrf.mxu1  ;;  %v3110_v33 = vpop.f32.mrf.mxu0 }
 0x360   :  { %v3014_v13 = vpop.f32.mrf.mxu2 }
 0x361   :  { %v2945_v61 = vadd.f32 %v2944_v25, %v2931_v55  ;;  %v3015_v7 = vadd.f32 %v3014_v13, %v7093_v17 }
 0x363   :  { %3182 = vst [vmem:[#allocation9 + $0x58] sm:$0xff] %v2945_v61 }
 0x367   :  { %v3056_v0 = vpop.f32.mrf.mxu1  ;;  %v3112_v41 = vpop.f32.mrf.mxu0 }
 0x372   :  { %v2956_v45 = vpop.f32.mrf.mxu3 }
 0x373   :  { %v2957_v21 = vadd.f32 %v2956_v45, %v7067_v39  ;;  %v3068_v30 = vpop.f32.mrf.mxu1 }
 0x374   :  { %v3069_v12 = vadd.f32 %v3068_v30, %v7067_v39 }
 0x375   :  { %v2971_v62 = vadd.f32 %v2970_v63, %v2957_v21 }
 0x376   :  { %v3082_v58 = vpop.f32.mrf.mxu2 }
 0x377   :  { %v2985_v59 = vadd.f32 %v2984_v9, %v2971_v62  ;;  %v3083_v11 = vadd.f32 %v3082_v58, %v3069_v12 }
 0x379   :  { %v2999_v10 = vadd.f32 %v2998_v37, %v2985_v59 }
 0x37a   :  { %v2958_v14 = vpop.f32.mrf.mxu3 }
 0x37b   :  { %3175 = vst [vmem:[#allocation9 + $0x20] sm:$0xff] %v2999_v10  ;;  %v2959_v56 = vadd.f32 %v2958_v14, %v7093_v17  ;;  %v3070_v24 = vpop.f32.mrf.mxu1  ;;  %v3124_v35 = vpop.f32.mrf.mxu0 }
 0x37c   :  { %v3071_v52 = vadd.f32 %v3070_v24, %v7093_v17  ;;  %v3125_v26 = vadd.f32 %v3124_v35, %v7067_v39 }
 0x37d   :  { %v2973_v32 = vadd.f32 %v2972_v29, %v2959_v56 }
 0x37e   :  { %v3084_v43 = vpop.f32.mrf.mxu2 }
 0x37f   :  { %v2987_v42 = vadd.f32 %v2986_v53, %v2973_v32  ;;  %v3085_v19 = vadd.f32 %v3084_v43, %v3071_v52 }
 0x381   :  { %v3001_v34 = vadd.f32 %v3000_v51, %v2987_v42 }
 0x383   :  { %3183 = vst [vmem:[#allocation9 + $0x60] sm:$0xff] %v3001_v34  ;;  %v3126_v5 = vpop.f32.mrf.mxu0 }
 0x384   :  { %v3127_v20 = vadd.f32 %v3126_v5, %v7093_v17 }
 0x391   :  { %v3138_v44 = vpop.f32.mrf.mxu1 }
 0x392   :  { %v3026_v27 = vpop.f32.mrf.mxu3  ;;  %v3139_v31 = vadd.f32 %v3138_v44, %v3125_v26 }
 0x393   :  { %v3027_v38 = vadd.f32 %v3026_v27, %v3013_v60 }
 0x395   :  { %v3041_v6 = vadd.f32 %v3040_v28, %v3027_v38 }
 0x396   :  { %v3152_v47 = vpop.f32.mrf.mxu2 }
 0x397   :  { %v3055_v57 = vadd.f32 %v3054_v48, %v3041_v6  ;;  %v3153_v50 = vadd.f32 %v3152_v47, %v3139_v31 }
 0x399   :  { %3176 = vst [vmem:[#allocation9 + $0x28] sm:$0xff] %v3055_v57  ;;  %v3140_v4 = vpop.f32.mrf.mxu1 }
 0x39a   :  { %v3028_v23 = vpop.f32.mrf.mxu3  ;;  %v3141_v25 = vadd.f32 %v3140_v4, %v3127_v20 }
 0x39b   :  { %v3029_v46 = vadd.f32 %v3028_v23, %v3015_v7 }
 0x39d   :  { %v3043_v1 = vadd.f32 %v3042_v22, %v3029_v46 }
 0x39e   :  { %v3154_v55 = vpop.f32.mrf.mxu2 }
 0x39f   :  { %v3057_v15 = vadd.f32 %v3056_v0, %v3043_v1  ;;  %v3155_v39 = vadd.f32 %v3154_v55, %v3141_v25 }
 0x3a1   :  { %3184 = vst [vmem:[#allocation9 + $0x68] sm:$0xff] %v3057_v15 }
 0x3b2   :  { %v3096_v8 = vpop.f32.mrf.mxu3 }
 0x3b3   :  { %v3097_v54 = vadd.f32 %v3096_v8, %v3083_v11 }
 0x3b5   :  { %v3111_v36 = vadd.f32 %v3110_v33, %v3097_v54 }
 0x3b7   :  { %3177 = vst [vmem:[#allocation9 + $0x30] sm:$0xff] %v3111_v36 }
 0x3ba   :  { %v3098_v18 = vpop.f32.mrf.mxu3 }
 0x3bb   :  { %v3099_v2 = vadd.f32 %v3098_v18, %v3085_v19 }
 0x3bd   :  { %v3113_v40 = vadd.f32 %v3112_v41, %v3099_v2 }
 0x3bf   :  { %3185 = vst [vmem:[#allocation9 + $0x70] sm:$0xff] %v3113_v40 }
 0x3c2   :  { %v3166_v3 = vpop.f32.mrf.mxu3 }
 0x3c3   :  { %v3167_v16 = vadd.f32 %v3166_v3, %v3153_v50 }
 0x3c5   :  { %3178 = vst [vmem:[#allocation9 + $0x38] sm:$0xff] %v3167_v16 }
 0x3ca   :  { %v3168_v61 = vpop.f32.mrf.mxu3 }
 0x3cb   :  { %v3169_v63 = vadd.f32 %v3168_v61, %v3155_v39 }
 0x3cd   :  { %3186 = vst [vmem:[#allocation9 + $0x78] sm:$0xff] %v3169_v63 }
 0x3ce   :  { %3199 = dma.vmem_to_hbm [thread:$0]  %s3192_s23, 2048, %s3194_s27, [#allocation5], %s4373_s2, %s4373_s2, %s4374_s28  }
 0x3cf   :  { %4320 = dma.done.wait [#allocation5], 2048  }
 0x3d0   :  { %4321 = vsyncadd [#allocation5], 4294965248 }
 0x3d1   :  { %3204 = vsyncpa [#allocation4], 1 }
 0x3d2   :  { %3205 = vsyncpa [#allocation7], 1 }
 0x3d3   :  { %3206 = vsyncpa [#allocation5], 1 }

</bundles_post_ra>
